<compile_context>
chip_gen: v7x
topology: tpu7x:2x2x1
jax: 0.10.0
libtpu: 0.0.40
codegen_flags: <defaults>
</compile_context>

<pallas_src>
import functools

import jax
import jax.numpy as jnp
from jax import lax
from jax.experimental import pallas as pl
from jax.experimental.pallas import tpu as pltpu


# ----------------------------------------------------------------------------
# Kernel 1: three independent LSTM recurrences in ONE pallas_call (grid=(3,)).
#   gx_ref  : (T, B, 4H)  precomputed x_t @ W_ih + (b_ih + b_hh), time-major
#   whh_ref : (H, 4H)     recurrent weight (acts as W_hh^T), gate order i,f,g,o
#   out_ref : (T, B, H)   per-timestep hidden states (un-masked; masked in wrapper)
# ----------------------------------------------------------------------------
def lstm_kernel(gx_ref, whh_ref, out_ref):
    T, B, _ = gx_ref.shape
    H = out_ref.shape[-1]

    # Hoist the recurrent weight load out of the recurrence (read once).
    w_hh = whh_ref[...]

    h = jnp.zeros((B, H), jnp.float32)
    c = jnp.zeros((B, H), jnp.float32)

    # T is small and static -> fully unrolled loop (static indices everywhere),
    # giving the scheduler full visibility across timesteps.
    for t in range(T):
        gates = gx_ref[t] + jnp.dot(h, w_hh, preferred_element_type=jnp.float32)  # (B, 4H)
        # One EUP sigmoid pass over the full (B, 4H) row, tanh only on the g slice.
        sg = jax.nn.sigmoid(gates)
        i_g = sg[:, 0:H]
        f_g = sg[:, H:2 * H]
        o_g = sg[:, 3 * H:4 * H]
        g_g = jnp.tanh(gates[:, 2 * H:3 * H])
        c = f_g * c + i_g * g_g
        h = o_g * jnp.tanh(c)
        out_ref[t] = h


def run_lstms(gx, whh_stacked):
    """gx: (N, T, B, 4H) precomputed input-gate projections (+bias), time-major.
    whh_stacked: (N, H, 4H).  Returns (N, T, B, H) un-masked hidden states."""
    N, T, B, G = gx.shape
    H = G // 4
    return pl.pallas_call(
        lstm_kernel,
        grid=(N,),
        out_shape=jax.ShapeDtypeStruct((N, T, B, H), jnp.float32),
        in_specs=[
            pl.BlockSpec((None, T, B, G), lambda i: (i, 0, 0, 0)),
            pl.BlockSpec((None, H, G), lambda i: (i, 0, 0)),
        ],
        out_specs=pl.BlockSpec((None, T, B, H), lambda i: (i, 0, 0, 0)),
        # The three LSTMs are independent: on v7x the two TensorCores split them.
        compiler_params=pltpu.CompilerParams(dimension_semantics=("parallel",)),
    )(gx, whh_stacked)


# ----------------------------------------------------------------------------
# Kernel 2: 4 bi-linear attentions + final dense (+ softmax), whole batch in one
# program.  Stacked attention params, index order: 0=t2c_l, 1=t2c_r, 2=c2t_l, 3=c2t_r.
#   maxlen_ref : SMEM (3,) int32   batch-max lengths (clamped >= 1) for [l, c, r]
#   mem_ref    : (3, B, T, H)      memory_l / memory_c / memory_r (zero past lengths)
#   vc_ref     : (B, H)            pooled aspect vector
#   wk/bk/wq/bq/wbl/wproj/bproj    stacked (4, ...) attention parameters
#   dw_ref     : (4H, P), db_ref: (1, P);  out_ref: (B, P)
# ----------------------------------------------------------------------------
def attn_dense_kernel(maxlen_ref, mem_ref, vc_ref,
                      wk_ref, bk_ref, wq_ref, bq_ref, wbl_ref, wproj_ref, bproj_ref,
                      dw_ref, db_ref, out_ref, *, use_softmax):
    _, B, T, H = mem_ref.shape
    P = out_ref.shape[-1]
    NEG = jnp.float32(-1e30)

    mem = mem_ref[...]          # (3, B, T, H)
    vc = vc_ref[...]            # (B, H)
    dw = dw_ref[...]            # (4H, P)
    db = db_ref[...]            # (1, P)
    max_l = maxlen_ref[0]
    max_c = maxlen_ref[1]
    max_r = maxlen_ref[2]

    def attend(idx, k, q, max_len):
        # k: (T, H) memory of one batch element, q: (1, H) query -> (1, H).
        kx = jnp.dot(k, wk_ref[idx], preferred_element_type=jnp.float32) + bk_ref[idx]   # (T, H)
        qx = jnp.dot(q, wq_ref[idx], preferred_element_type=jnp.float32) + bq_ref[idx]   # (1, H)
        qw = jnp.dot(qx, wbl_ref[idx], preferred_element_type=jnp.float32)               # (1, H)
        score = lax.dot_general(qw, kx, (((1,), (1,)), ((), ())),
                                preferred_element_type=jnp.float32)                      # (1, T)
        # Mask key positions beyond the batch-max length (== torch truncation).
        pos = lax.broadcasted_iota(jnp.int32, (1, T), 1)
        score = jnp.where(pos < max_len, score, NEG)
        score = score - jnp.max(score, axis=-1, keepdims=True)
        e = jnp.exp(score)
        attn = e / jnp.sum(e, axis=-1, keepdims=True)                                    # softmax over T
        ctx = jnp.dot(attn, kx, preferred_element_type=jnp.float32)                      # (1, H)
        return (jnp.dot(ctx, wproj_ref[idx], preferred_element_type=jnp.float32)
                + bproj_ref[idx])

    rows = []
    for b in range(B):   # static unroll over the (tiny) batch
        q_c = vc[b:b + 1, :]                               # (1, H)
        v_l = attend(0, mem[0, b], q_c, max_l)
        v_r = attend(1, mem[2, b], q_c, max_r)
        v_c_l = attend(2, mem[1, b], v_l, max_c)
        v_c_r = attend(3, mem[1, b], v_r, max_c)
        # dense(concat(v_l, v_c_l, v_c_r, v_r)) == sum of four H->P partial matmuls.
        logits = (jnp.dot(v_l, dw[0 * H:1 * H, :], preferred_element_type=jnp.float32)
                  + jnp.dot(v_c_l, dw[1 * H:2 * H, :], preferred_element_type=jnp.float32)
                  + jnp.dot(v_c_r, dw[2 * H:3 * H, :], preferred_element_type=jnp.float32)
                  + jnp.dot(v_r, dw[3 * H:4 * H, :], preferred_element_type=jnp.float32)
                  + db)                                    # (1, P)
        rows.append(logits)
    logits = jnp.concatenate(rows, axis=0)                 # (B, P)

    if use_softmax:
        m = jnp.max(logits, axis=-1, keepdims=True)
        e = jnp.exp(logits - m)
        out_ref[...] = e / jnp.sum(e, axis=-1, keepdims=True)
    else:
        out_ref[...] = logits


def run_attention_dense(params, mem, v_c, maxlens, use_softmax):
    B, H = v_c.shape
    P = params["dense_w"].shape[1]
    names = ("t2c_l", "t2c_r", "c2t_l", "c2t_r")
    stk = lambda f: jnp.stack([params[n][f] for n in names], axis=0)
    vmem = pl.BlockSpec(memory_space=pltpu.MemorySpace.VMEM)
    smem = pl.BlockSpec(memory_space=pltpu.MemorySpace.SMEM)
    return pl.pallas_call(
        functools.partial(attn_dense_kernel, use_softmax=use_softmax),
        out_shape=jax.ShapeDtypeStruct((B, P), jnp.float32),
        in_specs=[smem] + [vmem] * 11,
        out_specs=vmem,
    )(maxlens, mem, v_c,
      stk("w_k"), stk("b_k"), stk("w_q"), stk("b_q"),
      stk("w_bl"), stk("w_proj"), stk("b_proj"),
      params["dense_w"], params["dense_b"])


# ----------------------------------------------------------------------------
# Full LCRS forward pass (jittable: no data-dependent host sync).
# ----------------------------------------------------------------------------
def lcrs_forward(params, x_l, x_c, x_r, use_softmax=True):
    B = x_l.shape[0]
    T = max(x_l.shape[1], x_c.shape[1], x_r.shape[1])     # static Python int

    x_l_len = jnp.sum(x_l != 0, axis=-1).astype(jnp.int32)
    x_c_len = jnp.sum(x_c != 0, axis=-1).astype(jnp.int32)
    x_r_len = jnp.sum(x_r != 0, axis=-1).astype(jnp.int32)

    emb = params["embedding"]

    def embed_pad(x):                                      # (B, Tx) -> (B, T, E)
        e = emb[x]
        return jnp.pad(e, ((0, 0), (0, T - e.shape[1]), (0, 0)))

    e_all = jnp.stack([embed_pad(x_l), embed_pad(x_c), embed_pad(x_r)], axis=0)   # (3,B,T,E)
    x_tm = jnp.transpose(e_all, (0, 2, 1, 3))                                     # (3,T,B,E)

    lstm_names = ("lstm_l", "lstm_c", "lstm_r")
    w_ih = jnp.stack([params[n]["w_ih"] for n in lstm_names], axis=0)             # (3,E,4H)
    w_hh = jnp.stack([params[n]["w_hh"] for n in lstm_names], axis=0)             # (3,H,4H)
    b = jnp.stack([params[n]["b"] for n in lstm_names], axis=0)                   # (3,1,4H)
    H = w_hh.shape[1]

    # Input-side gate projections are fully parallel across timesteps: one batched
    # XLA matmul, hoisted out of the sequential Pallas recurrence.
    gx = jnp.einsum("ntbe,neg->ntbg", x_tm, w_ih,
                    precision=lax.Precision.HIGHEST) + b[:, None]                 # (3,T,B,4H)

    hidden_tm = run_lstms(gx, w_hh)                                               # (3,T,B,H)

    # Zero hidden states past each sequence length (pack/pad_packed semantics).
    lens = jnp.stack([x_l_len, x_c_len, x_r_len], axis=0)                         # (3,B)
    mask = (jnp.arange(T)[None, :, None] < lens[:, None, :]).astype(jnp.float32)  # (3,T,B)
    mem = jnp.transpose(hidden_tm * mask[..., None], (0, 2, 1, 3))                # (3,B,T,H)

    # memory_weighter == 'no' (default): no positional reweighting.

    v_c = jnp.sum(mem[1], axis=1) / x_c_len.astype(jnp.float32)[:, None]          # (B,H)

    # Batch-max lengths, clamped to >= 1 (matches torch's zeros((B,1,H)) fallback
    # when a whole side is empty).  Masking happens inside the attention kernel.
    maxlens = jnp.stack([jnp.maximum(jnp.max(x_l_len), 1),
                         jnp.maximum(jnp.max(x_c_len), 1),
                         jnp.maximum(jnp.max(x_r_len), 1)]).astype(jnp.int32)     # (3,)

    # dropout: identity at inference.
    return run_attention_dense(params, mem, v_c, maxlens, use_softmax)


# ----------------------------------------------------------------------------
# Pure-JAX reference (mirrors the torch semantics) for correctness checking.
# ----------------------------------------------------------------------------
def _ref_lstm(p, x, lens):
    hp = lax.Precision.HIGHEST
    B, T, _ = x.shape
    H = p["w_hh"].shape[0]
    h = jnp.zeros((B, H), jnp.float32)
    c = jnp.zeros((B, H), jnp.float32)
    outs = []
    for t in range(T):
        gates = (jnp.dot(x[:, t], p["w_ih"], precision=hp)
                 + jnp.dot(h, p["w_hh"], precision=hp) + p["b"])
        i = jax.nn.sigmoid(gates[:, :H])
        f = jax.nn.sigmoid(gates[:, H:2 * H])
        g = jnp.tanh(gates[:, 2 * H:3 * H])
        o = jax.nn.sigmoid(gates[:, 3 * H:])
        c = f * c + i * g
        h = o * jnp.tanh(c)
        outs.append(h)
    out = jnp.stack(outs, axis=1)                                                 # (B,T,H)
    m = (jnp.arange(T)[None, :] < lens[:, None]).astype(jnp.float32)[..., None]
    return out * m


def _ref_attention(p, k, q, max_len):
    hp = lax.Precision.HIGHEST
    T = k.shape[1]
    kx = jnp.einsum("bth,hd->btd", k, p["w_k"], precision=hp) + p["b_k"]
    qx = jnp.dot(q, p["w_q"], precision=hp) + p["b_q"]
    qw = jnp.dot(qx, p["w_bl"], precision=hp)
    score = jnp.einsum("bh,bth->bt", qw, kx, precision=hp)
    score = jnp.where(jnp.arange(T)[None, :] < max_len, score, -jnp.inf)
    attn = jax.nn.softmax(score, axis=-1)
    ctx = jnp.einsum("bt,bth->bh", attn, kx, precision=hp)
    return jnp.dot(ctx, p["w_proj"], precision=hp) + p["b_proj"]


def lcrs_forward_ref(params, x_l, x_c, x_r, use_softmax=True):
    hp = lax.Precision.HIGHEST
    emb = params["embedding"]
    x_l_len = jnp.sum(x_l != 0, axis=-1).astype(jnp.int32)
    x_c_len = jnp.sum(x_c != 0, axis=-1).astype(jnp.int32)
    x_r_len = jnp.sum(x_r != 0, axis=-1).astype(jnp.int32)
    mem_l = _ref_lstm(params["lstm_l"], emb[x_l], x_l_len)
    mem_c = _ref_lstm(params["lstm_c"], emb[x_c], x_c_len)
    mem_r = _ref_lstm(params["lstm_r"], emb[x_r], x_r_len)
    max_l = jnp.maximum(jnp.max(x_l_len), 1)
    max_c = jnp.maximum(jnp.max(x_c_len), 1)
    max_r = jnp.maximum(jnp.max(x_r_len), 1)
    v_c = jnp.sum(mem_c, axis=1) / x_c_len.astype(jnp.float32)[:, None]
    v_l = _ref_attention(params["t2c_l"], mem_l, v_c, max_l)
    v_r = _ref_attention(params["t2c_r"], mem_r, v_c, max_r)
    v_c_l = _ref_attention(params["c2t_l"], mem_c, v_l, max_c)
    v_c_r = _ref_attention(params["c2t_r"], mem_c, v_r, max_c)
    v_s = jnp.concatenate((v_l, v_c_l, v_c_r, v_r), axis=-1)
    out = jnp.dot(v_s, params["dense_w"], precision=hp) + params["dense_b"]
    return jax.nn.softmax(out, axis=-1) if use_softmax else out


# ----------------------------------------------------------------------------
# Deterministic synthetic parameter init (shapes implied by the module).
# embed_dim == hidden_dim (required by the torch code's memory_l assignment).
# ----------------------------------------------------------------------------
def init_params(key, vocab, E, H, P):
    def u(k, shape, scale=0.1):
        return jax.random.uniform(k, shape, jnp.float32, -scale, scale)

    keys = jax.random.split(key, 10)
    emb = u(keys[0], (vocab, E)).at[0].set(0.0)           # row 0 = padding

    def lstm_p(k):
        k1, k2, k3 = jax.random.split(k, 3)
        return {"w_ih": u(k1, (E, 4 * H)),
                "w_hh": u(k2, (H, 4 * H)),
                "b": u(k3, (1, 4 * H))}

    def attn_p(k):
        ks = jax.random.split(k, 7)
        return {"w_k": u(ks[0], (H, H)), "b_k": u(ks[1], (1, H)),
                "w_q": u(ks[2], (H, H)), "b_q": u(ks[3], (1, H)),
                "w_bl": u(ks[4], (H, H)),
                "w_proj": u(ks[5], (H, H)), "b_proj": u(ks[6], (1, H))}

    return {
        "embedding": emb,
        "lstm_l": lstm_p(keys[1]),
        "lstm_c": lstm_p(keys[2]),
        "lstm_r": lstm_p(keys[3]),
        "t2c_l": attn_p(keys[4]),
        "t2c_r": attn_p(keys[5]),
        "c2t_l": attn_p(keys[6]),
        "c2t_r": attn_p(keys[7]),
        "dense_w": u(keys[8], (4 * H, P)),
        "dense_b": u(keys[9], (1, P)),
    }


if __name__ == "__main__":
    B = 2
    T_l, T_c, T_r = 8, 4, 8
    vocab, E, H, P = 50, 32, 32, 3

    params = init_params(jax.random.PRNGKey(0), vocab, E, H, P)

    def make_tokens(k, T, lengths):
        toks = jax.random.randint(k, (B, T), 1, vocab)
        pos = jnp.arange(T)[None, :]
        return jnp.where(pos < jnp.asarray(lengths)[:, None], toks, 0).astype(jnp.int32)

    tk = jax.random.split(jax.random.PRNGKey(1), 3)
    x_l = make_tokens(tk[0], T_l, [5, 3])   # left contexts
    x_c = make_tokens(tk[1], T_c, [2, 4])   # aspect terms (non-empty, as the model requires)
    x_r = make_tokens(tk[2], T_r, [6, 0])   # right contexts (one empty -> zero memory path)

    fwd = jax.jit(lcrs_forward, static_argnames=("use_softmax",))
    out = jax.block_until_ready(fwd(params, x_l, x_c, x_r, use_softmax=True))

    ref = lcrs_forward_ref(params, x_l, x_c, x_r, use_softmax=True)

    assert out.shape == (B, P), out.shape
    assert bool(jnp.all(jnp.isfinite(out)))
    # softmax rows sum to 1
    assert bool(jnp.all(jnp.abs(jnp.sum(out, axis=-1) - 1.0) < 1e-5))
    # matches the pure-JAX reference of the torch forward
    assert bool(jnp.allclose(out, ref, atol=2e-3, rtol=2e-3)), (out, ref)
    print("KERNEL_OK")
</pallas_src>

<mosaic_0001>
module attributes {stable_mosaic.version = 11 : i64} {
  func.func @lstm_kernel(%arg0: i32, %arg1: memref<1x8x2x128xf32, #tpu.memory_space<vmem>>, %arg2: memref<1x32x128xf32, #tpu.memory_space<vmem>>, %arg3: memref<1x8x2x32xf32, #tpu.memory_space<vmem>>) attributes {dimension_semantics = [#tpu.dimension_semantics<parallel>], iteration_bounds = array<i64: 3>, scalar_prefetch = 0 : i64, scratch_operands = 0 : i64, tpu.core_type = #tpu.core_type<tc>, window_params = [{transform_indices = @transform_0, window_bounds = array<i64: 1, 8, 2, 128>}, {transform_indices = @transform_1, window_bounds = array<i64: 1, 32, 128>}, {transform_indices = @transform_2, window_bounds = array<i64: 1, 8, 2, 32>}]} {
    %c0 = arith.constant 0 : index
    %c0_0 = arith.constant 0 : index
    %c0_1 = arith.constant 0 : index
    %0 = vector.load %arg2[%c0, %c0_0, %c0_1] : memref<1x32x128xf32, #tpu.memory_space<vmem>>, vector<1x32x128xf32>
    %1 = vector.shape_cast %0 : vector<1x32x128xf32> to vector<32x128xf32>
    %cst = arith.constant 0.000000e+00 : f32
    %2 = vector.broadcast %cst : f32 to vector<2x32xf32>
    %cst_2 = arith.constant 0.000000e+00 : f32
    %3 = vector.broadcast %cst_2 : f32 to vector<2x32xf32>
    %c0_3 = arith.constant 0 : index
    %c0_4 = arith.constant 0 : index
    %c0_5 = arith.constant 0 : index
    %c0_6 = arith.constant 0 : index
    %4 = vector.load %arg1[%c0_3, %c0_4, %c0_5, %c0_6] : memref<1x8x2x128xf32, #tpu.memory_space<vmem>>, vector<1x1x2x128xf32>
    %5 = vector.shape_cast %4 : vector<1x1x2x128xf32> to vector<2x128xf32>
    %cst_7 = arith.constant dense<0.000000e+00> : vector<2x128xf32>
    %6 = tpu.matmul %2, %1, %cst_7 {dimension_numbers = #tpu.dot_dimension_numbers<[1], [0], [0], [1], [0, 0, 1, 1], [], []>} : vector<2x32xf32>, vector<32x128xf32>, vector<2x128xf32> -> vector<2x128xf32>
    %7 = arith.addf %5, %6 : vector<2x128xf32>
    %8 = arith.negf %7 : vector<2x128xf32>
    %9 = math.exp %8 : vector<2x128xf32>
    %cst_8 = arith.constant 1.000000e+00 : f32
    %10 = vector.broadcast %cst_8 : f32 to vector<2x128xf32>
    %11 = arith.addf %10, %9 : vector<2x128xf32>
    %12 = arith.divf %10, %11 : vector<2x128xf32>
    %13 = vector.extract_strided_slice %12 {offsets = [0, 0], sizes = [2, 32], strides = [1, 1]} : vector<2x128xf32> to vector<2x32xf32>
    %14 = vector.extract_strided_slice %12 {offsets = [0, 32], sizes = [2, 32], strides = [1, 1]} : vector<2x128xf32> to vector<2x32xf32>
    %15 = vector.extract_strided_slice %12 {offsets = [0, 96], sizes = [2, 32], strides = [1, 1]} : vector<2x128xf32> to vector<2x32xf32>
    %16 = vector.extract_strided_slice %7 {offsets = [0, 64], sizes = [2, 32], strides = [1, 1]} : vector<2x128xf32> to vector<2x32xf32>
    %17 = math.tanh %16 : vector<2x32xf32>
    %18 = arith.mulf %14, %3 : vector<2x32xf32>
    %19 = arith.mulf %13, %17 : vector<2x32xf32>
    %20 = arith.addf %18, %19 : vector<2x32xf32>
    %21 = math.tanh %20 : vector<2x32xf32>
    %22 = arith.mulf %15, %21 : vector<2x32xf32>
    %c0_9 = arith.constant 0 : index
    %c0_10 = arith.constant 0 : index
    %c0_11 = arith.constant 0 : index
    %c0_12 = arith.constant 0 : index
    %23 = vector.load %arg3[%c0_9, %c0_10, %c0_11, %c0_12] : memref<1x8x2x32xf32, #tpu.memory_space<vmem>>, vector<1x1x2x32xf32>
    %24 = vector.shape_cast %23 : vector<1x1x2x32xf32> to vector<2x32xf32>
    %25 = vector.shape_cast %22 : vector<2x32xf32> to vector<1x1x2x32xf32>
    tpu.vector_store %arg3[%c0_9, %c0_10, %c0_11, %c0_12], %25 {strides = array<i32>} : memref<1x8x2x32xf32, #tpu.memory_space<vmem>>, vector<1x1x2x32xf32>,
    %c0_13 = arith.constant 0 : index
    %c1 = arith.constant 1 : index
    %c0_14 = arith.constant 0 : index
    %c0_15 = arith.constant 0 : index
    %26 = vector.load %arg1[%c0_13, %c1, %c0_14, %c0_15] : memref<1x8x2x128xf32, #tpu.memory_space<vmem>>, vector<1x1x2x128xf32>
    %27 = vector.shape_cast %26 : vector<1x1x2x128xf32> to vector<2x128xf32>
    %cst_16 = arith.constant dense<0.000000e+00> : vector<2x128xf32>
    %28 = tpu.matmul %22, %1, %cst_16 {dimension_numbers = #tpu.dot_dimension_numbers<[1], [0], [0], [1], [0, 0, 1, 1], [], []>} : vector<2x32xf32>, vector<32x128xf32>, vector<2x128xf32> -> vector<2x128xf32>
    %29 = arith.addf %27, %28 : vector<2x128xf32>
    %30 = arith.negf %29 : vector<2x128xf32>
    %31 = math.exp %30 : vector<2x128xf32>
    %cst_17 = arith.constant 1.000000e+00 : f32
    %32 = vector.broadcast %cst_17 : f32 to vector<2x128xf32>
    %33 = arith.addf %32, %31 : vector<2x128xf32>
    %34 = arith.divf %32, %33 : vector<2x128xf32>
    %35 = vector.extract_strided_slice %34 {offsets = [0, 0], sizes = [2, 32], strides = [1, 1]} : vector<2x128xf32> to vector<2x32xf32>
    %36 = vector.extract_strided_slice %34 {offsets = [0, 32], sizes = [2, 32], strides = [1, 1]} : vector<2x128xf32> to vector<2x32xf32>
    %37 = vector.extract_strided_slice %34 {offsets = [0, 96], sizes = [2, 32], strides = [1, 1]} : vector<2x128xf32> to vector<2x32xf32>
    %38 = vector.extract_strided_slice %29 {offsets = [0, 64], sizes = [2, 32], strides = [1, 1]} : vector<2x128xf32> to vector<2x32xf32>
    %39 = math.tanh %38 : vector<2x32xf32>
    %40 = arith.mulf %36, %20 : vector<2x32xf32>
    %41 = arith.mulf %35, %39 : vector<2x32xf32>
    %42 = arith.addf %40, %41 : vector<2x32xf32>
    %43 = math.tanh %42 : vector<2x32xf32>
    %44 = arith.mulf %37, %43 : vector<2x32xf32>
    %c0_18 = arith.constant 0 : index
    %c1_19 = arith.constant 1 : index
    %c0_20 = arith.constant 0 : index
    %c0_21 = arith.constant 0 : index
    %45 = vector.load %arg3[%c0_18, %c1_19, %c0_20, %c0_21] : memref<1x8x2x32xf32, #tpu.memory_space<vmem>>, vector<1x1x2x32xf32>
    %46 = vector.shape_cast %45 : vector<1x1x2x32xf32> to vector<2x32xf32>
    %47 = vector.shape_cast %44 : vector<2x32xf32> to vector<1x1x2x32xf32>
    tpu.vector_store %arg3[%c0_18, %c1_19, %c0_20, %c0_21], %47 {strides = array<i32>} : memref<1x8x2x32xf32, #tpu.memory_space<vmem>>, vector<1x1x2x32xf32>,
    %c0_22 = arith.constant 0 : index
    %c2 = arith.constant 2 : index
    %c0_23 = arith.constant 0 : index
    %c0_24 = arith.constant 0 : index
    %48 = vector.load %arg1[%c0_22, %c2, %c0_23, %c0_24] : memref<1x8x2x128xf32, #tpu.memory_space<vmem>>, vector<1x1x2x128xf32>
    %49 = vector.shape_cast %48 : vector<1x1x2x128xf32> to vector<2x128xf32>
    %cst_25 = arith.constant dense<0.000000e+00> : vector<2x128xf32>
    %50 = tpu.matmul %44, %1, %cst_25 {dimension_numbers = #tpu.dot_dimension_numbers<[1], [0], [0], [1], [0, 0, 1, 1], [], []>} : vector<2x32xf32>, vector<32x128xf32>, vector<2x128xf32> -> vector<2x128xf32>
    %51 = arith.addf %49, %50 : vector<2x128xf32>
    %52 = arith.negf %51 : vector<2x128xf32>
    %53 = math.exp %52 : vector<2x128xf32>
    %cst_26 = arith.constant 1.000000e+00 : f32
    %54 = vector.broadcast %cst_26 : f32 to vector<2x128xf32>
    %55 = arith.addf %54, %53 : vector<2x128xf32>
    %56 = arith.divf %54, %55 : vector<2x128xf32>
    %57 = vector.extract_strided_slice %56 {offsets = [0, 0], sizes = [2, 32], strides = [1, 1]} : vector<2x128xf32> to vector<2x32xf32>
    %58 = vector.extract_strided_slice %56 {offsets = [0, 32], sizes = [2, 32], strides = [1, 1]} : vector<2x128xf32> to vector<2x32xf32>
    %59 = vector.extract_strided_slice %56 {offsets = [0, 96], sizes = [2, 32], strides = [1, 1]} : vector<2x128xf32> to vector<2x32xf32>
    %60 = vector.extract_strided_slice %51 {offsets = [0, 64], sizes = [2, 32], strides = [1, 1]} : vector<2x128xf32> to vector<2x32xf32>
    %61 = math.tanh %60 : vector<2x32xf32>
    %62 = arith.mulf %58, %42 : vector<2x32xf32>
    %63 = arith.mulf %57, %61 : vector<2x32xf32>
    %64 = arith.addf %62, %63 : vector<2x32xf32>
    %65 = math.tanh %64 : vector<2x32xf32>
    %66 = arith.mulf %59, %65 : vector<2x32xf32>
    %c0_27 = arith.constant 0 : index
    %c2_28 = arith.constant 2 : index
    %c0_29 = arith.constant 0 : index
    %c0_30 = arith.constant 0 : index
    %67 = vector.load %arg3[%c0_27, %c2_28, %c0_29, %c0_30] : memref<1x8x2x32xf32, #tpu.memory_space<vmem>>, vector<1x1x2x32xf32>
    %68 = vector.shape_cast %67 : vector<1x1x2x32xf32> to vector<2x32xf32>
    %69 = vector.shape_cast %66 : vector<2x32xf32> to vector<1x1x2x32xf32>
    tpu.vector_store %arg3[%c0_27, %c2_28, %c0_29, %c0_30], %69 {strides = array<i32>} : memref<1x8x2x32xf32, #tpu.memory_space<vmem>>, vector<1x1x2x32xf32>,
    %c0_31 = arith.constant 0 : index
    %c3 = arith.constant 3 : index
    %c0_32 = arith.constant 0 : index
    %c0_33 = arith.constant 0 : index
    %70 = vector.load %arg1[%c0_31, %c3, %c0_32, %c0_33] : memref<1x8x2x128xf32, #tpu.memory_space<vmem>>, vector<1x1x2x128xf32>
    %71 = vector.shape_cast %70 : vector<1x1x2x128xf32> to vector<2x128xf32>
    %cst_34 = arith.constant dense<0.000000e+00> : vector<2x128xf32>
    %72 = tpu.matmul %66, %1, %cst_34 {dimension_numbers = #tpu.dot_dimension_numbers<[1], [0], [0], [1], [0, 0, 1, 1], [], []>} : vector<2x32xf32>, vector<32x128xf32>, vector<2x128xf32> -> vector<2x128xf32>
    %73 = arith.addf %71, %72 : vector<2x128xf32>
    %74 = arith.negf %73 : vector<2x128xf32>
    %75 = math.exp %74 : vector<2x128xf32>
    %cst_35 = arith.constant 1.000000e+00 : f32
    %76 = vector.broadcast %cst_35 : f32 to vector<2x128xf32>
    %77 = arith.addf %76, %75 : vector<2x128xf32>
    %78 = arith.divf %76, %77 : vector<2x128xf32>
    %79 = vector.extract_strided_slice %78 {offsets = [0, 0], sizes = [2, 32], strides = [1, 1]} : vector<2x128xf32> to vector<2x32xf32>
    %80 = vector.extract_strided_slice %78 {offsets = [0, 32], sizes = [2, 32], strides = [1, 1]} : vector<2x128xf32> to vector<2x32xf32>
    %81 = vector.extract_strided_slice %78 {offsets = [0, 96], sizes = [2, 32], strides = [1, 1]} : vector<2x128xf32> to vector<2x32xf32>
    %82 = vector.extract_strided_slice %73 {offsets = [0, 64], sizes = [2, 32], strides = [1, 1]} : vector<2x128xf32> to vector<2x32xf32>
    %83 = math.tanh %82 : vector<2x32xf32>
    %84 = arith.mulf %80, %64 : vector<2x32xf32>
    %85 = arith.mulf %79, %83 : vector<2x32xf32>
    %86 = arith.addf %84, %85 : vector<2x32xf32>
    %87 = math.tanh %86 : vector<2x32xf32>
    %88 = arith.mulf %81, %87 : vector<2x32xf32>
    %c0_36 = arith.constant 0 : index
    %c3_37 = arith.constant 3 : index
    %c0_38 = arith.constant 0 : index
    %c0_39 = arith.constant 0 : index
    %89 = vector.load %arg3[%c0_36, %c3_37, %c0_38, %c0_39] : memref<1x8x2x32xf32, #tpu.memory_space<vmem>>, vector<1x1x2x32xf32>
    %90 = vector.shape_cast %89 : vector<1x1x2x32xf32> to vector<2x32xf32>
    %91 = vector.shape_cast %88 : vector<2x32xf32> to vector<1x1x2x32xf32>
    tpu.vector_store %arg3[%c0_36, %c3_37, %c0_38, %c0_39], %91 {strides = array<i32>} : memref<1x8x2x32xf32, #tpu.memory_space<vmem>>, vector<1x1x2x32xf32>,
    %c0_40 = arith.constant 0 : index
    %c4 = arith.constant 4 : index
    %c0_41 = arith.constant 0 : index
    %c0_42 = arith.constant 0 : index
    %92 = vector.load %arg1[%c0_40, %c4, %c0_41, %c0_42] : memref<1x8x2x128xf32, #tpu.memory_space<vmem>>, vector<1x1x2x128xf32>
    %93 = vector.shape_cast %92 : vector<1x1x2x128xf32> to vector<2x128xf32>
    %cst_43 = arith.constant dense<0.000000e+00> : vector<2x128xf32>
    %94 = tpu.matmul %88, %1, %cst_43 {dimension_numbers = #tpu.dot_dimension_numbers<[1], [0], [0], [1], [0, 0, 1, 1], [], []>} : vector<2x32xf32>, vector<32x128xf32>, vector<2x128xf32> -> vector<2x128xf32>
    %95 = arith.addf %93, %94 : vector<2x128xf32>
    %96 = arith.negf %95 : vector<2x128xf32>
    %97 = math.exp %96 : vector<2x128xf32>
    %cst_44 = arith.constant 1.000000e+00 : f32
    %98 = vector.broadcast %cst_44 : f32 to vector<2x128xf32>
    %99 = arith.addf %98, %97 : vector<2x128xf32>
    %100 = arith.divf %98, %99 : vector<2x128xf32>
    %101 = vector.extract_strided_slice %100 {offsets = [0, 0], sizes = [2, 32], strides = [1, 1]} : vector<2x128xf32> to vector<2x32xf32>
    %102 = vector.extract_strided_slice %100 {offsets = [0, 32], sizes = [2, 32], strides = [1, 1]} : vector<2x128xf32> to vector<2x32xf32>
    %103 = vector.extract_strided_slice %100 {offsets = [0, 96], sizes = [2, 32], strides = [1, 1]} : vector<2x128xf32> to vector<2x32xf32>
    %104 = vector.extract_strided_slice %95 {offsets = [0, 64], sizes = [2, 32], strides = [1, 1]} : vector<2x128xf32> to vector<2x32xf32>
    %105 = math.tanh %104 : vector<2x32xf32>
    %106 = arith.mulf %102, %86 : vector<2x32xf32>
    %107 = arith.mulf %101, %105 : vector<2x32xf32>
    %108 = arith.addf %106, %107 : vector<2x32xf32>
    %109 = math.tanh %108 : vector<2x32xf32>
    %110 = arith.mulf %103, %109 : vector<2x32xf32>
    %c0_45 = arith.constant 0 : index
    %c4_46 = arith.constant 4 : index
    %c0_47 = arith.constant 0 : index
    %c0_48 = arith.constant 0 : index
    %111 = vector.load %arg3[%c0_45, %c4_46, %c0_47, %c0_48] : memref<1x8x2x32xf32, #tpu.memory_space<vmem>>, vector<1x1x2x32xf32>
    %112 = vector.shape_cast %111 : vector<1x1x2x32xf32> to vector<2x32xf32>
    %113 = vector.shape_cast %110 : vector<2x32xf32> to vector<1x1x2x32xf32>
    tpu.vector_store %arg3[%c0_45, %c4_46, %c0_47, %c0_48], %113 {strides = array<i32>} : memref<1x8x2x32xf32, #tpu.memory_space<vmem>>, vector<1x1x2x32xf32>,
    %c0_49 = arith.constant 0 : index
    %c5 = arith.constant 5 : index
    %c0_50 = arith.constant 0 : index
    %c0_51 = arith.constant 0 : index
    %114 = vector.load %arg1[%c0_49, %c5, %c0_50, %c0_51] : memref<1x8x2x128xf32, #tpu.memory_space<vmem>>, vector<1x1x2x128xf32>
    %115 = vector.shape_cast %114 : vector<1x1x2x128xf32> to vector<2x128xf32>
    %cst_52 = arith.constant dense<0.000000e+00> : vector<2x128xf32>
    %116 = tpu.matmul %110, %1, %cst_52 {dimension_numbers = #tpu.dot_dimension_numbers<[1], [0], [0], [1], [0, 0, 1, 1], [], []>} : vector<2x32xf32>, vector<32x128xf32>, vector<2x128xf32> -> vector<2x128xf32>
    %117 = arith.addf %115, %116 : vector<2x128xf32>
    %118 = arith.negf %117 : vector<2x128xf32>
    %119 = math.exp %118 : vector<2x128xf32>
    %cst_53 = arith.constant 1.000000e+00 : f32
    %120 = vector.broadcast %cst_53 : f32 to vector<2x128xf32>
    %121 = arith.addf %120, %119 : vector<2x128xf32>
    %122 = arith.divf %120, %121 : vector<2x128xf32>
    %123 = vector.extract_strided_slice %122 {offsets = [0, 0], sizes = [2, 32], strides = [1, 1]} : vector<2x128xf32> to vector<2x32xf32>
    %124 = vector.extract_strided_slice %122 {offsets = [0, 32], sizes = [2, 32], strides = [1, 1]} : vector<2x128xf32> to vector<2x32xf32>
    %125 = vector.extract_strided_slice %122 {offsets = [0, 96], sizes = [2, 32], strides = [1, 1]} : vector<2x128xf32> to vector<2x32xf32>
    %126 = vector.extract_strided_slice %117 {offsets = [0, 64], sizes = [2, 32], strides = [1, 1]} : vector<2x128xf32> to vector<2x32xf32>
    %127 = math.tanh %126 : vector<2x32xf32>
    %128 = arith.mulf %124, %108 : vector<2x32xf32>
    %129 = arith.mulf %123, %127 : vector<2x32xf32>
    %130 = arith.addf %128, %129 : vector<2x32xf32>
    %131 = math.tanh %130 : vector<2x32xf32>
    %132 = arith.mulf %125, %131 : vector<2x32xf32>
    %c0_54 = arith.constant 0 : index
    %c5_55 = arith.constant 5 : index
    %c0_56 = arith.constant 0 : index
    %c0_57 = arith.constant 0 : index
    %133 = vector.load %arg3[%c0_54, %c5_55, %c0_56, %c0_57] : memref<1x8x2x32xf32, #tpu.memory_space<vmem>>, vector<1x1x2x32xf32>
    %134 = vector.shape_cast %133 : vector<1x1x2x32xf32> to vector<2x32xf32>
    %135 = vector.shape_cast %132 : vector<2x32xf32> to vector<1x1x2x32xf32>
    tpu.vector_store %arg3[%c0_54, %c5_55, %c0_56, %c0_57], %135 {strides = array<i32>} : memref<1x8x2x32xf32, #tpu.memory_space<vmem>>, vector<1x1x2x32xf32>,
    %c0_58 = arith.constant 0 : index
    %c6 = arith.constant 6 : index
    %c0_59 = arith.constant 0 : index
    %c0_60 = arith.constant 0 : index
    %136 = vector.load %arg1[%c0_58, %c6, %c0_59, %c0_60] : memref<1x8x2x128xf32, #tpu.memory_space<vmem>>, vector<1x1x2x128xf32>
    %137 = vector.shape_cast %136 : vector<1x1x2x128xf32> to vector<2x128xf32>
    %cst_61 = arith.constant dense<0.000000e+00> : vector<2x128xf32>
    %138 = tpu.matmul %132, %1, %cst_61 {dimension_numbers = #tpu.dot_dimension_numbers<[1], [0], [0], [1], [0, 0, 1, 1], [], []>} : vector<2x32xf32>, vector<32x128xf32>, vector<2x128xf32> -> vector<2x128xf32>
    %139 = arith.addf %137, %138 : vector<2x128xf32>
    %140 = arith.negf %139 : vector<2x128xf32>
    %141 = math.exp %140 : vector<2x128xf32>
    %cst_62 = arith.constant 1.000000e+00 : f32
    %142 = vector.broadcast %cst_62 : f32 to vector<2x128xf32>
    %143 = arith.addf %142, %141 : vector<2x128xf32>
    %144 = arith.divf %142, %143 : vector<2x128xf32>
    %145 = vector.extract_strided_slice %144 {offsets = [0, 0], sizes = [2, 32], strides = [1, 1]} : vector<2x128xf32> to vector<2x32xf32>
    %146 = vector.extract_strided_slice %144 {offsets = [0, 32], sizes = [2, 32], strides = [1, 1]} : vector<2x128xf32> to vector<2x32xf32>
    %147 = vector.extract_strided_slice %144 {offsets = [0, 96], sizes = [2, 32], strides = [1, 1]} : vector<2x128xf32> to vector<2x32xf32>
    %148 = vector.extract_strided_slice %139 {offsets = [0, 64], sizes = [2, 32], strides = [1, 1]} : vector<2x128xf32> to vector<2x32xf32>
    %149 = math.tanh %148 : vector<2x32xf32>
    %150 = arith.mulf %146, %130 : vector<2x32xf32>
    %151 = arith.mulf %145, %149 : vector<2x32xf32>
    %152 = arith.addf %150, %151 : vector<2x32xf32>
    %153 = math.tanh %152 : vector<2x32xf32>
    %154 = arith.mulf %147, %153 : vector<2x32xf32>
    %c0_63 = arith.constant 0 : index
    %c6_64 = arith.constant 6 : index
    %c0_65 = arith.constant 0 : index
    %c0_66 = arith.constant 0 : index
    %155 = vector.load %arg3[%c0_63, %c6_64, %c0_65, %c0_66] : memref<1x8x2x32xf32, #tpu.memory_space<vmem>>, vector<1x1x2x32xf32>
    %156 = vector.shape_cast %155 : vector<1x1x2x32xf32> to vector<2x32xf32>
    %157 = vector.shape_cast %154 : vector<2x32xf32> to vector<1x1x2x32xf32>
    tpu.vector_store %arg3[%c0_63, %c6_64, %c0_65, %c0_66], %157 {strides = array<i32>} : memref<1x8x2x32xf32, #tpu.memory_space<vmem>>, vector<1x1x2x32xf32>,
    %c0_67 = arith.constant 0 : index
    %c7 = arith.constant 7 : index
    %c0_68 = arith.constant 0 : index
    %c0_69 = arith.constant 0 : index
    %158 = vector.load %arg1[%c0_67, %c7, %c0_68, %c0_69] : memref<1x8x2x128xf32, #tpu.memory_space<vmem>>, vector<1x1x2x128xf32>
    %159 = vector.shape_cast %158 : vector<1x1x2x128xf32> to vector<2x128xf32>
    %cst_70 = arith.constant dense<0.000000e+00> : vector<2x128xf32>
    %160 = tpu.matmul %154, %1, %cst_70 {dimension_numbers = #tpu.dot_dimension_numbers<[1], [0], [0], [1], [0, 0, 1, 1], [], []>} : vector<2x32xf32>, vector<32x128xf32>, vector<2x128xf32> -> vector<2x128xf32>
    %161 = arith.addf %159, %160 : vector<2x128xf32>
    %162 = arith.negf %161 : vector<2x128xf32>
    %163 = math.exp %162 : vector<2x128xf32>
    %cst_71 = arith.constant 1.000000e+00 : f32
    %164 = vector.broadcast %cst_71 : f32 to vector<2x128xf32>
    %165 = arith.addf %164, %163 : vector<2x128xf32>
    %166 = arith.divf %164, %165 : vector<2x128xf32>
    %167 = vector.extract_strided_slice %166 {offsets = [0, 0], sizes = [2, 32], strides = [1, 1]} : vector<2x128xf32> to vector<2x32xf32>
    %168 = vector.extract_strided_slice %166 {offsets = [0, 32], sizes = [2, 32], strides = [1, 1]} : vector<2x128xf32> to vector<2x32xf32>
    %169 = vector.extract_strided_slice %166 {offsets = [0, 96], sizes = [2, 32], strides = [1, 1]} : vector<2x128xf32> to vector<2x32xf32>
    %170 = vector.extract_strided_slice %161 {offsets = [0, 64], sizes = [2, 32], strides = [1, 1]} : vector<2x128xf32> to vector<2x32xf32>
    %171 = math.tanh %170 : vector<2x32xf32>
    %172 = arith.mulf %168, %152 : vector<2x32xf32>
    %173 = arith.mulf %167, %171 : vector<2x32xf32>
    %174 = arith.addf %172, %173 : vector<2x32xf32>
    %175 = math.tanh %174 : vector<2x32xf32>
    %176 = arith.mulf %169, %175 : vector<2x32xf32>
    %c0_72 = arith.constant 0 : index
    %c7_73 = arith.constant 7 : index
    %c0_74 = arith.constant 0 : index
    %c0_75 = arith.constant 0 : index
    %177 = vector.load %arg3[%c0_72, %c7_73, %c0_74, %c0_75] : memref<1x8x2x32xf32, #tpu.memory_space<vmem>>, vector<1x1x2x32xf32>
    %178 = vector.shape_cast %177 : vector<1x1x2x32xf32> to vector<2x32xf32>
    %179 = vector.shape_cast %176 : vector<2x32xf32> to vector<1x1x2x32xf32>
    tpu.vector_store %arg3[%c0_72, %c7_73, %c0_74, %c0_75], %179 {strides = array<i32>} : memref<1x8x2x32xf32, #tpu.memory_space<vmem>>, vector<1x1x2x32xf32>,
    return
  }
  func.func @transform_0(%arg0: i32) -> (i32, i32, i32, i32) {
    %c0_i32 = arith.constant 0 : i32
    %c0_i32_0 = arith.constant 0 : i32
    %c0_i32_1 = arith.constant 0 : i32
    %c0_i32_2 = arith.constant 0 : i32
    return %arg0, %c0_i32, %c0_i32_0, %c0_i32_1 : i32, i32, i32, i32
  }
  func.func @transform_1(%arg0: i32) -> (i32, i32, i32) {
    %c0_i32 = arith.constant 0 : i32
    %c0_i32_0 = arith.constant 0 : i32
    %c0_i32_1 = arith.constant 0 : i32
    return %arg0, %c0_i32, %c0_i32_0 : i32, i32, i32
  }
  func.func @transform_2(%arg0: i32) -> (i32, i32, i32, i32) {
    %c0_i32 = arith.constant 0 : i32
    %c0_i32_0 = arith.constant 0 : i32
    %c0_i32_1 = arith.constant 0 : i32
    %c0_i32_2 = arith.constant 0 : i32
    return %arg0, %c0_i32, %c0_i32_0, %c0_i32_1 : i32, i32, i32, i32
  }
}

module attributes {stable_mosaic.version = 11 : i64} {
  func.func @attn_dense_kernel(%arg0: memref<3xi32, #tpu.memory_space<smem>>, %arg1: memref<3x2x8x32xf32, #tpu.memory_space<vmem>>, %arg2: memref<2x32xf32, #tpu.memory_space<vmem>>, %arg3: memref<4x32x32xf32, #tpu.memory_space<vmem>>, %arg4: memref<4x1x32xf32, #tpu.memory_space<vmem>>, %arg5: memref<4x32x32xf32, #tpu.memory_space<vmem>>, %arg6: memref<4x1x32xf32, #tpu.memory_space<vmem>>, %arg7: memref<4x32x32xf32, #tpu.memory_space<vmem>>, %arg8: memref<4x32x32xf32, #tpu.memory_space<vmem>>, %arg9: memref<4x1x32xf32, #tpu.memory_space<vmem>>, %arg10: memref<128x3xf32, #tpu.memory_space<vmem>>, %arg11: memref<1x3xf32, #tpu.memory_space<vmem>>, %arg12: memref<2x3xf32, #tpu.memory_space<vmem>>) attributes {dimension_semantics = [], scalar_prefetch = 0 : i64, scratch_operands = 0 : i64, tpu.core_type = #tpu.core_type<tc>} {
    %c0 = arith.constant 0 : index
    %c0_0 = arith.constant 0 : index
    %c0_1 = arith.constant 0 : index
    %c0_2 = arith.constant 0 : index
    %0 = vector.load %arg1[%c0, %c0_0, %c0_1, %c0_2] : memref<3x2x8x32xf32, #tpu.memory_space<vmem>>, vector<3x2x8x32xf32>
    %c0_3 = arith.constant 0 : index
    %c0_4 = arith.constant 0 : index
    %1 = vector.load %arg2[%c0_3, %c0_4] : memref<2x32xf32, #tpu.memory_space<vmem>>, vector<2x32xf32>
    %c0_5 = arith.constant 0 : index
    %c0_6 = arith.constant 0 : index
    %2 = vector.load %arg10[%c0_5, %c0_6] : memref<128x3xf32, #tpu.memory_space<vmem>>, vector<128x3xf32>
    %c0_7 = arith.constant 0 : index
    %c0_8 = arith.constant 0 : index
    %3 = vector.load %arg11[%c0_7, %c0_8] : memref<1x3xf32, #tpu.memory_space<vmem>>, vector<1x3xf32>
    %c0_9 = arith.constant 0 : index
    %4 = memref.load %arg0[%c0_9] : memref<3xi32, #tpu.memory_space<smem>>
    %c1 = arith.constant 1 : index
    %5 = memref.load %arg0[%c1] : memref<3xi32, #tpu.memory_space<smem>>
    %c2 = arith.constant 2 : index
    %6 = memref.load %arg0[%c2] : memref<3xi32, #tpu.memory_space<smem>>
    %7 = vector.extract_strided_slice %1 {offsets = [0, 0], sizes = [1, 32], strides = [1, 1]} : vector<2x32xf32> to vector<1x32xf32>
    %8 = vector.extract_strided_slice %0 {offsets = [0, 0, 0, 0], sizes = [1, 1, 8, 32], strides = [1, 1, 1, 1]} : vector<3x2x8x32xf32> to vector<1x1x8x32xf32>
    %9 = vector.shape_cast %8 : vector<1x1x8x32xf32> to vector<8x32xf32>
    %c0_10 = arith.constant 0 : index
    %c0_11 = arith.constant 0 : index
    %c0_12 = arith.constant 0 : index
    %10 = vector.load %arg3[%c0_10, %c0_11, %c0_12] : memref<4x32x32xf32, #tpu.memory_space<vmem>>, vector<1x32x32xf32>
    %11 = vector.shape_cast %10 : vector<1x32x32xf32> to vector<32x32xf32>
    %cst = arith.constant dense<0.000000e+00> : vector<8x32xf32>
    %12 = tpu.matmul %9, %11, %cst {dimension_numbers = #tpu.dot_dimension_numbers<[1], [0], [0], [1], [0, 0, 1, 1], [], []>} : vector<8x32xf32>, vector<32x32xf32>, vector<8x32xf32> -> vector<8x32xf32>
    %c0_13 = arith.constant 0 : index
    %c0_14 = arith.constant 0 : index
    %c0_15 = arith.constant 0 : index
    %13 = vector.load %arg4[%c0_13, %c0_14, %c0_15] : memref<4x1x32xf32, #tpu.memory_space<vmem>>, vector<1x1x32xf32>
    %14 = vector.shape_cast %13 : vector<1x1x32xf32> to vector<1x32xf32>
    %15 = vector.broadcast %14 : vector<1x32xf32> to vector<8x32xf32>
    %16 = arith.addf %12, %15 : vector<8x32xf32>
    %c0_16 = arith.constant 0 : index
    %c0_17 = arith.constant 0 : index
    %c0_18 = arith.constant 0 : index
    %17 = vector.load %arg5[%c0_16, %c0_17, %c0_18] : memref<4x32x32xf32, #tpu.memory_space<vmem>>, vector<1x32x32xf32>
    %18 = vector.shape_cast %17 : vector<1x32x32xf32> to vector<32x32xf32>
    %cst_19 = arith.constant dense<0.000000e+00> : vector<1x32xf32>
    %19 = tpu.matmul %7, %18, %cst_19 {dimension_numbers = #tpu.dot_dimension_numbers<[1], [0], [0], [1], [0, 0, 1, 1], [], []>} : vector<1x32xf32>, vector<32x32xf32>, vector<1x32xf32> -> vector<1x32xf32>
    %c0_20 = arith.constant 0 : index
    %c0_21 = arith.constant 0 : index
    %c0_22 = arith.constant 0 : index
    %20 = vector.load %arg6[%c0_20, %c0_21, %c0_22] : memref<4x1x32xf32, #tpu.memory_space<vmem>>, vector<1x1x32xf32>
    %21 = vector.shape_cast %20 : vector<1x1x32xf32> to vector<1x32xf32>
    %22 = arith.addf %19, %21 : vector<1x32xf32>
    %c0_23 = arith.constant 0 : index
    %c0_24 = arith.constant 0 : index
    %c0_25 = arith.constant 0 : index
    %23 = vector.load %arg7[%c0_23, %c0_24, %c0_25] : memref<4x32x32xf32, #tpu.memory_space<vmem>>, vector<1x32x32xf32>
    %24 = vector.shape_cast %23 : vector<1x32x32xf32> to vector<32x32xf32>
    %cst_26 = arith.constant dense<0.000000e+00> : vector<1x32xf32>
    %25 = tpu.matmul %22, %24, %cst_26 {dimension_numbers = #tpu.dot_dimension_numbers<[1], [0], [0], [1], [0, 0, 1, 1], [], []>} : vector<1x32xf32>, vector<32x32xf32>, vector<1x32xf32> -> vector<1x32xf32>
    %cst_27 = arith.constant dense<0.000000e+00> : vector<1x8xf32>
    %26 = tpu.matmul %25, %16, %cst_27 {dimension_numbers = #tpu.dot_dimension_numbers<[1], [1], [0], [0], [0, 0, 1, 0], [], []>} : vector<1x32xf32>, vector<8x32xf32>, vector<1x8xf32> -> vector<1x8xf32>
    %27 = tpu.iota {dimensions = array<i32: 1>} : vector<1x8xi32>
    %28 = vector.broadcast %4 : i32 to vector<1x8xi32>
    %29 = arith.cmpi slt, %27, %28 : vector<1x8xi32>
    %cst_28 = arith.constant -1.000000e+30 : f32
    %30 = vector.broadcast %cst_28 : f32 to vector<1x8xf32>
    %31 = arith.select %29, %26, %30 : vector<1x8xi1>, vector<1x8xf32>
    %cst_29 = arith.constant dense<0xFF800000> : vector<1xf32>
    %32 = vector.multi_reduction <maximumf>, %31, %cst_29 [1] : vector<1x8xf32> to vector<1xf32>
    %33 = vector.shape_cast %32 : vector<1xf32> to vector<1x1xf32>
    %34 = vector.broadcast %33 : vector<1x1xf32> to vector<1x8xf32>
    %35 = arith.subf %31, %34 : vector<1x8xf32>
    %36 = math.exp %35 : vector<1x8xf32>
    %cst_30 = arith.constant dense<0.000000e+00> : vector<1xf32>
    %37 = vector.multi_reduction <add>, %36, %cst_30 [1] : vector<1x8xf32> to vector<1xf32>
    %38 = vector.shape_cast %37 : vector<1xf32> to vector<1x1xf32>
    %39 = vector.broadcast %38 : vector<1x1xf32> to vector<1x8xf32>
    %40 = arith.divf %36, %39 : vector<1x8xf32>
    %cst_31 = arith.constant dense<0.000000e+00> : vector<1x32xf32>
    %41 = tpu.matmul %40, %16, %cst_31 {dimension_numbers = #tpu.dot_dimension_numbers<[1], [0], [0], [1], [0, 0, 1, 1], [], []>} : vector<1x8xf32>, vector<8x32xf32>, vector<1x32xf32> -> vector<1x32xf32>
    %c0_32 = arith.constant 0 : index
    %c0_33 = arith.constant 0 : index
    %c0_34 = arith.constant 0 : index
    %42 = vector.load %arg8[%c0_32, %c0_33, %c0_34] : memref<4x32x32xf32, #tpu.memory_space<vmem>>, vector<1x32x32xf32>
    %43 = vector.shape_cast %42 : vector<1x32x32xf32> to vector<32x32xf32>
    %cst_35 = arith.constant dense<0.000000e+00> : vector<1x32xf32>
    %44 = tpu.matmul %41, %43, %cst_35 {dimension_numbers = #tpu.dot_dimension_numbers<[1], [0], [0], [1], [0, 0, 1, 1], [], []>} : vector<1x32xf32>, vector<32x32xf32>, vector<1x32xf32> -> vector<1x32xf32>
    %c0_36 = arith.constant 0 : index
    %c0_37 = arith.constant 0 : index
    %c0_38 = arith.constant 0 : index
    %45 = vector.load %arg9[%c0_36, %c0_37, %c0_38] : memref<4x1x32xf32, #tpu.memory_space<vmem>>, vector<1x1x32xf32>
    %46 = vector.shape_cast %45 : vector<1x1x32xf32> to vector<1x32xf32>
    %47 = arith.addf %44, %46 : vector<1x32xf32>
    %48 = vector.extract_strided_slice %0 {offsets = [2, 0, 0, 0], sizes = [1, 1, 8, 32], strides = [1, 1, 1, 1]} : vector<3x2x8x32xf32> to vector<1x1x8x32xf32>
    %49 = vector.shape_cast %48 : vector<1x1x8x32xf32> to vector<8x32xf32>
    %c1_39 = arith.constant 1 : index
    %c0_40 = arith.constant 0 : index
    %c0_41 = arith.constant 0 : index
    %50 = vector.load %arg3[%c1_39, %c0_40, %c0_41] : memref<4x32x32xf32, #tpu.memory_space<vmem>>, vector<1x32x32xf32>
    %51 = vector.shape_cast %50 : vector<1x32x32xf32> to vector<32x32xf32>
    %cst_42 = arith.constant dense<0.000000e+00> : vector<8x32xf32>
    %52 = tpu.matmul %49, %51, %cst_42 {dimension_numbers = #tpu.dot_dimension_numbers<[1], [0], [0], [1], [0, 0, 1, 1], [], []>} : vector<8x32xf32>, vector<32x32xf32>, vector<8x32xf32> -> vector<8x32xf32>
    %c1_43 = arith.constant 1 : index
    %c0_44 = arith.constant 0 : index
    %c0_45 = arith.constant 0 : index
    %53 = vector.load %arg4[%c1_43, %c0_44, %c0_45] : memref<4x1x32xf32, #tpu.memory_space<vmem>>, vector<1x1x32xf32>
    %54 = vector.shape_cast %53 : vector<1x1x32xf32> to vector<1x32xf32>
    %55 = vector.broadcast %54 : vector<1x32xf32> to vector<8x32xf32>
    %56 = arith.addf %52, %55 : vector<8x32xf32>
    %c1_46 = arith.constant 1 : index
    %c0_47 = arith.constant 0 : index
    %c0_48 = arith.constant 0 : index
    %57 = vector.load %arg5[%c1_46, %c0_47, %c0_48] : memref<4x32x32xf32, #tpu.memory_space<vmem>>, vector<1x32x32xf32>
    %58 = vector.shape_cast %57 : vector<1x32x32xf32> to vector<32x32xf32>
    %cst_49 = arith.constant dense<0.000000e+00> : vector<1x32xf32>
    %59 = tpu.matmul %7, %58, %cst_49 {dimension_numbers = #tpu.dot_dimension_numbers<[1], [0], [0], [1], [0, 0, 1, 1], [], []>} : vector<1x32xf32>, vector<32x32xf32>, vector<1x32xf32> -> vector<1x32xf32>
    %c1_50 = arith.constant 1 : index
    %c0_51 = arith.constant 0 : index
    %c0_52 = arith.constant 0 : index
    %60 = vector.load %arg6[%c1_50, %c0_51, %c0_52] : memref<4x1x32xf32, #tpu.memory_space<vmem>>, vector<1x1x32xf32>
    %61 = vector.shape_cast %60 : vector<1x1x32xf32> to vector<1x32xf32>
    %62 = arith.addf %59, %61 : vector<1x32xf32>
    %c1_53 = arith.constant 1 : index
    %c0_54 = arith.constant 0 : index
    %c0_55 = arith.constant 0 : index
    %63 = vector.load %arg7[%c1_53, %c0_54, %c0_55] : memref<4x32x32xf32, #tpu.memory_space<vmem>>, vector<1x32x32xf32>
    %64 = vector.shape_cast %63 : vector<1x32x32xf32> to vector<32x32xf32>
    %cst_56 = arith.constant dense<0.000000e+00> : vector<1x32xf32>
    %65 = tpu.matmul %62, %64, %cst_56 {dimension_numbers = #tpu.dot_dimension_numbers<[1], [0], [0], [1], [0, 0, 1, 1], [], []>} : vector<1x32xf32>, vector<32x32xf32>, vector<1x32xf32> -> vector<1x32xf32>
    %cst_57 = arith.constant dense<0.000000e+00> : vector<1x8xf32>
    %66 = tpu.matmul %65, %56, %cst_57 {dimension_numbers = #tpu.dot_dimension_numbers<[1], [1], [0], [0], [0, 0, 1, 0], [], []>} : vector<1x32xf32>, vector<8x32xf32>, vector<1x8xf32> -> vector<1x8xf32>
    %67 = tpu.iota {dimensions = array<i32: 1>} : vector<1x8xi32>
    %68 = vector.broadcast %6 : i32 to vector<1x8xi32>
    %69 = arith.cmpi slt, %67, %68 : vector<1x8xi32>
    %cst_58 = arith.constant -1.000000e+30 : f32
    %70 = vector.broadcast %cst_58 : f32 to vector<1x8xf32>
    %71 = arith.select %69, %66, %70 : vector<1x8xi1>, vector<1x8xf32>
    %cst_59 = arith.constant dense<0xFF800000> : vector<1xf32>
    %72 = vector.multi_reduction <maximumf>, %71, %cst_59 [1] : vector<1x8xf32> to vector<1xf32>
    %73 = vector.shape_cast %72 : vector<1xf32> to vector<1x1xf32>
    %74 = vector.broadcast %73 : vector<1x1xf32> to vector<1x8xf32>
    %75 = arith.subf %71, %74 : vector<1x8xf32>
    %76 = math.exp %75 : vector<1x8xf32>
    %cst_60 = arith.constant dense<0.000000e+00> : vector<1xf32>
    %77 = vector.multi_reduction <add>, %76, %cst_60 [1] : vector<1x8xf32> to vector<1xf32>
    %78 = vector.shape_cast %77 : vector<1xf32> to vector<1x1xf32>
    %79 = vector.broadcast %78 : vector<1x1xf32> to vector<1x8xf32>
    %80 = arith.divf %76, %79 : vector<1x8xf32>
    %cst_61 = arith.constant dense<0.000000e+00> : vector<1x32xf32>
    %81 = tpu.matmul %80, %56, %cst_61 {dimension_numbers = #tpu.dot_dimension_numbers<[1], [0], [0], [1], [0, 0, 1, 1], [], []>} : vector<1x8xf32>, vector<8x32xf32>, vector<1x32xf32> -> vector<1x32xf32>
    %c1_62 = arith.constant 1 : index
    %c0_63 = arith.constant 0 : index
    %c0_64 = arith.constant 0 : index
    %82 = vector.load %arg8[%c1_62, %c0_63, %c0_64] : memref<4x32x32xf32, #tpu.memory_space<vmem>>, vector<1x32x32xf32>
    %83 = vector.shape_cast %82 : vector<1x32x32xf32> to vector<32x32xf32>
    %cst_65 = arith.constant dense<0.000000e+00> : vector<1x32xf32>
    %84 = tpu.matmul %81, %83, %cst_65 {dimension_numbers = #tpu.dot_dimension_numbers<[1], [0], [0], [1], [0, 0, 1, 1], [], []>} : vector<1x32xf32>, vector<32x32xf32>, vector<1x32xf32> -> vector<1x32xf32>
    %c1_66 = arith.constant 1 : index
    %c0_67 = arith.constant 0 : index
    %c0_68 = arith.constant 0 : index
    %85 = vector.load %arg9[%c1_66, %c0_67, %c0_68] : memref<4x1x32xf32, #tpu.memory_space<vmem>>, vector<1x1x32xf32>
    %86 = vector.shape_cast %85 : vector<1x1x32xf32> to vector<1x32xf32>
    %87 = arith.addf %84, %86 : vector<1x32xf32>
    %88 = vector.extract_strided_slice %0 {offsets = [1, 0, 0, 0], sizes = [1, 1, 8, 32], strides = [1, 1, 1, 1]} : vector<3x2x8x32xf32> to vector<1x1x8x32xf32>
    %89 = vector.shape_cast %88 : vector<1x1x8x32xf32> to vector<8x32xf32>
    %c2_69 = arith.constant 2 : index
    %c0_70 = arith.constant 0 : index
    %c0_71 = arith.constant 0 : index
    %90 = vector.load %arg3[%c2_69, %c0_70, %c0_71] : memref<4x32x32xf32, #tpu.memory_space<vmem>>, vector<1x32x32xf32>
    %91 = vector.shape_cast %90 : vector<1x32x32xf32> to vector<32x32xf32>
    %cst_72 = arith.constant dense<0.000000e+00> : vector<8x32xf32>
    %92 = tpu.matmul %89, %91, %cst_72 {dimension_numbers = #tpu.dot_dimension_numbers<[1], [0], [0], [1], [0, 0, 1, 1], [], []>} : vector<8x32xf32>, vector<32x32xf32>, vector<8x32xf32> -> vector<8x32xf32>
    %c2_73 = arith.constant 2 : index
    %c0_74 = arith.constant 0 : index
    %c0_75 = arith.constant 0 : index
    %93 = vector.load %arg4[%c2_73, %c0_74, %c0_75] : memref<4x1x32xf32, #tpu.memory_space<vmem>>, vector<1x1x32xf32>
    %94 = vector.shape_cast %93 : vector<1x1x32xf32> to vector<1x32xf32>
    %95 = vector.broadcast %94 : vector<1x32xf32> to vector<8x32xf32>
    %96 = arith.addf %92, %95 : vector<8x32xf32>
    %c2_76 = arith.constant 2 : index
    %c0_77 = arith.constant 0 : index
    %c0_78 = arith.constant 0 : index
    %97 = vector.load %arg5[%c2_76, %c0_77, %c0_78] : memref<4x32x32xf32, #tpu.memory_space<vmem>>, vector<1x32x32xf32>
    %98 = vector.shape_cast %97 : vector<1x32x32xf32> to vector<32x32xf32>
    %cst_79 = arith.constant dense<0.000000e+00> : vector<1x32xf32>
    %99 = tpu.matmul %47, %98, %cst_79 {dimension_numbers = #tpu.dot_dimension_numbers<[1], [0], [0], [1], [0, 0, 1, 1], [], []>} : vector<1x32xf32>, vector<32x32xf32>, vector<1x32xf32> -> vector<1x32xf32>
    %c2_80 = arith.constant 2 : index
    %c0_81 = arith.constant 0 : index
    %c0_82 = arith.constant 0 : index
    %100 = vector.load %arg6[%c2_80, %c0_81, %c0_82] : memref<4x1x32xf32, #tpu.memory_space<vmem>>, vector<1x1x32xf32>
    %101 = vector.shape_cast %100 : vector<1x1x32xf32> to vector<1x32xf32>
    %102 = arith.addf %99, %101 : vector<1x32xf32>
    %c2_83 = arith.constant 2 : index
    %c0_84 = arith.constant 0 : index
    %c0_85 = arith.constant 0 : index
    %103 = vector.load %arg7[%c2_83, %c0_84, %c0_85] : memref<4x32x32xf32, #tpu.memory_space<vmem>>, vector<1x32x32xf32>
    %104 = vector.shape_cast %103 : vector<1x32x32xf32> to vector<32x32xf32>
    %cst_86 = arith.constant dense<0.000000e+00> : vector<1x32xf32>
    %105 = tpu.matmul %102, %104, %cst_86 {dimension_numbers = #tpu.dot_dimension_numbers<[1], [0], [0], [1], [0, 0, 1, 1], [], []>} : vector<1x32xf32>, vector<32x32xf32>, vector<1x32xf32> -> vector<1x32xf32>
    %cst_87 = arith.constant dense<0.000000e+00> : vector<1x8xf32>
    %106 = tpu.matmul %105, %96, %cst_87 {dimension_numbers = #tpu.dot_dimension_numbers<[1], [1], [0], [0], [0, 0, 1, 0], [], []>} : vector<1x32xf32>, vector<8x32xf32>, vector<1x8xf32> -> vector<1x8xf32>
    %107 = tpu.iota {dimensions = array<i32: 1>} : vector<1x8xi32>
    %108 = vector.broadcast %5 : i32 to vector<1x8xi32>
    %109 = arith.cmpi slt, %107, %108 : vector<1x8xi32>
    %cst_88 = arith.constant -1.000000e+30 : f32
    %110 = vector.broadcast %cst_88 : f32 to vector<1x8xf32>
    %111 = arith.select %109, %106, %110 : vector<1x8xi1>, vector<1x8xf32>
    %cst_89 = arith.constant dense<0xFF800000> : vector<1xf32>
    %112 = vector.multi_reduction <maximumf>, %111, %cst_89 [1] : vector<1x8xf32> to vector<1xf32>
    %113 = vector.shape_cast %112 : vector<1xf32> to vector<1x1xf32>
    %114 = vector.broadcast %113 : vector<1x1xf32> to vector<1x8xf32>
    %115 = arith.subf %111, %114 : vector<1x8xf32>
    %116 = math.exp %115 : vector<1x8xf32>
    %cst_90 = arith.constant dense<0.000000e+00> : vector<1xf32>
    %117 = vector.multi_reduction <add>, %116, %cst_90 [1] : vector<1x8xf32> to vector<1xf32>
    %118 = vector.shape_cast %117 : vector<1xf32> to vector<1x1xf32>
    %119 = vector.broadcast %118 : vector<1x1xf32> to vector<1x8xf32>
    %120 = arith.divf %116, %119 : vector<1x8xf32>
    %cst_91 = arith.constant dense<0.000000e+00> : vector<1x32xf32>
    %121 = tpu.matmul %120, %96, %cst_91 {dimension_numbers = #tpu.dot_dimension_numbers<[1], [0], [0], [1], [0, 0, 1, 1], [], []>} : vector<1x8xf32>, vector<8x32xf32>, vector<1x32xf32> -> vector<1x32xf32>
    %c2_92 = arith.constant 2 : index
    %c0_93 = arith.constant 0 : index
    %c0_94 = arith.constant 0 : index
    %122 = vector.load %arg8[%c2_92, %c0_93, %c0_94] : memref<4x32x32xf32, #tpu.memory_space<vmem>>, vector<1x32x32xf32>
    %123 = vector.shape_cast %122 : vector<1x32x32xf32> to vector<32x32xf32>
    %cst_95 = arith.constant dense<0.000000e+00> : vector<1x32xf32>
    %124 = tpu.matmul %121, %123, %cst_95 {dimension_numbers = #tpu.dot_dimension_numbers<[1], [0], [0], [1], [0, 0, 1, 1], [], []>} : vector<1x32xf32>, vector<32x32xf32>, vector<1x32xf32> -> vector<1x32xf32>
    %c2_96 = arith.constant 2 : index
    %c0_97 = arith.constant 0 : index
    %c0_98 = arith.constant 0 : index
    %125 = vector.load %arg9[%c2_96, %c0_97, %c0_98] : memref<4x1x32xf32, #tpu.memory_space<vmem>>, vector<1x1x32xf32>
    %126 = vector.shape_cast %125 : vector<1x1x32xf32> to vector<1x32xf32>
    %127 = arith.addf %124, %126 : vector<1x32xf32>
    %128 = vector.extract_strided_slice %0 {offsets = [1, 0, 0, 0], sizes = [1, 1, 8, 32], strides = [1, 1, 1, 1]} : vector<3x2x8x32xf32> to vector<1x1x8x32xf32>
    %129 = vector.shape_cast %128 : vector<1x1x8x32xf32> to vector<8x32xf32>
    %c3 = arith.constant 3 : index
    %c0_99 = arith.constant 0 : index
    %c0_100 = arith.constant 0 : index
    %130 = vector.load %arg3[%c3, %c0_99, %c0_100] : memref<4x32x32xf32, #tpu.memory_space<vmem>>, vector<1x32x32xf32>
    %131 = vector.shape_cast %130 : vector<1x32x32xf32> to vector<32x32xf32>
    %cst_101 = arith.constant dense<0.000000e+00> : vector<8x32xf32>
    %132 = tpu.matmul %129, %131, %cst_101 {dimension_numbers = #tpu.dot_dimension_numbers<[1], [0], [0], [1], [0, 0, 1, 1], [], []>} : vector<8x32xf32>, vector<32x32xf32>, vector<8x32xf32> -> vector<8x32xf32>
    %c3_102 = arith.constant 3 : index
    %c0_103 = arith.constant 0 : index
    %c0_104 = arith.constant 0 : index
    %133 = vector.load %arg4[%c3_102, %c0_103, %c0_104] : memref<4x1x32xf32, #tpu.memory_space<vmem>>, vector<1x1x32xf32>
    %134 = vector.shape_cast %133 : vector<1x1x32xf32> to vector<1x32xf32>
    %135 = vector.broadcast %134 : vector<1x32xf32> to vector<8x32xf32>
    %136 = arith.addf %132, %135 : vector<8x32xf32>
    %c3_105 = arith.constant 3 : index
    %c0_106 = arith.constant 0 : index
    %c0_107 = arith.constant 0 : index
    %137 = vector.load %arg5[%c3_105, %c0_106, %c0_107] : memref<4x32x32xf32, #tpu.memory_space<vmem>>, vector<1x32x32xf32>
    %138 = vector.shape_cast %137 : vector<1x32x32xf32> to vector<32x32xf32>
    %cst_108 = arith.constant dense<0.000000e+00> : vector<1x32xf32>
    %139 = tpu.matmul %87, %138, %cst_108 {dimension_numbers = #tpu.dot_dimension_numbers<[1], [0], [0], [1], [0, 0, 1, 1], [], []>} : vector<1x32xf32>, vector<32x32xf32>, vector<1x32xf32> -> vector<1x32xf32>
    %c3_109 = arith.constant 3 : index
    %c0_110 = arith.constant 0 : index
    %c0_111 = arith.constant 0 : index
    %140 = vector.load %arg6[%c3_109, %c0_110, %c0_111] : memref<4x1x32xf32, #tpu.memory_space<vmem>>, vector<1x1x32xf32>
    %141 = vector.shape_cast %140 : vector<1x1x32xf32> to vector<1x32xf32>
    %142 = arith.addf %139, %141 : vector<1x32xf32>
    %c3_112 = arith.constant 3 : index
    %c0_113 = arith.constant 0 : index
    %c0_114 = arith.constant 0 : index
    %143 = vector.load %arg7[%c3_112, %c0_113, %c0_114] : memref<4x32x32xf32, #tpu.memory_space<vmem>>, vector<1x32x32xf32>
    %144 = vector.shape_cast %143 : vector<1x32x32xf32> to vector<32x32xf32>
    %cst_115 = arith.constant dense<0.000000e+00> : vector<1x32xf32>
    %145 = tpu.matmul %142, %144, %cst_115 {dimension_numbers = #tpu.dot_dimension_numbers<[1], [0], [0], [1], [0, 0, 1, 1], [], []>} : vector<1x32xf32>, vector<32x32xf32>, vector<1x32xf32> -> vector<1x32xf32>
    %cst_116 = arith.constant dense<0.000000e+00> : vector<1x8xf32>
    %146 = tpu.matmul %145, %136, %cst_116 {dimension_numbers = #tpu.dot_dimension_numbers<[1], [1], [0], [0], [0, 0, 1, 0], [], []>} : vector<1x32xf32>, vector<8x32xf32>, vector<1x8xf32> -> vector<1x8xf32>
    %147 = tpu.iota {dimensions = array<i32: 1>} : vector<1x8xi32>
    %148 = vector.broadcast %5 : i32 to vector<1x8xi32>
    %149 = arith.cmpi slt, %147, %148 : vector<1x8xi32>
    %cst_117 = arith.constant -1.000000e+30 : f32
    %150 = vector.broadcast %cst_117 : f32 to vector<1x8xf32>
    %151 = arith.select %149, %146, %150 : vector<1x8xi1>, vector<1x8xf32>
    %cst_118 = arith.constant dense<0xFF800000> : vector<1xf32>
    %152 = vector.multi_reduction <maximumf>, %151, %cst_118 [1] : vector<1x8xf32> to vector<1xf32>
    %153 = vector.shape_cast %152 : vector<1xf32> to vector<1x1xf32>
    %154 = vector.broadcast %153 : vector<1x1xf32> to vector<1x8xf32>
    %155 = arith.subf %151, %154 : vector<1x8xf32>
    %156 = math.exp %155 : vector<1x8xf32>
    %cst_119 = arith.constant dense<0.000000e+00> : vector<1xf32>
    %157 = vector.multi_reduction <add>, %156, %cst_119 [1] : vector<1x8xf32> to vector<1xf32>
    %158 = vector.shape_cast %157 : vector<1xf32> to vector<1x1xf32>
    %159 = vector.broadcast %158 : vector<1x1xf32> to vector<1x8xf32>
    %160 = arith.divf %156, %159 : vector<1x8xf32>
    %cst_120 = arith.constant dense<0.000000e+00> : vector<1x32xf32>
    %161 = tpu.matmul %160, %136, %cst_120 {dimension_numbers = #tpu.dot_dimension_numbers<[1], [0], [0], [1], [0, 0, 1, 1], [], []>} : vector<1x8xf32>, vector<8x32xf32>, vector<1x32xf32> -> vector<1x32xf32>
    %c3_121 = arith.constant 3 : index
    %c0_122 = arith.constant 0 : index
    %c0_123 = arith.constant 0 : index
    %162 = vector.load %arg8[%c3_121, %c0_122, %c0_123] : memref<4x32x32xf32, #tpu.memory_space<vmem>>, vector<1x32x32xf32>
    %163 = vector.shape_cast %162 : vector<1x32x32xf32> to vector<32x32xf32>
    %cst_124 = arith.constant dense<0.000000e+00> : vector<1x32xf32>
    %164 = tpu.matmul %161, %163, %cst_124 {dimension_numbers = #tpu.dot_dimension_numbers<[1], [0], [0], [1], [0, 0, 1, 1], [], []>} : vector<1x32xf32>, vector<32x32xf32>, vector<1x32xf32> -> vector<1x32xf32>
    %c3_125 = arith.constant 3 : index
    %c0_126 = arith.constant 0 : index
    %c0_127 = arith.constant 0 : index
    %165 = vector.load %arg9[%c3_125, %c0_126, %c0_127] : memref<4x1x32xf32, #tpu.memory_space<vmem>>, vector<1x1x32xf32>
    %166 = vector.shape_cast %165 : vector<1x1x32xf32> to vector<1x32xf32>
    %167 = arith.addf %164, %166 : vector<1x32xf32>
    %168 = vector.extract_strided_slice %2 {offsets = [0, 0], sizes = [32, 3], strides = [1, 1]} : vector<128x3xf32> to vector<32x3xf32>
    %cst_128 = arith.constant dense<0.000000e+00> : vector<1x3xf32>
    %169 = tpu.matmul %47, %168, %cst_128 {dimension_numbers = #tpu.dot_dimension_numbers<[1], [0], [0], [1], [0, 0, 1, 1], [], []>} : vector<1x32xf32>, vector<32x3xf32>, vector<1x3xf32> -> vector<1x3xf32>
    %170 = vector.extract_strided_slice %2 {offsets = [32, 0], sizes = [32, 3], strides = [1, 1]} : vector<128x3xf32> to vector<32x3xf32>
    %cst_129 = arith.constant dense<0.000000e+00> : vector<1x3xf32>
    %171 = tpu.matmul %127, %170, %cst_129 {dimension_numbers = #tpu.dot_dimension_numbers<[1], [0], [0], [1], [0, 0, 1, 1], [], []>} : vector<1x32xf32>, vector<32x3xf32>, vector<1x3xf32> -> vector<1x3xf32>
    %172 = arith.addf %169, %171 : vector<1x3xf32>
    %173 = vector.extract_strided_slice %2 {offsets = [64, 0], sizes = [32, 3], strides = [1, 1]} : vector<128x3xf32> to vector<32x3xf32>
    %cst_130 = arith.constant dense<0.000000e+00> : vector<1x3xf32>
    %174 = tpu.matmul %167, %173, %cst_130 {dimension_numbers = #tpu.dot_dimension_numbers<[1], [0], [0], [1], [0, 0, 1, 1], [], []>} : vector<1x32xf32>, vector<32x3xf32>, vector<1x3xf32> -> vector<1x3xf32>
    %175 = arith.addf %172, %174 : vector<1x3xf32>
    %176 = vector.extract_strided_slice %2 {offsets = [96, 0], sizes = [32, 3], strides = [1, 1]} : vector<128x3xf32> to vector<32x3xf32>
    %cst_131 = arith.constant dense<0.000000e+00> : vector<1x3xf32>
    %177 = tpu.matmul %87, %176, %cst_131 {dimension_numbers = #tpu.dot_dimension_numbers<[1], [0], [0], [1], [0, 0, 1, 1], [], []>} : vector<1x32xf32>, vector<32x3xf32>, vector<1x3xf32> -> vector<1x3xf32>
    %178 = arith.addf %175, %177 : vector<1x3xf32>
    %179 = arith.addf %178, %3 : vector<1x3xf32>
    %180 = vector.extract_strided_slice %1 {offsets = [1, 0], sizes = [1, 32], strides = [1, 1]} : vector<2x32xf32> to vector<1x32xf32>
    %181 = vector.extract_strided_slice %0 {offsets = [0, 1, 0, 0], sizes = [1, 1, 8, 32], strides = [1, 1, 1, 1]} : vector<3x2x8x32xf32> to vector<1x1x8x32xf32>
    %182 = vector.shape_cast %181 : vector<1x1x8x32xf32> to vector<8x32xf32>
    %c0_132 = arith.constant 0 : index
    %c0_133 = arith.constant 0 : index
    %c0_134 = arith.constant 0 : index
    %183 = vector.load %arg3[%c0_132, %c0_133, %c0_134] : memref<4x32x32xf32, #tpu.memory_space<vmem>>, vector<1x32x32xf32>
    %184 = vector.shape_cast %183 : vector<1x32x32xf32> to vector<32x32xf32>
    %cst_135 = arith.constant dense<0.000000e+00> : vector<8x32xf32>
    %185 = tpu.matmul %182, %184, %cst_135 {dimension_numbers = #tpu.dot_dimension_numbers<[1], [0], [0], [1], [0, 0, 1, 1], [], []>} : vector<8x32xf32>, vector<32x32xf32>, vector<8x32xf32> -> vector<8x32xf32>
    %c0_136 = arith.constant 0 : index
    %c0_137 = arith.constant 0 : index
    %c0_138 = arith.constant 0 : index
    %186 = vector.load %arg4[%c0_136, %c0_137, %c0_138] : memref<4x1x32xf32, #tpu.memory_space<vmem>>, vector<1x1x32xf32>
    %187 = vector.shape_cast %186 : vector<1x1x32xf32> to vector<1x32xf32>
    %188 = vector.broadcast %187 : vector<1x32xf32> to vector<8x32xf32>
    %189 = arith.addf %185, %188 : vector<8x32xf32>
    %c0_139 = arith.constant 0 : index
    %c0_140 = arith.constant 0 : index
    %c0_141 = arith.constant 0 : index
    %190 = vector.load %arg5[%c0_139, %c0_140, %c0_141] : memref<4x32x32xf32, #tpu.memory_space<vmem>>, vector<1x32x32xf32>
    %191 = vector.shape_cast %190 : vector<1x32x32xf32> to vector<32x32xf32>
    %cst_142 = arith.constant dense<0.000000e+00> : vector<1x32xf32>
    %192 = tpu.matmul %180, %191, %cst_142 {dimension_numbers = #tpu.dot_dimension_numbers<[1], [0], [0], [1], [0, 0, 1, 1], [], []>} : vector<1x32xf32>, vector<32x32xf32>, vector<1x32xf32> -> vector<1x32xf32>
    %c0_143 = arith.constant 0 : index
    %c0_144 = arith.constant 0 : index
    %c0_145 = arith.constant 0 : index
    %193 = vector.load %arg6[%c0_143, %c0_144, %c0_145] : memref<4x1x32xf32, #tpu.memory_space<vmem>>, vector<1x1x32xf32>
    %194 = vector.shape_cast %193 : vector<1x1x32xf32> to vector<1x32xf32>
    %195 = arith.addf %192, %194 : vector<1x32xf32>
    %c0_146 = arith.constant 0 : index
    %c0_147 = arith.constant 0 : index
    %c0_148 = arith.constant 0 : index
    %196 = vector.load %arg7[%c0_146, %c0_147, %c0_148] : memref<4x32x32xf32, #tpu.memory_space<vmem>>, vector<1x32x32xf32>
    %197 = vector.shape_cast %196 : vector<1x32x32xf32> to vector<32x32xf32>
    %cst_149 = arith.constant dense<0.000000e+00> : vector<1x32xf32>
    %198 = tpu.matmul %195, %197, %cst_149 {dimension_numbers = #tpu.dot_dimension_numbers<[1], [0], [0], [1], [0, 0, 1, 1], [], []>} : vector<1x32xf32>, vector<32x32xf32>, vector<1x32xf32> -> vector<1x32xf32>
    %cst_150 = arith.constant dense<0.000000e+00> : vector<1x8xf32>
    %199 = tpu.matmul %198, %189, %cst_150 {dimension_numbers = #tpu.dot_dimension_numbers<[1], [1], [0], [0], [0, 0, 1, 0], [], []>} : vector<1x32xf32>, vector<8x32xf32>, vector<1x8xf32> -> vector<1x8xf32>
    %200 = tpu.iota {dimensions = array<i32: 1>} : vector<1x8xi32>
    %201 = vector.broadcast %4 : i32 to vector<1x8xi32>
    %202 = arith.cmpi slt, %200, %201 : vector<1x8xi32>
    %cst_151 = arith.constant -1.000000e+30 : f32
    %203 = vector.broadcast %cst_151 : f32 to vector<1x8xf32>
    %204 = arith.select %202, %199, %203 : vector<1x8xi1>, vector<1x8xf32>
    %cst_152 = arith.constant dense<0xFF800000> : vector<1xf32>
    %205 = vector.multi_reduction <maximumf>, %204, %cst_152 [1] : vector<1x8xf32> to vector<1xf32>
    %206 = vector.shape_cast %205 : vector<1xf32> to vector<1x1xf32>
    %207 = vector.broadcast %206 : vector<1x1xf32> to vector<1x8xf32>
    %208 = arith.subf %204, %207 : vector<1x8xf32>
    %209 = math.exp %208 : vector<1x8xf32>
    %cst_153 = arith.constant dense<0.000000e+00> : vector<1xf32>
    %210 = vector.multi_reduction <add>, %209, %cst_153 [1] : vector<1x8xf32> to vector<1xf32>
    %211 = vector.shape_cast %210 : vector<1xf32> to vector<1x1xf32>
    %212 = vector.broadcast %211 : vector<1x1xf32> to vector<1x8xf32>
    %213 = arith.divf %209, %212 : vector<1x8xf32>
    %cst_154 = arith.constant dense<0.000000e+00> : vector<1x32xf32>
    %214 = tpu.matmul %213, %189, %cst_154 {dimension_numbers = #tpu.dot_dimension_numbers<[1], [0], [0], [1], [0, 0, 1, 1], [], []>} : vector<1x8xf32>, vector<8x32xf32>, vector<1x32xf32> -> vector<1x32xf32>
    %c0_155 = arith.constant 0 : index
    %c0_156 = arith.constant 0 : index
    %c0_157 = arith.constant 0 : index
    %215 = vector.load %arg8[%c0_155, %c0_156, %c0_157] : memref<4x32x32xf32, #tpu.memory_space<vmem>>, vector<1x32x32xf32>
    %216 = vector.shape_cast %215 : vector<1x32x32xf32> to vector<32x32xf32>
    %cst_158 = arith.constant dense<0.000000e+00> : vector<1x32xf32>
    %217 = tpu.matmul %214, %216, %cst_158 {dimension_numbers = #tpu.dot_dimension_numbers<[1], [0], [0], [1], [0, 0, 1, 1], [], []>} : vector<1x32xf32>, vector<32x32xf32>, vector<1x32xf32> -> vector<1x32xf32>
    %c0_159 = arith.constant 0 : index
    %c0_160 = arith.constant 0 : index
    %c0_161 = arith.constant 0 : index
    %218 = vector.load %arg9[%c0_159, %c0_160, %c0_161] : memref<4x1x32xf32, #tpu.memory_space<vmem>>, vector<1x1x32xf32>
    %219 = vector.shape_cast %218 : vector<1x1x32xf32> to vector<1x32xf32>
    %220 = arith.addf %217, %219 : vector<1x32xf32>
    %221 = vector.extract_strided_slice %0 {offsets = [2, 1, 0, 0], sizes = [1, 1, 8, 32], strides = [1, 1, 1, 1]} : vector<3x2x8x32xf32> to vector<1x1x8x32xf32>
    %222 = vector.shape_cast %221 : vector<1x1x8x32xf32> to vector<8x32xf32>
    %c1_162 = arith.constant 1 : index
    %c0_163 = arith.constant 0 : index
    %c0_164 = arith.constant 0 : index
    %223 = vector.load %arg3[%c1_162, %c0_163, %c0_164] : memref<4x32x32xf32, #tpu.memory_space<vmem>>, vector<1x32x32xf32>
    %224 = vector.shape_cast %223 : vector<1x32x32xf32> to vector<32x32xf32>
    %cst_165 = arith.constant dense<0.000000e+00> : vector<8x32xf32>
    %225 = tpu.matmul %222, %224, %cst_165 {dimension_numbers = #tpu.dot_dimension_numbers<[1], [0], [0], [1], [0, 0, 1, 1], [], []>} : vector<8x32xf32>, vector<32x32xf32>, vector<8x32xf32> -> vector<8x32xf32>
    %c1_166 = arith.constant 1 : index
    %c0_167 = arith.constant 0 : index
    %c0_168 = arith.constant 0 : index
    %226 = vector.load %arg4[%c1_166, %c0_167, %c0_168] : memref<4x1x32xf32, #tpu.memory_space<vmem>>, vector<1x1x32xf32>
    %227 = vector.shape_cast %226 : vector<1x1x32xf32> to vector<1x32xf32>
    %228 = vector.broadcast %227 : vector<1x32xf32> to vector<8x32xf32>
    %229 = arith.addf %225, %228 : vector<8x32xf32>
    %c1_169 = arith.constant 1 : index
    %c0_170 = arith.constant 0 : index
    %c0_171 = arith.constant 0 : index
    %230 = vector.load %arg5[%c1_169, %c0_170, %c0_171] : memref<4x32x32xf32, #tpu.memory_space<vmem>>, vector<1x32x32xf32>
    %231 = vector.shape_cast %230 : vector<1x32x32xf32> to vector<32x32xf32>
    %cst_172 = arith.constant dense<0.000000e+00> : vector<1x32xf32>
    %232 = tpu.matmul %180, %231, %cst_172 {dimension_numbers = #tpu.dot_dimension_numbers<[1], [0], [0], [1], [0, 0, 1, 1], [], []>} : vector<1x32xf32>, vector<32x32xf32>, vector<1x32xf32> -> vector<1x32xf32>
    %c1_173 = arith.constant 1 : index
    %c0_174 = arith.constant 0 : index
    %c0_175 = arith.constant 0 : index
    %233 = vector.load %arg6[%c1_173, %c0_174, %c0_175] : memref<4x1x32xf32, #tpu.memory_space<vmem>>, vector<1x1x32xf32>
    %234 = vector.shape_cast %233 : vector<1x1x32xf32> to vector<1x32xf32>
    %235 = arith.addf %232, %234 : vector<1x32xf32>
    %c1_176 = arith.constant 1 : index
    %c0_177 = arith.constant 0 : index
    %c0_178 = arith.constant 0 : index
    %236 = vector.load %arg7[%c1_176, %c0_177, %c0_178] : memref<4x32x32xf32, #tpu.memory_space<vmem>>, vector<1x32x32xf32>
    %237 = vector.shape_cast %236 : vector<1x32x32xf32> to vector<32x32xf32>
    %cst_179 = arith.constant dense<0.000000e+00> : vector<1x32xf32>
    %238 = tpu.matmul %235, %237, %cst_179 {dimension_numbers = #tpu.dot_dimension_numbers<[1], [0], [0], [1], [0, 0, 1, 1], [], []>} : vector<1x32xf32>, vector<32x32xf32>, vector<1x32xf32> -> vector<1x32xf32>
    %cst_180 = arith.constant dense<0.000000e+00> : vector<1x8xf32>
    %239 = tpu.matmul %238, %229, %cst_180 {dimension_numbers = #tpu.dot_dimension_numbers<[1], [1], [0], [0], [0, 0, 1, 0], [], []>} : vector<1x32xf32>, vector<8x32xf32>, vector<1x8xf32> -> vector<1x8xf32>
    %240 = tpu.iota {dimensions = array<i32: 1>} : vector<1x8xi32>
    %241 = vector.broadcast %6 : i32 to vector<1x8xi32>
    %242 = arith.cmpi slt, %240, %241 : vector<1x8xi32>
    %cst_181 = arith.constant -1.000000e+30 : f32
    %243 = vector.broadcast %cst_181 : f32 to vector<1x8xf32>
    %244 = arith.select %242, %239, %243 : vector<1x8xi1>, vector<1x8xf32>
    %cst_182 = arith.constant dense<0xFF800000> : vector<1xf32>
    %245 = vector.multi_reduction <maximumf>, %244, %cst_182 [1] : vector<1x8xf32> to vector<1xf32>
    %246 = vector.shape_cast %245 : vector<1xf32> to vector<1x1xf32>
    %247 = vector.broadcast %246 : vector<1x1xf32> to vector<1x8xf32>
    %248 = arith.subf %244, %247 : vector<1x8xf32>
    %249 = math.exp %248 : vector<1x8xf32>
    %cst_183 = arith.constant dense<0.000000e+00> : vector<1xf32>
    %250 = vector.multi_reduction <add>, %249, %cst_183 [1] : vector<1x8xf32> to vector<1xf32>
    %251 = vector.shape_cast %250 : vector<1xf32> to vector<1x1xf32>
    %252 = vector.broadcast %251 : vector<1x1xf32> to vector<1x8xf32>
    %253 = arith.divf %249, %252 : vector<1x8xf32>
    %cst_184 = arith.constant dense<0.000000e+00> : vector<1x32xf32>
    %254 = tpu.matmul %253, %229, %cst_184 {dimension_numbers = #tpu.dot_dimension_numbers<[1], [0], [0], [1], [0, 0, 1, 1], [], []>} : vector<1x8xf32>, vector<8x32xf32>, vector<1x32xf32> -> vector<1x32xf32>
    %c1_185 = arith.constant 1 : index
    %c0_186 = arith.constant 0 : index
    %c0_187 = arith.constant 0 : index
    %255 = vector.load %arg8[%c1_185, %c0_186, %c0_187] : memref<4x32x32xf32, #tpu.memory_space<vmem>>, vector<1x32x32xf32>
    %256 = vector.shape_cast %255 : vector<1x32x32xf32> to vector<32x32xf32>
    %cst_188 = arith.constant dense<0.000000e+00> : vector<1x32xf32>
    %257 = tpu.matmul %254, %256, %cst_188 {dimension_numbers = #tpu.dot_dimension_numbers<[1], [0], [0], [1], [0, 0, 1, 1], [], []>} : vector<1x32xf32>, vector<32x32xf32>, vector<1x32xf32> -> vector<1x32xf32>
    %c1_189 = arith.constant 1 : index
    %c0_190 = arith.constant 0 : index
    %c0_191 = arith.constant 0 : index
    %258 = vector.load %arg9[%c1_189, %c0_190, %c0_191] : memref<4x1x32xf32, #tpu.memory_space<vmem>>, vector<1x1x32xf32>
    %259 = vector.shape_cast %258 : vector<1x1x32xf32> to vector<1x32xf32>
    %260 = arith.addf %257, %259 : vector<1x32xf32>
    %261 = vector.extract_strided_slice %0 {offsets = [1, 1, 0, 0], sizes = [1, 1, 8, 32], strides = [1, 1, 1, 1]} : vector<3x2x8x32xf32> to vector<1x1x8x32xf32>
    %262 = vector.shape_cast %261 : vector<1x1x8x32xf32> to vector<8x32xf32>
    %c2_192 = arith.constant 2 : index
    %c0_193 = arith.constant 0 : index
    %c0_194 = arith.constant 0 : index
    %263 = vector.load %arg3[%c2_192, %c0_193, %c0_194] : memref<4x32x32xf32, #tpu.memory_space<vmem>>, vector<1x32x32xf32>
    %264 = vector.shape_cast %263 : vector<1x32x32xf32> to vector<32x32xf32>
    %cst_195 = arith.constant dense<0.000000e+00> : vector<8x32xf32>
    %265 = tpu.matmul %262, %264, %cst_195 {dimension_numbers = #tpu.dot_dimension_numbers<[1], [0], [0], [1], [0, 0, 1, 1], [], []>} : vector<8x32xf32>, vector<32x32xf32>, vector<8x32xf32> -> vector<8x32xf32>
    %c2_196 = arith.constant 2 : index
    %c0_197 = arith.constant 0 : index
    %c0_198 = arith.constant 0 : index
    %266 = vector.load %arg4[%c2_196, %c0_197, %c0_198] : memref<4x1x32xf32, #tpu.memory_space<vmem>>, vector<1x1x32xf32>
    %267 = vector.shape_cast %266 : vector<1x1x32xf32> to vector<1x32xf32>
    %268 = vector.broadcast %267 : vector<1x32xf32> to vector<8x32xf32>
    %269 = arith.addf %265, %268 : vector<8x32xf32>
    %c2_199 = arith.constant 2 : index
    %c0_200 = arith.constant 0 : index
    %c0_201 = arith.constant 0 : index
    %270 = vector.load %arg5[%c2_199, %c0_200, %c0_201] : memref<4x32x32xf32, #tpu.memory_space<vmem>>, vector<1x32x32xf32>
    %271 = vector.shape_cast %270 : vector<1x32x32xf32> to vector<32x32xf32>
    %cst_202 = arith.constant dense<0.000000e+00> : vector<1x32xf32>
    %272 = tpu.matmul %220, %271, %cst_202 {dimension_numbers = #tpu.dot_dimension_numbers<[1], [0], [0], [1], [0, 0, 1, 1], [], []>} : vector<1x32xf32>, vector<32x32xf32>, vector<1x32xf32> -> vector<1x32xf32>
    %c2_203 = arith.constant 2 : index
    %c0_204 = arith.constant 0 : index
    %c0_205 = arith.constant 0 : index
    %273 = vector.load %arg6[%c2_203, %c0_204, %c0_205] : memref<4x1x32xf32, #tpu.memory_space<vmem>>, vector<1x1x32xf32>
    %274 = vector.shape_cast %273 : vector<1x1x32xf32> to vector<1x32xf32>
    %275 = arith.addf %272, %274 : vector<1x32xf32>
    %c2_206 = arith.constant 2 : index
    %c0_207 = arith.constant 0 : index
    %c0_208 = arith.constant 0 : index
    %276 = vector.load %arg7[%c2_206, %c0_207, %c0_208] : memref<4x32x32xf32, #tpu.memory_space<vmem>>, vector<1x32x32xf32>
    %277 = vector.shape_cast %276 : vector<1x32x32xf32> to vector<32x32xf32>
    %cst_209 = arith.constant dense<0.000000e+00> : vector<1x32xf32>
    %278 = tpu.matmul %275, %277, %cst_209 {dimension_numbers = #tpu.dot_dimension_numbers<[1], [0], [0], [1], [0, 0, 1, 1], [], []>} : vector<1x32xf32>, vector<32x32xf32>, vector<1x32xf32> -> vector<1x32xf32>
    %cst_210 = arith.constant dense<0.000000e+00> : vector<1x8xf32>
    %279 = tpu.matmul %278, %269, %cst_210 {dimension_numbers = #tpu.dot_dimension_numbers<[1], [1], [0], [0], [0, 0, 1, 0], [], []>} : vector<1x32xf32>, vector<8x32xf32>, vector<1x8xf32> -> vector<1x8xf32>
    %280 = tpu.iota {dimensions = array<i32: 1>} : vector<1x8xi32>
    %281 = vector.broadcast %5 : i32 to vector<1x8xi32>
    %282 = arith.cmpi slt, %280, %281 : vector<1x8xi32>
    %cst_211 = arith.constant -1.000000e+30 : f32
    %283 = vector.broadcast %cst_211 : f32 to vector<1x8xf32>
    %284 = arith.select %282, %279, %283 : vector<1x8xi1>, vector<1x8xf32>
    %cst_212 = arith.constant dense<0xFF800000> : vector<1xf32>
    %285 = vector.multi_reduction <maximumf>, %284, %cst_212 [1] : vector<1x8xf32> to vector<1xf32>
    %286 = vector.shape_cast %285 : vector<1xf32> to vector<1x1xf32>
    %287 = vector.broadcast %286 : vector<1x1xf32> to vector<1x8xf32>
    %288 = arith.subf %284, %287 : vector<1x8xf32>
    %289 = math.exp %288 : vector<1x8xf32>
    %cst_213 = arith.constant dense<0.000000e+00> : vector<1xf32>
    %290 = vector.multi_reduction <add>, %289, %cst_213 [1] : vector<1x8xf32> to vector<1xf32>
    %291 = vector.shape_cast %290 : vector<1xf32> to vector<1x1xf32>
    %292 = vector.broadcast %291 : vector<1x1xf32> to vector<1x8xf32>
    %293 = arith.divf %289, %292 : vector<1x8xf32>
    %cst_214 = arith.constant dense<0.000000e+00> : vector<1x32xf32>
    %294 = tpu.matmul %293, %269, %cst_214 {dimension_numbers = #tpu.dot_dimension_numbers<[1], [0], [0], [1], [0, 0, 1, 1], [], []>} : vector<1x8xf32>, vector<8x32xf32>, vector<1x32xf32> -> vector<1x32xf32>
    %c2_215 = arith.constant 2 : index
    %c0_216 = arith.constant 0 : index
    %c0_217 = arith.constant 0 : index
    %295 = vector.load %arg8[%c2_215, %c0_216, %c0_217] : memref<4x32x32xf32, #tpu.memory_space<vmem>>, vector<1x32x32xf32>
    %296 = vector.shape_cast %295 : vector<1x32x32xf32> to vector<32x32xf32>
    %cst_218 = arith.constant dense<0.000000e+00> : vector<1x32xf32>
    %297 = tpu.matmul %294, %296, %cst_218 {dimension_numbers = #tpu.dot_dimension_numbers<[1], [0], [0], [1], [0, 0, 1, 1], [], []>} : vector<1x32xf32>, vector<32x32xf32>, vector<1x32xf32> -> vector<1x32xf32>
    %c2_219 = arith.constant 2 : index
    %c0_220 = arith.constant 0 : index
    %c0_221 = arith.constant 0 : index
    %298 = vector.load %arg9[%c2_219, %c0_220, %c0_221] : memref<4x1x32xf32, #tpu.memory_space<vmem>>, vector<1x1x32xf32>
    %299 = vector.shape_cast %298 : vector<1x1x32xf32> to vector<1x32xf32>
    %300 = arith.addf %297, %299 : vector<1x32xf32>
    %301 = vector.extract_strided_slice %0 {offsets = [1, 1, 0, 0], sizes = [1, 1, 8, 32], strides = [1, 1, 1, 1]} : vector<3x2x8x32xf32> to vector<1x1x8x32xf32>
    %302 = vector.shape_cast %301 : vector<1x1x8x32xf32> to vector<8x32xf32>
    %c3_222 = arith.constant 3 : index
    %c0_223 = arith.constant 0 : index
    %c0_224 = arith.constant 0 : index
    %303 = vector.load %arg3[%c3_222, %c0_223, %c0_224] : memref<4x32x32xf32, #tpu.memory_space<vmem>>, vector<1x32x32xf32>
    %304 = vector.shape_cast %303 : vector<1x32x32xf32> to vector<32x32xf32>
    %cst_225 = arith.constant dense<0.000000e+00> : vector<8x32xf32>
    %305 = tpu.matmul %302, %304, %cst_225 {dimension_numbers = #tpu.dot_dimension_numbers<[1], [0], [0], [1], [0, 0, 1, 1], [], []>} : vector<8x32xf32>, vector<32x32xf32>, vector<8x32xf32> -> vector<8x32xf32>
    %c3_226 = arith.constant 3 : index
    %c0_227 = arith.constant 0 : index
    %c0_228 = arith.constant 0 : index
    %306 = vector.load %arg4[%c3_226, %c0_227, %c0_228] : memref<4x1x32xf32, #tpu.memory_space<vmem>>, vector<1x1x32xf32>
    %307 = vector.shape_cast %306 : vector<1x1x32xf32> to vector<1x32xf32>
    %308 = vector.broadcast %307 : vector<1x32xf32> to vector<8x32xf32>
    %309 = arith.addf %305, %308 : vector<8x32xf32>
    %c3_229 = arith.constant 3 : index
    %c0_230 = arith.constant 0 : index
    %c0_231 = arith.constant 0 : index
    %310 = vector.load %arg5[%c3_229, %c0_230, %c0_231] : memref<4x32x32xf32, #tpu.memory_space<vmem>>, vector<1x32x32xf32>
    %311 = vector.shape_cast %310 : vector<1x32x32xf32> to vector<32x32xf32>
    %cst_232 = arith.constant dense<0.000000e+00> : vector<1x32xf32>
    %312 = tpu.matmul %260, %311, %cst_232 {dimension_numbers = #tpu.dot_dimension_numbers<[1], [0], [0], [1], [0, 0, 1, 1], [], []>} : vector<1x32xf32>, vector<32x32xf32>, vector<1x32xf32> -> vector<1x32xf32>
    %c3_233 = arith.constant 3 : index
    %c0_234 = arith.constant 0 : index
    %c0_235 = arith.constant 0 : index
    %313 = vector.load %arg6[%c3_233, %c0_234, %c0_235] : memref<4x1x32xf32, #tpu.memory_space<vmem>>, vector<1x1x32xf32>
    %314 = vector.shape_cast %313 : vector<1x1x32xf32> to vector<1x32xf32>
    %315 = arith.addf %312, %314 : vector<1x32xf32>
    %c3_236 = arith.constant 3 : index
    %c0_237 = arith.constant 0 : index
    %c0_238 = arith.constant 0 : index
    %316 = vector.load %arg7[%c3_236, %c0_237, %c0_238] : memref<4x32x32xf32, #tpu.memory_space<vmem>>, vector<1x32x32xf32>
    %317 = vector.shape_cast %316 : vector<1x32x32xf32> to vector<32x32xf32>
    %cst_239 = arith.constant dense<0.000000e+00> : vector<1x32xf32>
    %318 = tpu.matmul %315, %317, %cst_239 {dimension_numbers = #tpu.dot_dimension_numbers<[1], [0], [0], [1], [0, 0, 1, 1], [], []>} : vector<1x32xf32>, vector<32x32xf32>, vector<1x32xf32> -> vector<1x32xf32>
    %cst_240 = arith.constant dense<0.000000e+00> : vector<1x8xf32>
    %319 = tpu.matmul %318, %309, %cst_240 {dimension_numbers = #tpu.dot_dimension_numbers<[1], [1], [0], [0], [0, 0, 1, 0], [], []>} : vector<1x32xf32>, vector<8x32xf32>, vector<1x8xf32> -> vector<1x8xf32>
    %320 = tpu.iota {dimensions = array<i32: 1>} : vector<1x8xi32>
    %321 = vector.broadcast %5 : i32 to vector<1x8xi32>
    %322 = arith.cmpi slt, %320, %321 : vector<1x8xi32>
    %cst_241 = arith.constant -1.000000e+30 : f32
    %323 = vector.broadcast %cst_241 : f32 to vector<1x8xf32>
    %324 = arith.select %322, %319, %323 : vector<1x8xi1>, vector<1x8xf32>
    %cst_242 = arith.constant dense<0xFF800000> : vector<1xf32>
    %325 = vector.multi_reduction <maximumf>, %324, %cst_242 [1] : vector<1x8xf32> to vector<1xf32>
    %326 = vector.shape_cast %325 : vector<1xf32> to vector<1x1xf32>
    %327 = vector.broadcast %326 : vector<1x1xf32> to vector<1x8xf32>
    %328 = arith.subf %324, %327 : vector<1x8xf32>
    %329 = math.exp %328 : vector<1x8xf32>
    %cst_243 = arith.constant dense<0.000000e+00> : vector<1xf32>
    %330 = vector.multi_reduction <add>, %329, %cst_243 [1] : vector<1x8xf32> to vector<1xf32>
    %331 = vector.shape_cast %330 : vector<1xf32> to vector<1x1xf32>
    %332 = vector.broadcast %331 : vector<1x1xf32> to vector<1x8xf32>
    %333 = arith.divf %329, %332 : vector<1x8xf32>
    %cst_244 = arith.constant dense<0.000000e+00> : vector<1x32xf32>
    %334 = tpu.matmul %333, %309, %cst_244 {dimension_numbers = #tpu.dot_dimension_numbers<[1], [0], [0], [1], [0, 0, 1, 1], [], []>} : vector<1x8xf32>, vector<8x32xf32>, vector<1x32xf32> -> vector<1x32xf32>
    %c3_245 = arith.constant 3 : index
    %c0_246 = arith.constant 0 : index
    %c0_247 = arith.constant 0 : index
    %335 = vector.load %arg8[%c3_245, %c0_246, %c0_247] : memref<4x32x32xf32, #tpu.memory_space<vmem>>, vector<1x32x32xf32>
    %336 = vector.shape_cast %335 : vector<1x32x32xf32> to vector<32x32xf32>
    %cst_248 = arith.constant dense<0.000000e+00> : vector<1x32xf32>
    %337 = tpu.matmul %334, %336, %cst_248 {dimension_numbers = #tpu.dot_dimension_numbers<[1], [0], [0], [1], [0, 0, 1, 1], [], []>} : vector<1x32xf32>, vector<32x32xf32>, vector<1x32xf32> -> vector<1x32xf32>
    %c3_249 = arith.constant 3 : index
    %c0_250 = arith.constant 0 : index
    %c0_251 = arith.constant 0 : index
    %338 = vector.load %arg9[%c3_249, %c0_250, %c0_251] : memref<4x1x32xf32, #tpu.memory_space<vmem>>, vector<1x1x32xf32>
    %339 = vector.shape_cast %338 : vector<1x1x32xf32> to vector<1x32xf32>
    %340 = arith.addf %337, %339 : vector<1x32xf32>
    %341 = vector.extract_strided_slice %2 {offsets = [0, 0], sizes = [32, 3], strides = [1, 1]} : vector<128x3xf32> to vector<32x3xf32>
    %cst_252 = arith.constant dense<0.000000e+00> : vector<1x3xf32>
    %342 = tpu.matmul %220, %341, %cst_252 {dimension_numbers = #tpu.dot_dimension_numbers<[1], [0], [0], [1], [0, 0, 1, 1], [], []>} : vector<1x32xf32>, vector<32x3xf32>, vector<1x3xf32> -> vector<1x3xf32>
    %343 = vector.extract_strided_slice %2 {offsets = [32, 0], sizes = [32, 3], strides = [1, 1]} : vector<128x3xf32> to vector<32x3xf32>
    %cst_253 = arith.constant dense<0.000000e+00> : vector<1x3xf32>
    %344 = tpu.matmul %300, %343, %cst_253 {dimension_numbers = #tpu.dot_dimension_numbers<[1], [0], [0], [1], [0, 0, 1, 1], [], []>} : vector<1x32xf32>, vector<32x3xf32>, vector<1x3xf32> -> vector<1x3xf32>
    %345 = arith.addf %342, %344 : vector<1x3xf32>
    %346 = vector.extract_strided_slice %2 {offsets = [64, 0], sizes = [32, 3], strides = [1, 1]} : vector<128x3xf32> to vector<32x3xf32>
    %cst_254 = arith.constant dense<0.000000e+00> : vector<1x3xf32>
    %347 = tpu.matmul %340, %346, %cst_254 {dimension_numbers = #tpu.dot_dimension_numbers<[1], [0], [0], [1], [0, 0, 1, 1], [], []>} : vector<1x32xf32>, vector<32x3xf32>, vector<1x3xf32> -> vector<1x3xf32>
    %348 = arith.addf %345, %347 : vector<1x3xf32>
    %349 = vector.extract_strided_slice %2 {offsets = [96, 0], sizes = [32, 3], strides = [1, 1]} : vector<128x3xf32> to vector<32x3xf32>
    %cst_255 = arith.constant dense<0.000000e+00> : vector<1x3xf32>
    %350 = tpu.matmul %260, %349, %cst_255 {dimension_numbers = #tpu.dot_dimension_numbers<[1], [0], [0], [1], [0, 0, 1, 1], [], []>} : vector<1x32xf32>, vector<32x3xf32>, vector<1x3xf32> -> vector<1x3xf32>
    %351 = arith.addf %348, %350 : vector<1x3xf32>
    %352 = arith.addf %351, %3 : vector<1x3xf32>
    %353 = tpu.concatenate %179, %352 in 0 : vector<1x3xf32>, vector<1x3xf32> -> vector<2x3xf32>
    %cst_256 = arith.constant dense<0xFF800000> : vector<2xf32>
    %354 = vector.multi_reduction <maximumf>, %353, %cst_256 [1] : vector<2x3xf32> to vector<2xf32>
    %355 = vector.shape_cast %354 : vector<2xf32> to vector<2x1xf32>
    %356 = vector.broadcast %355 : vector<2x1xf32> to vector<2x3xf32>
    %357 = arith.subf %353, %356 : vector<2x3xf32>
    %358 = math.exp %357 : vector<2x3xf32>
    %cst_257 = arith.constant dense<0.000000e+00> : vector<2xf32>
    %359 = vector.multi_reduction <add>, %358, %cst_257 [1] : vector<2x3xf32> to vector<2xf32>
    %360 = vector.shape_cast %359 : vector<2xf32> to vector<2x1xf32>
    %361 = vector.broadcast %360 : vector<2x1xf32> to vector<2x3xf32>
    %362 = arith.divf %358, %361 : vector<2x3xf32>
    %c0_258 = arith.constant 0 : index
    %c0_259 = arith.constant 0 : index
    %363 = vector.load %arg12[%c0_258, %c0_259] : memref<2x3xf32, #tpu.memory_space<vmem>>, vector<2x3xf32>
    tpu.vector_store %arg12[%c0_258, %c0_259], %362 {strides = array<i32>} : memref<2x3xf32, #tpu.memory_space<vmem>>, vector<2x3xf32>,
    return
  }
}

</mosaic_0001>

<bundles_post_ra>
// kernel: lcrs_forward.2
= control target key start
LH: loop header
LB: loop body
LE: loop exit
PB: predicated region body
PF: predicated region fallthrough
CT: control target
= control target key end

     0   :  { %s1402_s9 = smov 0   ;;  %s1550_s0 = inlined_call_operand.vmem [shape: f32[3,8,2,128], index: 0, kind: input, shape index: {}]   ;;  %s1551_s1 = inlined_call_operand.vmem [shape: f32[3,32,128], index: 1, kind: input, shape index: {}]   ;;  %s1552_s2 = inlined_call_operand.vmem [shape: f32[3,8,2,32], index: 2, kind: output, shape index: {}]  }
   0x1 LB: > { %s1076_s10 = sadd.s32 4294967295, %s1380_s9   ;;  %p1080_p0 = scmp.ge.s32.totalorder %s1380_s9, 1  ;;  %s1380_s9 = sphi %s1402_s9, %s12_s9  }
   0x2   : > { %p122_p1 = scmp.lt.s32.totalorder %s1380_s9, 4 }
   0x4   : > { %p123_p2 = pnand %p1080_p0, %p122_p1 }
   0x5   : > { %p149_p3 = scmp.lt.s32.totalorder (!%p123_p2), %s1076_s10, 2  ;;  %v1382_v0 = vmov (!%p123_p2), 0.0|0.0   ;;  %vm1383_vm0 = vmmov (!%p123_p2), 0   ;;  %v1384_v1 = vmov (!%p123_p2), 0.0   ;;  %s1385_s19 = smov (!%p123_p2), 64   ;;  %vm272_vm1 = vcmask (!%p123_p2), 254976  }
   0x6   : > { %126 = sbr.rel (%p123_p2) target bundleno = 5643 (0x160b), region = 28  ;;  %1249 = vmatprep.subr.bf16.mxu0 (!%p123_p2), %v1382_v0  ;;  %1169 = vmatprep.mubr.msk.f32.mxu0 (!%p123_p2), %vm1383_vm0, %v1384_v1  ;;  %s1386_s20 = smov (!%p123_p2), 32   ;;  %vm169_vm2 = vcmask (!%p123_p2), 261120  }
   0x7   : > { %1255 = vmatprep.subr.bf16.mxu1 (!%p123_p2), %v1382_v0  ;;  %1180 = vmatprep.mubr.msk.f32.mxu1 (!%p123_p2), %vm1383_vm0, %v1384_v1 }
   0xd   : > { %s1554_s10 = smov (!%p149_p3, %s1076_s10), 2 }
   0xe   : > { %s1119_s11 = sshll.u32 %s1554_s10, 5  ;;  %s1118_s15 = sshll.u32 %s1554_s10, 4 }
   0xf   : > { %s158_s14 = scalar_lea.vmem %s1551_s1, %s1119_s11  ;;  %s1447_s18 = scalar_lea.vmem %s1550_s0, %s1118_s15 }
  0x10   : > { %v164_v2 = vld [vmem:[%s158_s14] sm:$0xff]  ;;  %v165_v3 = vld [vmem:[%s158_s14 + $0x8] sm:$0xff]  ;;  %v166_v4 = vld [vmem:[%s158_s14 + $0x10] sm:$0xff]  ;;  %s1459_s23 = scalar_lea.vmem %s1552_s2, %s1118_s15 }
  0x11   : > { %v1422_v5 = vpack.c.bf16 %v165_v3, %v164_v2  ;;  %v167_v6 = vld [vmem:[%s158_s14 + $0x18] sm:$0xff]  ;;  %v168_v8 = vld [vmem:[%s1447_s18] sm:$0x3]  ;;  %v1088_v26 = vld [vmem:[%s1447_s18 + $0x2] sm:$0x3] }
  0x12   : > { %v1425_v7 = vpack.c.bf16 %v167_v6, %v166_v4  ;;  %v1092_v44 = vld [vmem:[%s1447_s18 + $0x4] sm:$0x3]  ;;  %v1096_v62 = vld [vmem:[%s1447_s18 + $0x6] sm:$0x3] }
  0x13   : > { %1251 = vmatpush3.bf16.msra.mxu0 %v1422_v5  ;;  %1257 = vmatpush3.bf16.msra.mxu1 %v1422_v5 }
  0x14   : > { %1252 = vmatprep.subr.bf16.mxu0 %v1382_v0  ;;  %1258 = vmatprep.subr.bf16.mxu1 %v1382_v0 }
  0x17   : > { %1254 = vmatpush3.bf16.msra.mxu0 %v1425_v7  ;;  %1260 = vmatpush3.bf16.msra.mxu1 %v1425_v7 }
  0x18   : > { %1261 = vmatprep.subr.bf16.mxu0 %v1382_v0  ;;  %1267 = vmatprep.subr.bf16.mxu1 %v1382_v0 }
  0x1a   : > { %1170 = vmatmul.mubr.f32.vlgmr.msra.gmra.mrb[0].mxu0 %v1384_v1 }
  0x1b   : > { %1263 = vmatpush3.bf16.msra.mxu0 %v1422_v5  ;;  %1191 = vmatprep.mubr.msk.f32.mxu0 %vm1383_vm0, %v1384_v1 }
  0x1c   : > { %1264 = vmatprep.subr.bf16.mxu0 %v1382_v0 }
  0x1f   : > { %1266 = vmatpush3.bf16.msra.mxu0 %v1425_v7 }
  0x20   : > { %1273 = vmatprep.subr.bf16.mxu0 %v1382_v0 }
  0xed   : > { %v239_v9 = vpop.f32.mrb[0].mxu0 }
  0xee   : > { %v243_v10 = vadd.f32 %v239_v9, %v168_v8  ;;  %v1171_v11 = vpop.f32.mrb[1].mxu0 }
  0xf0   : > { %1310 = vtanh.f32 %v243_v10  ;;  %v1087_v13 = vmul.f32 -1.442695, %v243_v10 }
  0xf2   : > { %1312 = vpow2.f32 %v1087_v13 }
  0xfa   : > { %v1311_v12 = vpop.eup %1310 }
  0xfb   : > { %253 = vrot.lane.b32.xlu0 %v1311_v12, %s1385_s19 }
  0xfc   : > { %v1313_v14 = vpop.eup %1312 }
  0xfd   : > { %v247_v15 = vadd.f32 1.0, %v1313_v14 }
  0xff   : > { %1314 = vrcp.f32 %v247_v15 }
 0x109   : > { %v1315_v16 = vpop.eup %1314 }
 0x10a   : > { %v251_v19 = vmul.f32 0.0, %v1315_v16 }
 0x16d   : > { %v254_v17 = vpop.permute.xlu0 %253 }
 0x16e   : > { %v256_v18 = vmul.f32 %v1315_v16, %v254_v17 }
 0x170   : > { %258 = vrot.lane.b32.xlu0 %v256_v18, %s1386_s20 }
 0x1e2   : > { %v259_v20 = vpop.permute.xlu0 %258 }
 0x1e3   : > { %v261_v21 = vadd.f32 %v259_v20, %v251_v19  ;;  %v1100_v20 = vld [vmem:[%s1447_s18 + $0x8] sm:$0x3] }
 0x1e5   : > { %1316 = vtanh.f32 %v261_v21 }
 0x1ef   : > { %v1317_v22 = vpop.eup %1316 }
 0x1f0   : > { %264 = vrot.lane.b32.xlu1 %v1317_v22, %s1385_s19 }
 0x262   : > { %v265_v23 = vpop.permute.xlu1 %264 }
 0x263   : > { %v267_v24 = vmul.f32 %v1315_v16, %v265_v23 }
 0x265   : > { %269 = vrot.lane.b32.xlu1 %v267_v24, %s1386_s20 }
 0x2d7   : > { %v270_v25 = vpop.permute.xlu1 %269 }
 0x2d8   : > { %273 = vst.msk [vmem:[%s1459_s23] sm:$0x3] %vm272_vm1, %v270_v25  ;;  %1181 = vmatmul.mubr.msk.f32.vlgmr.msra.gmra.mrb[0].mxu1 %vm169_vm2, %v270_v25 }
 0x2d9   : > { %1269 = vmatpush3.bf16.msra.mxu1 %v1422_v5  ;;  %1202 = vmatprep.mubr.msk.f32.mxu1 %vm1383_vm0, %v1384_v1 }
 0x2da   : > { %1270 = vmatprep.subr.bf16.mxu1 %v1382_v0 }
 0x2dd   : > { %1272 = vmatpush3.bf16.msra.mxu1 %v1425_v7 }
 0x2de   : > { %1279 = vmatprep.subr.bf16.mxu1 %v1382_v0 }
 0x3ab   : > { %v344_v27 = vpop.f32.mrb[0].mxu1 }
 0x3ac   : > { %v348_v28 = vadd.f32 %v1088_v26, %v344_v27  ;;  %v1182_v29 = vpop.f32.mrb[1].mxu1 }
 0x3ae   : > { %1318 = vtanh.f32 %v348_v28  ;;  %v1090_v31 = vmul.f32 -1.442695, %v348_v28 }
 0x3b0   : > { %1320 = vpow2.f32 %v1090_v31 }
 0x3b8   : > { %v1319_v30 = vpop.eup %1318 }
 0x3b9   : > { %358 = vrot.lane.b32.xlu0 %v1319_v30, %s1385_s19 }
 0x3ba   : > { %v1321_v32 = vpop.eup %1320 }
 0x3bb   : > { %v352_v33 = vadd.f32 1.0, %v1321_v32 }
 0x3bd   : > { %1322 = vrcp.f32 %v352_v33 }
 0x3c7   : > { %v1323_v34 = vpop.eup %1322 }
 0x3c8   : > { %v356_v37 = vmul.f32 %v1323_v34, %v261_v21 }
 0x42b   : > { %v359_v35 = vpop.permute.xlu0 %358 }
 0x42c   : > { %v361_v36 = vmul.f32 %v1323_v34, %v359_v35 }
 0x42e   : > { %363 = vrot.lane.b32.xlu1 %v361_v36, %s1386_s20 }
 0x4a0   : > { %v364_v38 = vpop.permute.xlu1 %363 }
 0x4a1   : > { %v366_v39 = vadd.f32 %v364_v38, %v356_v37  ;;  %v1104_v38 = vld [vmem:[%s1447_s18 + $0xa] sm:$0x3] }
 0x4a3   : > { %1324 = vtanh.f32 %v366_v39 }
 0x4ad   : > { %v1325_v40 = vpop.eup %1324 }
 0x4ae   : > { %369 = vrot.lane.b32.xlu0 %v1325_v40, %s1385_s19 }
 0x520   : > { %v370_v41 = vpop.permute.xlu0 %369 }
 0x521   : > { %v372_v42 = vmul.f32 %v1323_v34, %v370_v41 }
 0x523   : > { %374 = vrot.lane.b32.xlu1 %v372_v42, %s1386_s20 }
 0x595   : > { %v375_v43 = vpop.permute.xlu1 %374 }
 0x596   : > { %1091 = vst.msk [vmem:[%s1459_s23 + $0x2] sm:$0x3] %vm272_vm1, %v375_v43  ;;  %1192 = vmatmul.mubr.msk.f32.vlgmr.msra.gmra.mrb[2].mxu0 %vm169_vm2, %v375_v43 }
 0x597   : > { %1275 = vmatpush3.bf16.msra.mxu0 %v1422_v5  ;;  %1213 = vmatprep.mubr.msk.f32.mxu0 %vm1383_vm0, %v1384_v1 }
 0x598   : > { %1276 = vmatprep.subr.bf16.mxu0 %v1382_v0 }
 0x59b   : > { %1278 = vmatpush3.bf16.msra.mxu0 %v1425_v7 }
 0x59c   : > { %1285 = vmatprep.subr.bf16.mxu0 %v1382_v0 }
 0x669   : > { %v449_v45 = vpop.f32.mrb[2].mxu0 }
 0x66a   : > { %v453_v46 = vadd.f32 %v1092_v44, %v449_v45  ;;  %v1193_v47 = vpop.f32.mrb[3].mxu0 }
 0x66c   : > { %1326 = vtanh.f32 %v453_v46  ;;  %v1094_v49 = vmul.f32 -1.442695, %v453_v46 }
 0x66e   : > { %1328 = vpow2.f32 %v1094_v49 }
 0x676   : > { %v1327_v48 = vpop.eup %1326 }
 0x677   : > { %463 = vrot.lane.b32.xlu0 %v1327_v48, %s1385_s19 }
 0x678   : > { %v1329_v50 = vpop.eup %1328 }
 0x679   : > { %v457_v51 = vadd.f32 1.0, %v1329_v50 }
 0x67b   : > { %1330 = vrcp.f32 %v457_v51 }
 0x685   : > { %v1331_v52 = vpop.eup %1330 }
 0x686   : > { %v461_v55 = vmul.f32 %v1331_v52, %v366_v39 }
 0x6e9   : > { %v464_v53 = vpop.permute.xlu0 %463 }
 0x6ea   : > { %v466_v54 = vmul.f32 %v1331_v52, %v464_v53 }
 0x6ec   : > { %468 = vrot.lane.b32.xlu1 %v466_v54, %s1386_s20 }
 0x75e   : > { %v469_v56 = vpop.permute.xlu1 %468 }
 0x75f   : > { %v471_v57 = vadd.f32 %v469_v56, %v461_v55 }
 0x761   : > { %1332 = vtanh.f32 %v471_v57 }
 0x76b   : > { %v1333_v58 = vpop.eup %1332 }
 0x76c   : > { %474 = vrot.lane.b32.xlu0 %v1333_v58, %s1385_s19 }
 0x7de   : > { %v475_v59 = vpop.permute.xlu0 %474 }
 0x7df   : > { %v477_v60 = vmul.f32 %v1331_v52, %v475_v59  ;;  %v1108_v52 = vld [vmem:[%s1447_s18 + $0xc] sm:$0x3] }
 0x7e1   : > { %479 = vrot.lane.b32.xlu1 %v477_v60, %s1386_s20 }
 0x853   : > { %v480_v61 = vpop.permute.xlu1 %479 }
 0x854   : > { %1095 = vst.msk [vmem:[%s1459_s23 + $0x4] sm:$0x3] %vm272_vm1, %v480_v61  ;;  %1203 = vmatmul.mubr.msk.f32.vlgmr.msra.gmra.mrb[2].mxu1 %vm169_vm2, %v480_v61 }
 0x855   : > { %1281 = vmatpush3.bf16.msra.mxu1 %v1422_v5  ;;  %1224 = vmatprep.mubr.msk.f32.mxu1 %vm1383_vm0, %v1384_v1 }
 0x856   : > { %1282 = vmatprep.subr.bf16.mxu1 %v1382_v0 }
 0x859   : > { %1284 = vmatpush3.bf16.msra.mxu1 %v1425_v7 }
 0x85a   : > { %1291 = vmatprep.subr.bf16.mxu1 %v1382_v0 }
 0x927   : > { %v554_v63 = vpop.f32.mrb[2].mxu1 }
 0x928   : > { %v558_v2 = vadd.f32 %v1096_v62, %v554_v63  ;;  %v1204_v3 = vpop.f32.mrb[3].mxu1 }
 0x92a   : > { %1334 = vtanh.f32 %v558_v2  ;;  %v1098_v6 = vmul.f32 -1.442695, %v558_v2 }
 0x92c   : > { %1336 = vpow2.f32 %v1098_v6 }
 0x934   : > { %v1335_v4 = vpop.eup %1334 }
 0x935   : > { %568 = vrot.lane.b32.xlu0 %v1335_v4, %s1385_s19 }
 0x936   : > { %v1337_v8 = vpop.eup %1336 }
 0x937   : > { %v562_v9 = vadd.f32 1.0, %v1337_v8 }
 0x939   : > { %1338 = vrcp.f32 %v562_v9 }
 0x943   : > { %v1339_v10 = vpop.eup %1338 }
 0x944   : > { %v566_v13 = vmul.f32 %v1339_v10, %v471_v57 }
 0x9a7   : > { %v569_v11 = vpop.permute.xlu0 %568 }
 0x9a8   : > { %v571_v12 = vmul.f32 %v1339_v10, %v569_v11 }
 0x9aa   : > { %573 = vrot.lane.b32.xlu1 %v571_v12, %s1386_s20 }
 0xa1c   : > { %v574_v14 = vpop.permute.xlu1 %573 }
 0xa1d   : > { %v576_v15 = vadd.f32 %v574_v14, %v566_v13 }
 0xa1f   : > { %1340 = vtanh.f32 %v576_v15 }
 0xa29   : > { %v1341_v16 = vpop.eup %1340 }
 0xa2a   : > { %579 = vrot.lane.b32.xlu0 %v1341_v16, %s1385_s19 }
 0xa9c   : > { %v580_v17 = vpop.permute.xlu0 %579 }
 0xa9d   : > { %v582_v18 = vmul.f32 %v1339_v10, %v580_v17  ;;  %v1112_v10 = vld [vmem:[%s1447_s18 + $0xe] sm:$0x3] }
 0xa9f   : > { %584 = vrot.lane.b32.xlu1 %v582_v18, %s1386_s20 }
 0xb11   : > { %v585_v19 = vpop.permute.xlu1 %584 }
 0xb12   : > { %1099 = vst.msk [vmem:[%s1459_s23 + $0x6] sm:$0x3] %vm272_vm1, %v585_v19  ;;  %1214 = vmatmul.mubr.msk.f32.vlgmr.msra.gmra.mrb[4].mxu0 %vm169_vm2, %v585_v19 }
 0xb13   : > { %1287 = vmatpush3.bf16.msra.mxu0 %v1422_v5  ;;  %1235 = vmatprep.mubr.msk.f32.mxu0 %vm1383_vm0, %v1384_v1 }
 0xb14   : > { %1288 = vmatprep.subr.bf16.mxu0 %v1382_v0 }
 0xb17   : > { %1290 = vmatpush3.bf16.msra.mxu0 %v1425_v7 }
 0xbe5   : > { %v659_v21 = vpop.f32.mrb[4].mxu0 }
 0xbe6   : > { %v663_v22 = vadd.f32 %v1100_v20, %v659_v21  ;;  %v1215_v23 = vpop.f32.mrb[5].mxu0 }
 0xbe8   : > { %1342 = vtanh.f32 %v663_v22  ;;  %v1102_v25 = vmul.f32 -1.442695, %v663_v22 }
 0xbea   : > { %1344 = vpow2.f32 %v1102_v25 }
 0xbf2   : > { %v1343_v24 = vpop.eup %1342 }
 0xbf3   : > { %673 = vrot.lane.b32.xlu0 %v1343_v24, %s1385_s19 }
 0xbf4   : > { %v1345_v26 = vpop.eup %1344 }
 0xbf5   : > { %v667_v27 = vadd.f32 1.0, %v1345_v26 }
 0xbf7   : > { %1346 = vrcp.f32 %v667_v27 }
 0xc01   : > { %v1347_v28 = vpop.eup %1346 }
 0xc02   : > { %v671_v31 = vmul.f32 %v1347_v28, %v576_v15 }
 0xc65   : > { %v674_v29 = vpop.permute.xlu0 %673 }
 0xc66   : > { %v676_v30 = vmul.f32 %v1347_v28, %v674_v29 }
 0xc68   : > { %678 = vrot.lane.b32.xlu1 %v676_v30, %s1386_s20 }
 0xcda   : > { %v679_v32 = vpop.permute.xlu1 %678 }
 0xcdb   : > { %v681_v33 = vadd.f32 %v679_v32, %v671_v31 }
 0xcdd   : > { %1348 = vtanh.f32 %v681_v33 }
 0xce7   : > { %v1349_v34 = vpop.eup %1348 }
 0xce8   : > { %684 = vrot.lane.b32.xlu0 %v1349_v34, %s1385_s19 }
 0xd5a   : > { %v685_v35 = vpop.permute.xlu0 %684 }
 0xd5b   : > { %v687_v36 = vmul.f32 %v1347_v28, %v685_v35 }
 0xd5d   : > { %689 = vrot.lane.b32.xlu1 %v687_v36, %s1386_s20 }
 0xdcf   : > { %v690_v37 = vpop.permute.xlu1 %689 }
 0xdd0   : > { %1103 = vst.msk [vmem:[%s1459_s23 + $0x8] sm:$0x3] %vm272_vm1, %v690_v37  ;;  %1225 = vmatmul.mubr.msk.f32.vlgmr.msra.gmra.mrb[4].mxu1 %vm169_vm2, %v690_v37 }
 0xdd1   : > { %1293 = vmatpush3.bf16.msra.mxu1 %v1422_v5  ;;  %1246 = vmatprep.mubr.msk.f32.mxu1 %vm1383_vm0, %v1384_v1 }
 0xdd2   : > { %1294 = vmatprep.subr.bf16.mxu1 %v1382_v0 }
 0xdd5   : > { %1296 = vmatpush3.bf16.msra.mxu1 %v1425_v7 }
 0xea3   : > { %v764_v39 = vpop.f32.mrb[4].mxu1 }
 0xea4   : > { %v768_v40 = vadd.f32 %v1104_v38, %v764_v39  ;;  %v1226_v41 = vpop.f32.mrb[5].mxu1 }
 0xea6   : > { %1350 = vtanh.f32 %v768_v40  ;;  %v1106_v43 = vmul.f32 -1.442695, %v768_v40 }
 0xea8   : > { %1352 = vpow2.f32 %v1106_v43 }
 0xeb0   : > { %v1351_v42 = vpop.eup %1350 }
 0xeb1   : > { %778 = vrot.lane.b32.xlu0 %v1351_v42, %s1385_s19 }
 0xeb2   : > { %v1353_v44 = vpop.eup %1352 }
 0xeb3   : > { %v772_v45 = vadd.f32 1.0, %v1353_v44 }
 0xeb5   : > { %1354 = vrcp.f32 %v772_v45 }
 0xebf   : > { %v1355_v5 = vpop.eup %1354 }
 0xec0   : > { %v776_v7 = vmul.f32 %v1355_v5, %v681_v33 }
 0xf23   : > { %v779_v1 = vpop.permute.xlu0 %778 }
 0xf24   : > { %v781_v0 = vmul.f32 %v1355_v5, %v779_v1 }
 0xf26   : > { %783 = vrot.lane.b32.xlu1 %v781_v0, %s1386_s20 }
 0xf98   : > { %v784_v46 = vpop.permute.xlu1 %783 }
 0xf99   : > { %v786_v47 = vadd.f32 %v784_v46, %v776_v7 }
 0xf9b   : > { %1356 = vtanh.f32 %v786_v47 }
 0xfa5   : > { %v1357_v48 = vpop.eup %1356 }
 0xfa6   : > { %789 = vrot.lane.b32.xlu0 %v1357_v48, %s1385_s19 }
0x1018   : > { %v790_v49 = vpop.permute.xlu0 %789 }
0x1019   : > { %v792_v50 = vmul.f32 %v1355_v5, %v790_v49 }
0x101b   : > { %794 = vrot.lane.b32.xlu1 %v792_v50, %s1386_s20 }
0x108d   : > { %v795_v51 = vpop.permute.xlu1 %794 }
0x108e   : > { %1107 = vst.msk [vmem:[%s1459_s23 + $0xa] sm:$0x3] %vm272_vm1, %v795_v51  ;;  %1236 = vmatmul.mubr.msk.f32.vlgmr.msra.gmra.mrb[6].mxu0 %vm169_vm2, %v795_v51 }
0x1161   : > { %v869_v53 = vpop.f32.mrb[6].mxu0 }
0x1162   : > { %v873_v54 = vadd.f32 %v1108_v52, %v869_v53  ;;  %v1237_v55 = vpop.f32.mrb[7].mxu0 }
0x1164   : > { %1358 = vtanh.f32 %v873_v54  ;;  %v1110_v57 = vmul.f32 -1.442695, %v873_v54 }
0x1166   : > { %1360 = vpow2.f32 %v1110_v57 }
0x116e   : > { %v1359_v56 = vpop.eup %1358 }
0x116f   : > { %883 = vrot.lane.b32.xlu0 %v1359_v56, %s1385_s19 }
0x1170   : > { %v1361_v58 = vpop.eup %1360 }
0x1171   : > { %v877_v59 = vadd.f32 1.0, %v1361_v58 }
0x1173   : > { %1362 = vrcp.f32 %v877_v59 }
0x117d   : > { %v1363_v60 = vpop.eup %1362 }
0x117e   : > { %v881_v63 = vmul.f32 %v1363_v60, %v786_v47 }
0x11e1   : > { %v884_v61 = vpop.permute.xlu0 %883 }
0x11e2   : > { %v886_v62 = vmul.f32 %v1363_v60, %v884_v61 }
0x11e4   : > { %888 = vrot.lane.b32.xlu1 %v886_v62, %s1386_s20 }
0x1256   : > { %v889_v2 = vpop.permute.xlu1 %888 }
0x1257   : > { %v891_v3 = vadd.f32 %v889_v2, %v881_v63 }
0x1259   : > { %1364 = vtanh.f32 %v891_v3 }
0x1263   : > { %v1365_v4 = vpop.eup %1364 }
0x1264   : > { %894 = vrot.lane.b32.xlu0 %v1365_v4, %s1385_s19 }
0x12d6   : > { %v895_v6 = vpop.permute.xlu0 %894 }
0x12d7   : > { %v897_v8 = vmul.f32 %v1363_v60, %v895_v6 }
0x12d9   : > { %899 = vrot.lane.b32.xlu1 %v897_v8, %s1386_s20 }
0x134b   : > { %v900_v9 = vpop.permute.xlu1 %899 }
0x134c   : > { %1111 = vst.msk [vmem:[%s1459_s23 + $0xc] sm:$0x3] %vm272_vm1, %v900_v9  ;;  %1247 = vmatmul.mubr.msk.f32.vlgmr.msra.gmra.mrb[6].mxu1 %vm169_vm2, %v900_v9 }
0x141f   : > { %v974_v11 = vpop.f32.mrb[6].mxu1 }
0x1420   : > { %v978_v12 = vadd.f32 %v1112_v10, %v974_v11  ;;  %v1248_v13 = vpop.f32.mrb[7].mxu1 }
0x1422   : > { %1366 = vtanh.f32 %v978_v12  ;;  %v1114_v15 = vmul.f32 -1.442695, %v978_v12 }
0x1424   : > { %1368 = vpow2.f32 %v1114_v15 }
0x142c   : > { %v1367_v14 = vpop.eup %1366 }
0x142d   : > { %988 = vrot.lane.b32.xlu0 %v1367_v14, %s1385_s19 }
0x142e   : > { %v1369_v16 = vpop.eup %1368 }
0x142f   : > { %v982_v17 = vadd.f32 1.0, %v1369_v16 }
0x1431   : > { %1370 = vrcp.f32 %v982_v17 }
0x143b   : > { %v1371_v18 = vpop.eup %1370 }
0x143c   : > { %v986_v21 = vmul.f32 %v1371_v18, %v891_v3 }
0x149f   : > { %v989_v19 = vpop.permute.xlu0 %988 }
0x14a0   : > { %v991_v20 = vmul.f32 %v1371_v18, %v989_v19 }
0x14a2   : > { %993 = vrot.lane.b32.xlu1 %v991_v20, %s1386_s20 }
0x1514   : > { %v994_v22 = vpop.permute.xlu1 %993 }
0x1515   : > { %v996_v23 = vadd.f32 %v994_v22, %v986_v21 }
0x1517   : > { %1372 = vtanh.f32 %v996_v23 }
0x1521   : > { %v1373_v24 = vpop.eup %1372 }
0x1522   : > { %999 = vrot.lane.b32.xlu0 %v1373_v24, %s1385_s19 }
0x1594   : > { %v1000_v25 = vpop.permute.xlu0 %999 }
0x1595   : > { %v1002_v26 = vmul.f32 %v1371_v18, %v1000_v25 }
0x1597   : > { %1004 = vrot.lane.b32.xlu1 %v1002_v26, %s1386_s20 }
0x1609   : > { %v1005_v27 = vpop.permute.xlu1 %1004 }
0x160a   : > { %1115 = vst.msk [vmem:[%s1459_s23 + $0xe] sm:$0x3] %vm272_vm1, %v1005_v27 }
0x160b PF: > { %s12_s9 = sadd.s32 1, %s1380_s9  }
0x160c   : > { %p9_p4 = scmp.ge.s32.totalorder %s12_s9, 5  }
0x160e   :  { %11 = sbr.rel (!%p9_p4) target bundleno = 1 (0x1), region = 75 }

// kernel: lcrs_forward.3
= control target key start
LH: loop header
LB: loop body
LE: loop exit
PB: predicated region body
PF: predicated region fallthrough
CT: control target
= control target key end

     0   :  { %17 = vsyncpa [#allocation4], 0  ;;  %s6590_s0 = inlined_call_operand.vmem [shape: s32[3], index: 0, kind: input, shape index: {}]   ;;  %s6591_s1 = inlined_call_operand.vmem [shape: f32[3,2,8,32], index: 1, kind: input, shape index: {}]   ;;  %s6592_s2 = inlined_call_operand.vmem [shape: f32[2,32], index: 2, kind: input, shape index: {}]   ;;  %s6593_s3 = inlined_call_operand.vmem [shape: f32[4,32,32], index: 3, kind: input, shape index: {}]   ;;  %s6594_s4 = inlined_call_operand.vmem [shape: f32[4,1,32], index: 4, kind: input, shape index: {}]   ;;  %s6595_s5 = inlined_call_operand.vmem [shape: f32[4,32,32], index: 5, kind: input, shape index: {}]   ;;  %s6596_s6 = inlined_call_operand.vmem [shape: f32[4,1,32], index: 6, kind: input, shape index: {}]   ;;  %s6597_s7 = inlined_call_operand.vmem [shape: f32[4,32,32], index: 7, kind: input, shape index: {}]   ;;  %s6598_s8 = inlined_call_operand.vmem [shape: f32[4,32,32], index: 8, kind: input, shape index: {}]   ;;  %s6599_s9 = inlined_call_operand.vmem [shape: f32[4,1,32], index: 9, kind: input, shape index: {}]   ;;  %s6600_s10 = inlined_call_operand.vmem [shape: f32[128,3], index: 10, kind: input, shape index: {}]   ;;  %s6601_s11 = inlined_call_operand.vmem [shape: f32[1,3], index: 11, kind: input, shape index: {}]   ;;  %s6602_s12 = inlined_call_operand.hbm [shape: f32[2,3], index: 12, kind: output, shape index: {}]  }
   0x1   :  { %18 = vsyncpa [#allocation3], 0  ;;  %s25_s23 = sshll.u32 %s6590_s0, 4  ;;  %s26_s23 = int_to_ptr.vmem [resolvable:$true] %s25_s23 }
   0x2   :  { %s5597_s24 = scalar_lea.vmem %s26_s23, 16  ;;  %p5602_p1 = scmp.lt.s32.totalorder %s26_s23, %s26_s23 }
   0x3   :  { %p5598_p0 = scmp.ne.s32.totalorder %s26_s23, %s5597_s24  ;;  %p5603_p2 = scmp.lt.s32.totalorder %s5597_s24, %s5597_s24 }
   0x5   :  { %p5604_p3 = por %p5603_p2, %p5602_p1 }
   0x7   :  { %p5605_p4 = pnand %p5604_p3, %p5598_p0 }
   0x9   :  { %5608 = shalt.err (!%p5605_p4)
}
   0xa   :  { %s5635_s25 = smov [#allocation2]  }
   0xb   :  { %28 = dma.vmem_to_smem %s26_s23, 16, %s5635_s25, [#allocation4]  }
   0xc   :  { %5631 = dma.done.wait [#allocation4], 16  }
   0xd   :  { %5632 = vsyncadd [#allocation4], 4294967280 }
   0xe   :  { %54 = sfence }
   0xf   :  { %v167_v0 = vld [vmem:[%s6595_s5] sm:$0xff]  ;;  %v168_v1 = vld [vmem:[%s6595_s5 + $0x8] sm:$0xff]  ;;  %v169_v2 = vld [vmem:[%s6595_s5 + $0x10] sm:$0xff]  ;;  %v5636_v3 = vmov 0.0|0.0   ;;  %vm5637_vm0 = vmmov 0   ;;  %v5638_v6 = vmov 0.0   ;;  %v398_v32 = vlaneseq }
  0x10   :  { %5322 = vmatprep.subr.bf16.mxu1 %v5636_v3  ;;  %v5718_v4 = vpack.c.bf16 %v168_v1, %v167_v0  ;;  %v170_v5 = vld [vmem:[%s6595_s5 + $0x18] sm:$0xff]  ;;  %4815 = vmatprep.mubr.msk.f32.mxu1 %vm5637_vm0, %v5638_v6  ;;  %v82_v7 = vld [vmem:[%s6593_s3] sm:$0xff]  ;;  %v83_v8 = vld [vmem:[%s6593_s3 + $0x8] sm:$0xff]  ;;  %vm93_vm1 = vcmask 261120   ;;  %s79_s19 = sld [smem:[#allocation2]]  ;;  %vm403_vm3 = vcmask 57344  }
  0x11   :  { %5316 = vmatprep.subr.bf16.mxu0 %v5636_v3  ;;  %v84_v9 = vld [vmem:[%s6593_s3 + $0x10] sm:$0xff]  ;;  %v85_v10 = vld [vmem:[%s6593_s3 + $0x18] sm:$0xff]  ;;  %4804 = vmatprep.mubr.msk.f32.mxu0 %vm5637_vm0, %v5638_v6  ;;  %v5741_v11 = vpack.c.bf16 %v170_v5, %v169_v2  ;;  %v5743_v12 = vpack.c.bf16 %v83_v8, %v82_v7  ;;  %v245_v14 = vld [vmem:[%s6597_s7] sm:$0xff]  ;;  %v5810_v33 = vand.u32 127, %v398_v32  ;;  %vm415_vm4 = vcmask 64512   ;;  %s4438_s18 = sld [smem:[#allocation2 + $0x2]] }
  0x12   :  { %5324 = vmatpush3.bf16.msra.mxu1 %v5718_v4  ;;  %v5747_v13 = vpack.c.bf16 %v85_v10, %v84_v9  ;;  %v246_v15 = vld [vmem:[%s6597_s7 + $0x8] sm:$0xff]  ;;  %v5760_v16 = vld [vmem:[%s6592_s2] sm:$0x3]  ;;  %v247_v19 = vld [vmem:[%s6597_s7 + $0x10] sm:$0xff]  ;;  %vm4407_vm7 = vcmask 1040384   ;;  %vm4409_vm8 = vcmask 17408  }
  0x13   :  { %5325 = vmatprep.subr.bf16.mxu1 %v5636_v3  ;;  %5318 = vmatpush3.bf16.msra.mxu0 %v5743_v12  ;;  %v55_v17 = vld [vmem:[%s6591_s1] sm:$0xff]  ;;  %v5767_v18 = vpack.c.bf16 %v246_v15, %v245_v14  ;;  %v248_v20 = vld [vmem:[%s6597_s7 + $0x18] sm:$0xff]  ;;  %v490_v46 = vld [vmem:[%s6598_s8 + $0x8] sm:$0xff] }
  0x14   :  { %5319 = vmatprep.subr.bf16.mxu0 %v5636_v3  ;;  %v5785_v21 = vpack.c.bf16 %v248_v20, %v247_v19  ;;  %v5792_v22 = vld [vmem:[%s6596_s6] sm:$0x1]  ;;  %v491_v47 = vld [vmem:[%s6598_s8 + $0x10] sm:$0xff]  ;;  %v492_v49 = vld [vmem:[%s6598_s8 + $0x18] sm:$0xff] }
  0x15   :  { %v5797_v24 = vld [vmem:[%s6594_s4] ss:$0 sm:$0xff]  ;;  %v5836_v50 = vpack.c.bf16 %v492_v49, %v491_v47  ;;  %v4448_v55 = vld [vmem:[%s6593_s3 + $0x28] sm:$0xff]  ;;  %v4449_v56 = vld [vmem:[%s6593_s3 + $0x30] sm:$0xff] }
  0x16   :  { %5327 = vmatpush3.bf16.msra.mxu1 %v5741_v11  ;;  %v400_v34 = vstv %s79_s19  ;;  %v489_v45 = vld [vmem:[%s6598_s8] sm:$0xff]  ;;  %v4450_v58 = vld [vmem:[%s6593_s3 + $0x38] sm:$0xff]  ;;  %v4455_v61 = vld [vmem:[%s6595_s5 + $0x28] sm:$0xff]  ;;  %s4437_s19 = sld [smem:[#allocation2 + $0x1]] }
  0x17   :  { %4829 = vmatprep.subr.mxu1 %v5638_v6  ;;  %5321 = vmatpush3.bf16.msra.mxu0 %v5747_v13  ;;  %vm5813_vm2 = vcmp.lt.s32.totalorder %v5810_v33, %v400_v34  ;;  %v5830_v48 = vpack.c.bf16 %v490_v46, %v489_v45  ;;  %v4447_v54 = vld [vmem:[%s6593_s3 + $0x20] sm:$0xff]  ;;  %v5859_v59 = vpack.c.bf16 %v4450_v58, %v4449_v56  ;;  %v4456_v63 = vld [vmem:[%s6595_s5 + $0x30] sm:$0xff]  ;;  %v4457_v0 = vld [vmem:[%s6595_s5 + $0x38] sm:$0xff] }
  0x18   :  { %5328 = vmatprep.subr.bf16.mxu0 %v5636_v3  ;;  %v5853_v57 = vpack.c.bf16 %v4448_v55, %v4447_v54  ;;  %v4454_v60 = vld [vmem:[%s6595_s5 + $0x20] sm:$0xff]  ;;  %v5880_v5 = vpack.c.bf16 %v4457_v0, %v4456_v63  ;;  %v4461_v9 = vld [vmem:[%s6597_s7 + $0x28] sm:$0xff]  ;;  %v4462_v14 = vld [vmem:[%s6597_s7 + $0x30] sm:$0xff] }
  0x19   :  { %4816 = vmatmul.mubr.msk.f32.vlgmr.msra.gmra.mrb[0].mxu1 %vm93_vm1, %v5760_v16  ;;  %v5870_v62 = vpack.c.bf16 %v4455_v61, %v4454_v60  ;;  %v59_v7 = vld [vmem:[%s6591_s1 + $0x20] sm:$0xff]  ;;  %v4463_v15 = vld [vmem:[%s6597_s7 + $0x38] sm:$0xff]  ;;  %v4469_v49 = vld [vmem:[%s6598_s8 + $0x28] sm:$0xff] }
  0x1a   :  { %4831 = vmatprep.mubr.msk.f32.mxu1 %vm5637_vm0, %v5638_v6  ;;  %4805 = vmatmul.mubr.msk.f32.vlgmr.msra.gmra.mrb[0].mxu0 %vm93_vm1, %v55_v17  ;;  %v4460_v8 = vld [vmem:[%s6597_s7 + $0x20] sm:$0xff]  ;;  %v5913_v17 = vpack.c.bf16 %v4463_v15, %v4462_v14  ;;  %v4475_v61 = vld [vmem:[%s6593_s3 + $0x48] sm:$0xff]  ;;  %v4476_v63 = vld [vmem:[%s6593_s3 + $0x50] sm:$0xff] }
  0x1b   :  { %5330 = vmatpush3.bf16.msra.mxu0 %v5767_v18  ;;  %4826 = vmatprep.mubr.msk.f32.mxu0 %vm5637_vm0, %v5638_v6  ;;  %v5901_v10 = vpack.c.bf16 %v4461_v9, %v4460_v8  ;;  %v4468_v47 = vld [vmem:[%s6598_s8 + $0x20] sm:$0xff]  ;;  %v4482_v8 = vld [vmem:[%s6595_s5 + $0x48] sm:$0xff]  ;;  %v4483_v14 = vld [vmem:[%s6595_s5 + $0x50] sm:$0xff] }
  0x1c   :  { %5331 = vmatprep.subr.bf16.mxu0 %v5636_v3  ;;  %v4474_v60 = vld [vmem:[%s6593_s3 + $0x40] sm:$0xff]  ;;  %v4484_v15 = vld [vmem:[%s6595_s5 + $0x58] sm:$0xff] }
  0x1d   :  { %v5981_v0 = vpack.c.bf16 %v4475_v61, %v4474_v60 }
  0x1f   :  { %5333 = vmatpush3.bf16.msra.mxu0 %v5785_v21 }
  0x20   :  { %5334 = vmatprep.subr.bf16.mxu0 %v5636_v3 }
  0xec   :  { %v241_v23 = vpop.f32.mrb[0].mxu1 }
  0xed   :  { %v242_v25 = vadd.f32 %v241_v23, %v5792_v22  ;;  %v4817_v26 = vpop.f32.mrb[1].mxu1  ;;  %v163_v27 = vpop.f32.mrb[0].mxu0  ;;  %v5922_v23 = vld [vmem:[%s6596_s6 + $0x1] sm:$0x1] }
  0xee   :  { %v164_v28 = vadd.f32 %v5797_v24, %v163_v27  ;;  %v4806_v29 = vpop.f32.mrb[1].mxu0 }
  0xef   :  { %4827 = vmatmul.mubr.msk.f32.vlgmr.msra.gmra.mrb[2].mxu0 %vm93_vm1, %v242_v25 }
  0xf0   :  { %4847 = vmatprep.mubr.msk.f32.mxu0 %vm5637_vm0, %v5638_v6  ;;  %4830 = vmatpush3.xpose.msk.msra.mxu1 %vm93_vm1, %v164_v28 }
  0xf1   :  { %4834 = vmatprep.subr.mxu1 %v5638_v6  ;;  %5336 = vmatpush3.bf16.msra.mxu0 %v5830_v48 }
  0xf2   :  { %5337 = vmatprep.subr.bf16.mxu0 %v5636_v3 }
  0xf5   :  { %5339 = vmatpush3.bf16.msra.mxu0 %v5836_v50 }
  0xf6   :  { %5346 = vmatprep.subr.bf16.mxu0 %v5636_v3 }
 0x1c2   :  { %v318_v30 = vpop.f32.mrb[2].mxu0 }
 0x1c3   :  { %v4828_v31 = vpop.f32.mrb[3].mxu0  ;;  %4832 = vmatmul.mubr.msk.f32.vlgmr.msra.gmra.mrb[2].mxu1 %vm93_vm1, %v318_v30 }
 0x1c4   :  { %4835 = vmatpush3.msra.mxu1 %v164_v28  ;;  %4836 = vmatprep.mubr.msk.f32.mxu1 %vm5637_vm0, %v5638_v6  ;;  %v5931_v28 = vld [vmem:[%s6594_s4 + $0x1] ss:$0 sm:$0xff] }
 0x1c5   :  { %5340 = vmatprep.subr.bf16.mxu1 %v5636_v3 }
 0x296   :  { %v394_v36 = vpop.f32.mrb[2].mxu1 }
 0x297   :  { %v402_v37 = vsel %vm5813_vm2, %v394_v36, -1e+30  ;;  %v4833_v38 = vpop.f32.mrb[3].mxu1  ;;  %v884_v36 = vstv %s4438_s18 }
 0x298   :  { %v404_v39 = vsel %vm403_vm3, %v402_v37, -inf  ;;  %vm5941_vm5 = vcmp.lt.s32.totalorder %v5810_v33, %v884_v36  ;;  %v4490_v36 = vld [vmem:[%s6597_s7 + $0x58] sm:$0xff] }
 0x299   :  { %405 = vmax.xlane.f32.xlu0 %v404_v39 }
 0x326   :  { %v406_v40 = vpop.xlane.xlu0 %405 }
 0x327   :  { %v407_v41 = vsub.f32 %v402_v37, %v406_v40 }
 0x329   :  { %v408_v42 = vmul.f32 1.442695, %v407_v41 }
 0x32b   :  { %5561 = vpow2.f32 %v408_v42 }
 0x335   :  { %v5562_v43 = vpop.eup %5561 }
 0x336   :  { %v410_v44 = vsel %vm403_vm3, %v5562_v43, 0.0 }
 0x337   :  { %411 = vadd.xlane.f32.xlu0 %v410_v44 }
 0x3c4   :  { %v412_v51 = vpop.xlane.xlu0 %411 }
 0x3c5   :  { %5563 = vrcp.f32 %v412_v51  ;;  %v4470_v51 = vld [vmem:[%s6598_s8 + $0x30] sm:$0xff] }
 0x3cf   :  { %v5564_v52 = vpop.eup %5563 }
 0x3d0   :  { %v414_v53 = vmul.f32 %v5564_v52, %v5562_v43  ;;  %v5958_v52 = vpack.c.bf16 %v4469_v49, %v4468_v47 }
 0x3d2   :  { %4837 = vmatmul.mubr.msk.f32.vlgmr.msra.gmra.mrb[4].mxu1 %vm415_vm4, %v414_v53  ;;  %v4471_v53 = vld [vmem:[%s6598_s8 + $0x38] sm:$0xff] }
 0x3d3   :  { %4858 = vmatprep.mubr.msk.f32.mxu1 %vm5637_vm0, %v5638_v6  ;;  %5342 = vmatpush3.bf16.msra.mxu1 %v5853_v57  ;;  %v5964_v54 = vpack.c.bf16 %v4471_v53, %v4470_v51 }
 0x3d4   :  { %5343 = vmatprep.subr.bf16.mxu1 %v5636_v3 }
 0x3d7   :  { %5345 = vmatpush3.bf16.msra.mxu1 %v5859_v59 }
 0x3d8   :  { %5352 = vmatprep.subr.bf16.mxu1 %v5636_v3 }
 0x3da   :  { %4859 = vmatmul.mubr.msk.f32.vlgmr.msra.gmra.mrb[6].mxu1 %vm93_vm1, %v59_v7  ;;  %v4481_v7 = vld [vmem:[%s6595_s5 + $0x40] sm:$0xff] }
 0x3db   :  { %4880 = vmatprep.mubr.msk.f32.mxu1 %vm5637_vm0, %v5638_v6  ;;  %5354 = vmatpush3.bf16.msra.mxu1 %v5901_v10  ;;  %v5998_v9 = vpack.c.bf16 %v4482_v8, %v4481_v7 }
 0x3dc   :  { %5355 = vmatprep.subr.bf16.mxu1 %v5636_v3 }
 0x3df   :  { %5357 = vmatpush3.bf16.msra.mxu1 %v5913_v17 }
 0x3e0   :  { %4883 = vmatprep.subr.mxu1 %v5638_v6 }
 0x4a5   :  { %v485_v1 = vpop.f32.mrb[4].mxu1 }
 0x4a6   :  { %v4838_v2 = vpop.f32.mrb[5].mxu1  ;;  %4848 = vmatmul.mubr.msk.f32.vlgmr.msra.gmra.mrb[4].mxu0 %vm93_vm1, %v485_v1  ;;  %v4477_v1 = vld [vmem:[%s6593_s3 + $0x58] sm:$0xff] }
 0x4a7   :  { %5348 = vmatpush3.bf16.msra.mxu0 %v5870_v62  ;;  %4869 = vmatprep.mubr.msk.f32.mxu0 %vm5637_vm0, %v5638_v6  ;;  %v5987_v2 = vpack.c.bf16 %v4477_v1, %v4476_v63 }
 0x4a8   :  { %5349 = vmatprep.subr.bf16.mxu0 %v5636_v3 }
 0x4ab   :  { %5351 = vmatpush3.bf16.msra.mxu0 %v5880_v5 }
 0x4ac   :  { %5358 = vmatprep.subr.bf16.mxu0 %v5636_v3 }
 0x4ad   :  { %v649_v29 = vpop.f32.mrb[6].mxu1 }
 0x4ae   :  { %4870 = vmatmul.mubr.msk.f32.vlgmr.msra.gmra.mrb[6].mxu0 %vm93_vm1, %v5760_v16  ;;  %v650_v30 = vadd.f32 %v5931_v28, %v649_v29  ;;  %v4860_v31 = vpop.f32.mrb[7].mxu1 }
 0x4af   :  { %4901 = vmatprep.mubr.msk.f32.mxu0 %vm5637_vm0, %v5638_v6  ;;  %5360 = vmatpush3.bf16.msra.mxu0 %v5958_v52  ;;  %v4487_v31 = vld [vmem:[%s6597_s7 + $0x40] sm:$0xff] }
 0x4b0   :  { %5361 = vmatprep.subr.bf16.mxu0 %v5636_v3 }
 0x4b3   :  { %5363 = vmatpush3.bf16.msra.mxu0 %v5964_v54 }
 0x4b4   :  { %5370 = vmatprep.subr.bf16.mxu0 %v5636_v3 }
 0x579   :  { %v5917_v19 = vpop.f32.mrb[4].mxu0 }
 0x57a   :  { %v4849_v20 = vpop.f32.mrb[5].mxu0 }
 0x581   :  { %v726_v25 = vpop.f32.mrb[6].mxu0 }
 0x582   :  { %v727_v26 = vadd.f32 %v5922_v23, %v726_v25  ;;  %v4871_v27 = vpop.f32.mrb[7].mxu0 }
 0x583   :  { %v6016_v27 = vld [vmem:[%s6599_s9] sm:$0x1] }
 0x584   :  { %4881 = vmatmul.mubr.msk.f32.vlgmr.msra.gmra.mrb[8].mxu1 %vm93_vm1, %v727_v26  ;;  %v6008_v26 = vpack.c.bf16 %v4484_v15, %v4483_v14  ;;  %v6021_v29 = vadd.f32 %v5917_v19, %v6016_v27  ;;  %v4488_v19 = vld [vmem:[%s6597_s7 + $0x48] sm:$0xff] }
 0x585   :  { %4885 = vmatprep.mubr.msk.f32.mxu1 %vm5637_vm0, %v5638_v6  ;;  %4884 = vmatpush3.xpose.msk.msra.mxu1 %vm93_vm1, %v650_v30 }
 0x586   :  { %4888 = vmatprep.subr.mxu1 %v5638_v6 }
 0x657   :  { %v804_v32 = vpop.f32.mrb[8].mxu1 }
 0x658   :  { %v4882_v34 = vpop.f32.mrb[9].mxu1  ;;  %4886 = vmatmul.mubr.msk.f32.vlgmr.msra.gmra.mrb[10].mxu1 %vm93_vm1, %v804_v32  ;;  %v6041_v32 = vpack.c.bf16 %v4488_v19, %v4487_v31  ;;  %v4498_v19 = vld [vmem:[%s6598_s8 + $0x58] sm:$0xff] }
 0x659   :  { %4889 = vmatpush3.msra.mxu1 %v650_v30  ;;  %4890 = vmatprep.mubr.msk.f32.mxu1 %vm5637_vm0, %v5638_v6  ;;  %v6031_v30 = vld [vmem:[%s6591_s1 + $0x10] sm:$0xff] }
 0x65a   :  { %5364 = vmatprep.subr.bf16.mxu1 %v5636_v3  ;;  %v4489_v34 = vld [vmem:[%s6597_s7 + $0x50] sm:$0xff] }
 0x72b   :  { %v880_v38 = vpop.f32.mrb[10].mxu1 }
 0x72c   :  { %v886_v39 = vsel %vm5941_vm5, %v880_v38, -1e+30  ;;  %v4887_v40 = vpop.f32.mrb[11].mxu1  ;;  %v6053_v38 = vpack.c.bf16 %v4490_v36, %v4489_v34 }
 0x72d   :  { %v887_v41 = vsel %vm403_vm3, %v886_v39, -inf }
 0x72e   :  { %888 = vmax.xlane.f32.xlu1 %v887_v41  ;;  %v6062_v41 = vld [vmem:[%s6596_s6 + $0x2] sm:$0x1] }
 0x7bb   :  { %v889_v42 = vpop.xlane.xlu1 %888 }
 0x7bc   :  { %v890_v43 = vsub.f32 %v886_v39, %v889_v42 }
 0x7be   :  { %v891_v44 = vmul.f32 1.442695, %v890_v43 }
 0x7c0   :  { %5565 = vpow2.f32 %v891_v44 }
 0x7ca   :  { %v5566_v45 = vpop.eup %5565 }
 0x7cb   :  { %v893_v46 = vsel %vm403_vm3, %v5566_v45, 0.0 }
 0x7cc   :  { %894 = vadd.xlane.f32.xlu1 %v893_v46 }
 0x859   :  { %v895_v55 = vpop.xlane.xlu1 %894 }
 0x85a   :  { %5567 = vrcp.f32 %v895_v55  ;;  %v1371_v55 = vstv %s4437_s19 }
 0x85b   :  { %vm6081_vm6 = vcmp.lt.s32.totalorder %v5810_v33, %v1371_v55  ;;  %v4495_v33 = vld [vmem:[%s6598_s8 + $0x40] sm:$0xff]  ;;  %v4509_v55 = vld [vmem:[%s6595_s5 + $0x68] sm:$0xff] }
 0x864   :  { %v5568_v56 = vpop.eup %5567 }
 0x865   :  { %v897_v58 = vmul.f32 %v5568_v56, %v5566_v45  ;;  %v6071_v45 = vld [vmem:[%s6594_s4 + $0x2] ss:$0 sm:$0xff] }
 0x867   :  { %4891 = vmatmul.mubr.msk.f32.vlgmr.msra.gmra.mrb[12].mxu1 %vm415_vm4, %v897_v58 }
 0x868   :  { %4912 = vmatprep.mubr.msk.f32.mxu1 %vm5637_vm0, %v5638_v6  ;;  %5366 = vmatpush3.bf16.msra.mxu1 %v5981_v0 }
 0x869   :  { %5367 = vmatprep.subr.bf16.mxu1 %v5636_v3 }
 0x86c   :  { %5369 = vmatpush3.bf16.msra.mxu1 %v5987_v2 }
 0x86d   :  { %5376 = vmatprep.subr.bf16.mxu1 %v5636_v3 }
 0x86f   :  { %4913 = vmatmul.mubr.msk.f32.vlgmr.msra.gmra.mrb[14].mxu1 %vm93_vm1, %v6031_v30 }
 0x870   :  { %4934 = vmatprep.mubr.msk.f32.mxu1 %vm5637_vm0, %v5638_v6  ;;  %5378 = vmatpush3.bf16.msra.mxu1 %v6041_v32 }
 0x871   :  { %5379 = vmatprep.subr.bf16.mxu1 %v5636_v3 }
 0x874   :  { %5381 = vmatpush3.bf16.msra.mxu1 %v6053_v38 }
 0x875   :  { %4942 = vmatprep.subr.mxu1 %v5638_v6 }
 0x93a   :  { %v967_v20 = vpop.f32.mrb[12].mxu1 }
 0x93b   :  { %v4892_v25 = vpop.f32.mrb[13].mxu1  ;;  %4902 = vmatmul.mubr.msk.f32.vlgmr.msra.gmra.mrb[8].mxu0 %vm93_vm1, %v967_v20  ;;  %v4496_v20 = vld [vmem:[%s6598_s8 + $0x48] sm:$0xff] }
 0x93c   :  { %5372 = vmatpush3.bf16.msra.mxu0 %v5998_v9  ;;  %4923 = vmatprep.mubr.msk.f32.mxu0 %vm5637_vm0, %v5638_v6  ;;  %v4497_v25 = vld [vmem:[%s6598_s8 + $0x50] sm:$0xff]  ;;  %v6098_v31 = vpack.c.bf16 %v4496_v20, %v4495_v33  ;;  %v4517_v20 = vld [vmem:[%s6597_s7 + $0x78] sm:$0xff] }
 0x93d   :  { %5373 = vmatprep.subr.bf16.mxu0 %v5636_v3  ;;  %v6104_v34 = vpack.c.bf16 %v4498_v19, %v4497_v25  ;;  %v6195_v19 = vld [vmem:[%s6594_s4 + $0x3] ss:$0 sm:$0xff] }
 0x940   :  { %5375 = vmatpush3.bf16.msra.mxu0 %v6008_v26 }
 0x941   :  { %4937 = vmatprep.subr.mxu0 %v5638_v6 }
 0x942   :  { %v1133_v46 = vpop.f32.mrb[14].mxu1 }
 0x943   :  { %4924 = vmatmul.mubr.msk.f32.vlgmr.msra.gmra.mrb[10].mxu0 %vm93_vm1, %v6021_v29  ;;  %v1134_v47 = vadd.f32 %v6071_v45, %v1133_v46  ;;  %v4914_v49 = vpop.f32.mrb[15].mxu1  ;;  %v4503_v46 = vld [vmem:[%s6593_s3 + $0x70] sm:$0xff] }
 0x944   :  { %4939 = vmatprep.mubr.msk.f32.mxu0 %vm5637_vm0, %v5638_v6  ;;  %v4504_v49 = vld [vmem:[%s6593_s3 + $0x78] sm:$0xff] }
 0x949   :  { %4938 = vmatpush3.xpose.msk.msra.mxu0 %vm93_vm1, %v1134_v47 }
 0x94a   :  { %5382 = vmatprep.subr.bf16.mxu0 %v5636_v3 }
 0xa0e   :  { %v6057_v39 = vpop.f32.mrb[8].mxu0 }
 0xa0f   :  { %v4903_v40 = vpop.f32.mrb[9].mxu0 }
 0xa16   :  { %v1213_v42 = vpop.f32.mrb[10].mxu0 }
 0xa17   :  { %v1214_v43 = vadd.f32 %v6062_v41, %v1213_v42  ;;  %v4925_v44 = vpop.f32.mrb[11].mxu0 }
 0xa18   :  { %v4502_v44 = vld [vmem:[%s6593_s3 + $0x68] sm:$0xff] }
 0xa19   :  { %4935 = vmatmul.mubr.msk.f32.vlgmr.msra.gmra.mrb[16].mxu1 %vm93_vm1, %v1214_v43  ;;  %v4501_v43 = vld [vmem:[%s6593_s3 + $0x60] sm:$0xff] }
 0xa1a   :  { %4944 = vmatprep.mubr.msk.f32.mxu1 %vm5637_vm0, %v5638_v6  ;;  %4943 = vmatpush3.msra.mxu1 %v1134_v47  ;;  %v6121_v47 = vpack.c.bf16 %v4502_v44, %v4501_v43 }
 0xa1b   :  { %5388 = vmatprep.subr.bf16.mxu1 %v5636_v3 }
 0xaec   :  { %v1291_v51 = vpop.f32.mrb[16].mxu1 }
 0xaed   :  { %v4936_v53 = vpop.f32.mrb[17].mxu1  ;;  %4940 = vmatmul.mubr.msk.f32.vlgmr.msra.gmra.mrb[12].mxu0 %vm93_vm1, %v1291_v51  ;;  %v6127_v51 = vpack.c.bf16 %v4504_v49, %v4503_v46  ;;  %v6203_v46 = vld [vmem:[%s6596_s6 + $0x3] sm:$0x1] }
 0xaee   :  { %4955 = vmatprep.mubr.msk.f32.mxu0 %vm5637_vm0, %v5638_v6  ;;  %5384 = vmatpush3.bf16.msra.mxu0 %v6098_v31  ;;  %v4508_v53 = vld [vmem:[%s6595_s5 + $0x60] sm:$0xff] }
 0xaef   :  { %5385 = vmatprep.subr.bf16.mxu0 %v5636_v3 }
 0xaf2   :  { %5387 = vmatpush3.bf16.msra.mxu0 %v6104_v34 }
 0xaf3   :  { %5394 = vmatprep.subr.bf16.mxu0 %v5636_v3 }
 0xbc0   :  { %v1367_v58 = vpop.f32.mrb[12].mxu0 }
 0xbc1   :  { %v1373_v60 = vsel %vm6081_vm6, %v1367_v58, -1e+30  ;;  %v4941_v61 = vpop.f32.mrb[13].mxu0  ;;  %v6142_v58 = vpack.c.bf16 %v4509_v55, %v4508_v53 }
 0xbc2   :  { %v1374_v63 = vsel %vm403_vm3, %v1373_v60, -inf }
 0xbc3   :  { %1375 = vmax.xlane.f32.xlu0 %v1374_v63 }
 0xc50   :  { %v1376_v1 = vpop.xlane.xlu0 %1375 }
 0xc51   :  { %v1377_v7 = vsub.f32 %v1373_v60, %v1376_v1  ;;  %v4510_v60 = vld [vmem:[%s6595_s5 + $0x70] sm:$0xff] }
 0xc53   :  { %v1378_v8 = vmul.f32 1.442695, %v1377_v7  ;;  %v6160_v7 = vld [vmem:[%s6599_s9 + $0x1] sm:$0x1] }
 0xc55   :  { %5569 = vpow2.f32 %v1378_v8  ;;  %v6165_v8 = vadd.f32 %v6160_v7, %v6057_v39  ;;  %v4516_v39 = vld [vmem:[%s6597_s7 + $0x70] sm:$0xff] }
 0xc56   :  { %v6188_v25 = vpack.c.bf16 %v4517_v20, %v4516_v39 }
 0xc5f   :  { %v5570_v14 = vpop.eup %5569 }
 0xc60   :  { %v1380_v15 = vsel %vm403_vm3, %v5570_v14, 0.0 }
 0xc61   :  { %1381 = vadd.xlane.f32.xlu1 %v1380_v15  ;;  %v4515_v15 = vld [vmem:[%s6597_s7 + $0x68] sm:$0xff] }
 0xcee   :  { %v1382_v36 = vpop.xlane.xlu1 %1381 }
 0xcef   :  { %5571 = vrcp.f32 %v1382_v36 }
 0xcf9   :  { %v5572_v40 = vpop.eup %5571 }
 0xcfa   :  { %v1384_v42 = vmul.f32 %v5572_v40, %v5570_v14  ;;  %v4514_v14 = vld [vmem:[%s6597_s7 + $0x60] sm:$0xff] }
 0xcfb   :  { %v6178_v33 = vpack.c.bf16 %v4515_v15, %v4514_v14 }
 0xcfc   :  { %4945 = vmatmul.mubr.msk.f32.vlgmr.msra.gmra.mrb[18].mxu1 %vm415_vm4, %v1384_v42 }
 0xcfd   :  { %4966 = vmatprep.mubr.msk.f32.mxu1 %vm5637_vm0, %v5638_v6  ;;  %5390 = vmatpush3.bf16.msra.mxu1 %v6121_v47 }
 0xcfe   :  { %5391 = vmatprep.subr.bf16.mxu1 %v5636_v3 }
 0xd01   :  { %5393 = vmatpush3.bf16.msra.mxu1 %v6127_v51 }
 0xd02   :  { %5400 = vmatprep.subr.bf16.mxu1 %v5636_v3 }
 0xd04   :  { %4967 = vmatmul.mubr.msk.f32.vlgmr.msra.gmra.mrb[20].mxu1 %vm93_vm1, %v6031_v30  ;;  %v4511_v30 = vld [vmem:[%s6595_s5 + $0x78] sm:$0xff] }
 0xd05   :  { %4988 = vmatprep.mubr.msk.f32.mxu1 %vm5637_vm0, %v5638_v6  ;;  %v6152_v1 = vpack.c.bf16 %v4511_v30, %v4510_v60  ;;  %5402 = vmatpush3.bf16.msra.mxu1 %v6178_v33 }
 0xd06   :  { %5403 = vmatprep.subr.bf16.mxu1 %v5636_v3 }
 0xd09   :  { %5405 = vmatpush3.bf16.msra.mxu1 %v6188_v25 }
 0xd0a   :  { %4996 = vmatprep.subr.mxu1 %v5638_v6 }
 0xdcf   :  { %v1454_v61 = vpop.f32.mrb[18].mxu1 }
 0xdd0   :  { %v4946_v63 = vpop.f32.mrb[19].mxu1  ;;  %4956 = vmatmul.mubr.msk.f32.vlgmr.msra.gmra.mrb[14].mxu0 %vm93_vm1, %v1454_v61 }
 0xdd1   :  { %5396 = vmatpush3.bf16.msra.mxu0 %v6142_v58  ;;  %4977 = vmatprep.mubr.msk.f32.mxu0 %vm5637_vm0, %v5638_v6 }
 0xdd2   :  { %5397 = vmatprep.subr.bf16.mxu0 %v5636_v3 }
 0xdd5   :  { %5399 = vmatpush3.bf16.msra.mxu0 %v6152_v1 }
 0xdd6   :  { %4991 = vmatprep.subr.mxu0 %v5638_v6 }
 0xdd7   :  { %v1617_v36 = vpop.f32.mrb[20].mxu1 }
 0xdd8   :  { %4978 = vmatmul.mubr.msk.f32.vlgmr.msra.gmra.mrb[16].mxu0 %vm93_vm1, %v6165_v8  ;;  %v1618_v40 = vadd.f32 %v6195_v19, %v1617_v36  ;;  %v4968_v42 = vpop.f32.mrb[21].mxu1 }
 0xdd9   :  { %4993 = vmatprep.mubr.msk.f32.mxu0 %vm5637_vm0, %v5638_v6 }
 0xdde   :  { %4992 = vmatpush3.xpose.msk.msra.mxu0 %vm93_vm1, %v1618_v40 }
 0xddf   :  { %5406 = vmatprep.subr.bf16.mxu0 %v5636_v3 }
 0xea3   :  { %v1534_v43 = vpop.f32.mrb[14].mxu0 }
 0xea4   :  { %v4957_v44 = vpop.f32.mrb[15].mxu0 }
 0xea5   :  { %v4522_v44 = vld [vmem:[%s6598_s8 + $0x60] sm:$0xff] }
 0xeab   :  { %v1697_v49 = vpop.f32.mrb[16].mxu0 }
 0xeac   :  { %v1698_v53 = vadd.f32 %v6203_v46, %v1697_v49  ;;  %v4979_v55 = vpop.f32.mrb[17].mxu0  ;;  %v4523_v49 = vld [vmem:[%s6598_s8 + $0x68] sm:$0xff] }
 0xead   :  { %v6226_v55 = vpack.c.bf16 %v4523_v49, %v4522_v44 }
 0xeae   :  { %4989 = vmatmul.mubr.msk.f32.vlgmr.msra.gmra.mrb[22].mxu1 %vm93_vm1, %v1698_v53  ;;  %v4524_v53 = vld [vmem:[%s6598_s8 + $0x70] sm:$0xff] }
 0xeaf   :  { %4997 = vmatpush3.msra.mxu1 %v1618_v40  ;;  %4998 = vmatprep.mubr.msk.f32.mxu1 %vm5637_vm0, %v5638_v6 }
 0xeb0   :  { %5412 = vmatprep.subr.bf16.mxu1 %v5636_v3 }
 0xf81   :  { %v1775_v60 = vpop.f32.mrb[22].mxu1 }
 0xf82   :  { %v4990_v30 = vpop.f32.mrb[23].mxu1  ;;  %4994 = vmatmul.mubr.msk.f32.vlgmr.msra.gmra.mrb[18].mxu0 %vm93_vm1, %v1775_v60  ;;  %v4525_v60 = vld [vmem:[%s6598_s8 + $0x78] sm:$0xff] }
 0xf83   :  { %5009 = vmatprep.mubr.msk.f32.mxu0 %vm5637_vm0, %v5638_v6  ;;  %5408 = vmatpush3.bf16.msra.mxu0 %v6226_v55  ;;  %v6232_v30 = vpack.c.bf16 %v4525_v60, %v4524_v53  ;;  %v70_v53 = vld [vmem:[%s6600_s10 + $0x40] sm:$0xff]  ;;  %v71_v60 = vld [vmem:[%s6600_s10 + $0x48] sm:$0xff] }
 0xf84   :  { %5409 = vmatprep.subr.bf16.mxu0 %v5636_v3 }
 0xf87   :  { %5411 = vmatpush3.bf16.msra.mxu0 %v6232_v30 }
 0xf88   :  { %5418 = vmatprep.subr.bf16.mxu0 %v5636_v3 }
0x1055   :  { %v1851_v61 = vpop.f32.mrb[18].mxu0 }
0x1056   :  { %v1855_v63 = vsel %vm6081_vm6, %v1851_v61, -1e+30  ;;  %v4995_v14 = vpop.f32.mrb[19].mxu0 }
0x1057   :  { %v1856_v15 = vsel %vm403_vm3, %v1855_v63, -inf  ;;  %v67_v14 = vld [vmem:[%s6600_s10 + $0x28] sm:$0xff] }
0x1058   :  { %1857 = vmax.xlane.f32.xlu0 %v1856_v15 }
0x10e5   :  { %v1858_v39 = vpop.xlane.xlu0 %1857 }
0x10e6   :  { %v1859_v20 = vsub.f32 %v1855_v63, %v1858_v39  ;;  %v66_v63 = vld [vmem:[%s6600_s10 + $0x20] sm:$0xff] }
0x10e7   :  { %v6243_v39 = vpack.c.bf16 %v67_v14, %v66_v63  ;;  %v63_v63 = vld [vmem:[%s6600_s10 + $0x8] sm:$0xff] }
0x10e8   :  { %v1860_v36 = vmul.f32 1.442695, %v1859_v20 }
0x10ea   :  { %5573 = vpow2.f32 %v1860_v36  ;;  %v68_v36 = vld [vmem:[%s6600_s10 + $0x30] sm:$0xff] }
0x10f4   :  { %v5574_v40 = vpop.eup %5573 }
0x10f5   :  { %v1862_v42 = vsel %vm403_vm3, %v5574_v40, 0.0 }
0x10f6   :  { %1863 = vadd.xlane.f32.xlu1 %v1862_v42  ;;  %v69_v42 = vld [vmem:[%s6600_s10 + $0x38] sm:$0xff] }
0x10f7   :  { %v6253_v44 = vpack.c.bf16 %v69_v42, %v68_v36 }
0x1183   :  { %v1864_v61 = vpop.xlane.xlu1 %1863 }
0x1184   :  { %5575 = vrcp.f32 %v1864_v61  ;;  %v6275_v61 = vpack.c.bf16 %v71_v60, %v70_v53  ;;  %v74_v53 = vld [vmem:[%s6600_s10 + $0x60] sm:$0xff]  ;;  %v75_v60 = vld [vmem:[%s6600_s10 + $0x68] sm:$0xff] }
0x118e   :  { %v5576_v15 = vpop.eup %5575 }
0x118f   :  { %v1866_v20 = vmul.f32 %v5576_v15, %v5574_v40  ;;  %v6261_v40 = vld [vmem:[%s6599_s9 + $0x2] sm:$0x1]  ;;  %v64_v15 = vld [vmem:[%s6600_s10 + $0x10] sm:$0xff] }
0x1190   :  { %v1535_v49 = vadd.f32 %v6261_v40, %v1534_v43  ;;  %v62_v43 = vld [vmem:[%s6600_s10] sm:$0xff] }
0x1191   :  { %4999 = vmatmul.mubr.msk.f32.vlgmr.msra.gmra.mrb[24].mxu1 %vm415_vm4, %v1866_v20  ;;  %v6285_v14 = vpack.c.bf16 %v63_v63, %v62_v43  ;;  %v65_v20 = vld [vmem:[%s6600_s10 + $0x18] sm:$0xff]  ;;  %v6307_v43 = vpack.c.bf16 %v75_v60, %v74_v53  ;;  %v76_v63 = vld [vmem:[%s6600_s10 + $0x70] sm:$0xff] }
0x1192   :  { %5414 = vmatpush3.bf16.msra.mxu1 %v6243_v39  ;;  %5020 = vmatprep.mubr.msk.f32.mxu1 %vm5637_vm0, %v5638_v6 }
0x1193   :  { %5415 = vmatprep.subr.bf16.mxu1 %v5636_v3 }
0x1196   :  { %5417 = vmatpush3.bf16.msra.mxu1 %v6253_v44 }
0x1197   :  { %5424 = vmatprep.subr.bf16.mxu1 %v5636_v3 }
0x1199   :  { %5021 = vmatmul.mubr.msk.f32.vlgmr.msra.gmra.mrb[26].mxu1 %vm93_vm1, %v1535_v49  ;;  %v6295_v49 = vpack.c.bf16 %v65_v20, %v64_v15  ;;  %v77_v15 = vld [vmem:[%s6600_s10 + $0x78] sm:$0xff] }
0x119a   :  { %5042 = vmatprep.mubr.msk.f32.mxu1 %vm5637_vm0, %v5638_v6  ;;  %5426 = vmatpush3.bf16.msra.mxu1 %v6275_v61 }
0x119b   :  { %5427 = vmatprep.subr.bf16.mxu1 %v5636_v3 }
0x1264   :  { %v1936_v36 = vpop.f32.mrb[24].mxu1 }
0x1265   :  { %v5000_v42 = vpop.f32.mrb[25].mxu1  ;;  %5010 = vmatmul.mubr.msk.f32.vlgmr.msra.gmra.mrb[20].mxu0 %vm93_vm1, %v1936_v36 }
0x1266   :  { %5420 = vmatpush3.bf16.msra.mxu0 %v6285_v14  ;;  %5031 = vmatprep.mubr.msk.f32.mxu0 %vm5637_vm0, %v5638_v6  ;;  %v6319_v42 = vpack.c.bf16 %v77_v15, %v76_v63 }
0x1267   :  { %5421 = vmatprep.subr.bf16.mxu0 %v5636_v3 }
0x126a   :  { %5423 = vmatpush3.bf16.msra.mxu0 %v6295_v49 }
0x126b   :  { %5430 = vmatprep.subr.bf16.mxu0 %v5636_v3 }
0x126c   :  { %v2089_v20 = vpop.f32.mrb[26].mxu1 }
0x126d   :  { %v5022_v36 = vpop.f32.mrb[27].mxu1  ;;  %5032 = vmatmul.mubr.msk.f32.vlgmr.msra.gmra.mrb[22].mxu0 %vm93_vm1, %v6021_v29  ;;  %v6603_v29 = vrot.slane %v5760_v16, 1 }
0x126e   :  { %5432 = vmatpush3.bf16.msra.mxu0 %v6307_v43  ;;  %5053 = vmatprep.mubr.msk.f32.mxu0 %vm5637_vm0, %v5638_v6 }
0x126f   :  { %5433 = vmatprep.subr.bf16.mxu0 %v5636_v3 }
0x1272   :  { %5435 = vmatpush3.bf16.msra.mxu0 %v6319_v42 }
0x1273   :  { %5442 = vmatprep.subr.bf16.mxu0 %v5636_v3 }
0x1275   :  { %5054 = vmatmul.mubr.msk.f32.vlgmr.msra.gmra.mrb[24].mxu0 %vm93_vm1, %v6165_v8  ;;  %v73_v8 = vld [vmem:[%s6600_s10 + $0x58] sm:$0xff] }
0x1276   :  { %5444 = vmatpush3.bf16.msra.mxu0 %v5718_v4  ;;  %5075 = vmatprep.mubr.msk.f32.mxu0 %vm5637_vm0, %v5638_v6  ;;  %v72_v4 = vld [vmem:[%s6600_s10 + $0x50] sm:$0xff] }
0x1277   :  { %5445 = vmatprep.subr.bf16.mxu0 %v5636_v3  ;;  %v6346_v53 = vpack.c.bf16 %v73_v8, %v72_v4  ;;  %v56_v4 = vld [vmem:[%s6591_s1 + $0x8] sm:$0xff] }
0x1279   :  { %5429 = vmatpush3.bf16.msra.mxu1 %v6346_v53 }
0x127a   :  { %5447 = vmatpush3.bf16.msra.mxu0 %v5741_v11  ;;  %5436 = vmatprep.subr.bf16.mxu1 %v5636_v3  ;;  %v6353_v11 = vld [vmem:[%s6599_s9 + $0x3] sm:$0x1] }
0x127b   :  { %5089 = vmatprep.subr.mxu0 %v5638_v6 }
0x127d   :  { %5076 = vmatmul.mubr.msk.f32.vlgmr.msra.gmra.mrb[26].mxu0 %vm93_vm1, %v6603_v29 }
0x127e   :  { %5091 = vmatprep.mubr.msk.f32.mxu0 %vm5637_vm0, %v5638_v6 }
0x1338   :  { %v2016_v60 = vpop.f32.mrb[20].mxu0 }
0x1339   :  { %v2017_v63 = vadd.f32 %v6353_v11, %v2016_v60  ;;  %v5011_v15 = vpop.f32.mrb[21].mxu0 }
0x133b   :  { %5043 = vmatmul.mubr.msk.f32.vlgmr.msra.gmra.mrb[28].mxu1 %vm93_vm1, %v2017_v63 }
0x133c   :  { %5438 = vmatpush3.bf16.msra.mxu1 %v5743_v12  ;;  %5064 = vmatprep.mubr.msk.f32.mxu1 %vm5637_vm0, %v5638_v6 }
0x133d   :  { %5439 = vmatprep.subr.bf16.mxu1 %v5636_v3 }
0x1340   :  { %v2159_v36 = vpop.f32.mrb[22].mxu0  ;;  %5441 = vmatpush3.bf16.msra.mxu1 %v5747_v13 }
0x1341   :  { %v2160_v8 = vadd.f32 %v2159_v36, %v2089_v20  ;;  %v5033_v29 = vpop.f32.mrb[23].mxu0  ;;  %5448 = vmatprep.subr.bf16.mxu1 %v5636_v3 }
0x1343   :  { %5065 = vmatmul.mubr.msk.f32.vlgmr.msra.gmra.mrb[30].mxu1 %vm93_vm1, %v56_v4 }
0x1344   :  { %5450 = vmatpush3.bf16.msra.mxu1 %v5767_v18  ;;  %5086 = vmatprep.mubr.msk.f32.mxu1 %vm5637_vm0, %v5638_v6 }
0x1345   :  { %5451 = vmatprep.subr.bf16.mxu1 %v5636_v3 }
0x1348   :  { %v2303_v12 = vpop.f32.mrb[24].mxu0  ;;  %5453 = vmatpush3.bf16.msra.mxu1 %v5785_v21 }
0x1349   :  { %v5055_v13 = vpop.f32.mrb[25].mxu0  ;;  %5094 = vmatprep.subr.mxu1 %v5638_v6 }
0x1350   :  { %v2451_v60 = vpop.f32.mrb[26].mxu0 }
0x1351   :  { %v2452_v20 = vadd.f32 %v2451_v60, %v5792_v22  ;;  %v5077_v29 = vpop.f32.mrb[27].mxu0 }
0x1353   :  { %5087 = vmatmul.mubr.msk.f32.vlgmr.msra.gmra.mrb[32].mxu1 %vm93_vm1, %v2452_v20 }
0x1354   :  { %5096 = vmatprep.mubr.msk.f32.mxu1 %vm5637_vm0, %v5638_v6 }
0x140e   :  { %v2232_v18 = vpop.f32.mrb[28].mxu1 }
0x140f   :  { %v2236_v63 = vadd.f32 %v2232_v18, %v2160_v8  ;;  %v5044_v15 = vpop.f32.mrb[29].mxu1 }
0x1411   :  { %v6377_v36 = vadd.f32 %v2303_v12, %v2236_v63 }
0x1416   :  { %v2378_v4 = vpop.f32.mrb[30].mxu1 }
0x1417   :  { %v2379_v21 = vadd.f32 %v5797_v24, %v2378_v4  ;;  %v5066_v13 = vpop.f32.mrb[31].mxu1 }
0x1419   :  { %5090 = vmatpush3.xpose.msk.msra.mxu0 %vm93_vm1, %v2379_v21  ;;  %5095 = vmatpush3.msra.mxu1 %v2379_v21 }
0x141a   :  { %5454 = vmatprep.subr.bf16.mxu0 %v5636_v3  ;;  %5460 = vmatprep.subr.bf16.mxu1 %v5636_v3 }
0x1426   :  { %v2524_v22 = vpop.f32.mrb[32].mxu1 }
0x1427   :  { %v5088_v60 = vpop.f32.mrb[33].mxu1  ;;  %5092 = vmatmul.mubr.msk.f32.vlgmr.msra.gmra.mrb[28].mxu0 %vm93_vm1, %v2524_v22 }
0x1428   :  { %5456 = vmatpush3.bf16.msra.mxu0 %v5830_v48  ;;  %5107 = vmatprep.mubr.msk.f32.mxu0 %vm5637_vm0, %v5638_v6 }
0x1429   :  { %5457 = vmatprep.subr.bf16.mxu0 %v5636_v3 }
0x142c   :  { %5459 = vmatpush3.bf16.msra.mxu0 %v5836_v50 }
0x142d   :  { %5466 = vmatprep.subr.bf16.mxu0 %v5636_v3 }
0x14fa   :  { %v2600_v24 = vpop.f32.mrb[28].mxu0 }
0x14fb   :  { %v2604_v8 = vsel %vm5813_vm2, %v2600_v24, -1e+30  ;;  %v5093_v12 = vpop.f32.mrb[29].mxu0 }
0x14fc   :  { %v2605_v20 = vsel %vm403_vm3, %v2604_v8, -inf }
0x14fd   :  { %2606 = vmax.xlane.f32.xlu0 %v2605_v20 }
0x158a   :  { %v2607_v29 = vpop.xlane.xlu0 %2606 }
0x158b   :  { %v2608_v18 = vsub.f32 %v2604_v8, %v2607_v29 }
0x158d   :  { %v2609_v48 = vmul.f32 1.442695, %v2608_v18 }
0x158f   :  { %5577 = vpow2.f32 %v2609_v48 }
0x1599   :  { %v5578_v63 = vpop.eup %5577 }
0x159a   :  { %v2611_v15 = vsel %vm403_vm3, %v5578_v63, 0.0 }
0x159b   :  { %2612 = vadd.xlane.f32.xlu1 %v2611_v15 }
0x1628   :  { %v2613_v4 = vpop.xlane.xlu1 %2612 }
0x1629   :  { %5579 = vrcp.f32 %v2613_v4 }
0x1633   :  { %v5580_v50 = vpop.eup %5579 }
0x1634   :  { %v2615_v21 = vmul.f32 %v5580_v50, %v5578_v63 }
0x1636   :  { %5097 = vmatmul.mubr.msk.f32.vlgmr.msra.gmra.mrb[34].mxu1 %vm415_vm4, %v2615_v21 }
0x1637   :  { %5462 = vmatpush3.bf16.msra.mxu1 %v5853_v57  ;;  %5118 = vmatprep.mubr.msk.f32.mxu1 %vm5637_vm0, %v5638_v6  ;;  %v6610_v57 = vrot.slane %v5760_v16, 1 }
0x1638   :  { %5463 = vmatprep.subr.bf16.mxu1 %v5636_v3 }
0x163b   :  { %5465 = vmatpush3.bf16.msra.mxu1 %v5859_v59  ;;  %v60_v59 = vld [vmem:[%s6591_s1 + $0x28] sm:$0xff] }
0x163c   :  { %5472 = vmatprep.subr.bf16.mxu1 %v5636_v3 }
0x163e   :  { %5119 = vmatmul.mubr.msk.f32.vlgmr.msra.gmra.mrb[36].mxu1 %vm93_vm1, %v60_v59 }
0x163f   :  { %5474 = vmatpush3.bf16.msra.mxu1 %v5901_v10  ;;  %5140 = vmatprep.mubr.msk.f32.mxu1 %vm5637_vm0, %v5638_v6 }
0x1640   :  { %5475 = vmatprep.subr.bf16.mxu1 %v5636_v3 }
0x1643   :  { %5477 = vmatpush3.bf16.msra.mxu1 %v5913_v17 }
0x1644   :  { %5148 = vmatprep.subr.mxu1 %v5638_v6 }
0x1709   :  { %v2685_v35 = vpop.f32.mrb[34].mxu1 }
0x170a   :  { %v5098_v13 = vpop.f32.mrb[35].mxu1  ;;  %5108 = vmatmul.mubr.msk.f32.vlgmr.msra.gmra.mrb[30].mxu0 %vm93_vm1, %v2685_v35 }
0x170b   :  { %5468 = vmatpush3.bf16.msra.mxu0 %v5870_v62  ;;  %5129 = vmatprep.mubr.msk.f32.mxu0 %vm5637_vm0, %v5638_v6 }
0x170c   :  { %5469 = vmatprep.subr.bf16.mxu0 %v5636_v3 }
0x170f   :  { %5471 = vmatpush3.bf16.msra.mxu0 %v5880_v5 }
0x1710   :  { %5143 = vmatprep.subr.mxu0 %v5638_v6 }
0x1711   :  { %v2831_v10 = vpop.f32.mrb[36].mxu1 }
0x1712   :  { %5130 = vmatmul.mubr.msk.f32.vlgmr.msra.gmra.mrb[32].mxu0 %vm93_vm1, %v6610_v57  ;;  %v2832_v24 = vadd.f32 %v5931_v28, %v2831_v10  ;;  %v5120_v8 = vpop.f32.mrb[37].mxu1 }
0x1713   :  { %5145 = vmatprep.mubr.msk.f32.mxu0 %vm5637_vm0, %v5638_v6 }
0x1718   :  { %5144 = vmatpush3.xpose.msk.msra.mxu0 %vm93_vm1, %v2832_v24 }
0x1719   :  { %5478 = vmatprep.subr.bf16.mxu0 %v5636_v3 }
0x17dd   :  { %v2758_v16 = vpop.f32.mrb[30].mxu0 }
0x17de   :  { %v5109_v62 = vpop.f32.mrb[31].mxu0 }
0x17e5   :  { %v2901_v5 = vpop.f32.mrb[32].mxu0 }
0x17e6   :  { %v2902_v22 = vadd.f32 %v5922_v23, %v2901_v5  ;;  %v5131_v60 = vpop.f32.mrb[33].mxu0 }
0x17e8   :  { %5141 = vmatmul.mubr.msk.f32.vlgmr.msra.gmra.mrb[38].mxu1 %vm93_vm1, %v2902_v22 }
0x17e9   :  { %5150 = vmatprep.mubr.msk.f32.mxu1 %vm5637_vm0, %v5638_v6  ;;  %5149 = vmatpush3.msra.mxu1 %v2832_v24 }
0x17ea   :  { %5484 = vmatprep.subr.bf16.mxu1 %v5636_v3 }
0x18bb   :  { %v2974_v17 = vpop.f32.mrb[38].mxu1 }
0x18bc   :  { %v5142_v12 = vpop.f32.mrb[39].mxu1  ;;  %5146 = vmatmul.mubr.msk.f32.vlgmr.msra.gmra.mrb[34].mxu0 %vm93_vm1, %v2974_v17 }
0x18bd   :  { %5480 = vmatpush3.bf16.msra.mxu0 %v5958_v52  ;;  %5161 = vmatprep.mubr.msk.f32.mxu0 %vm5637_vm0, %v5638_v6 }
0x18be   :  { %5481 = vmatprep.subr.bf16.mxu0 %v5636_v3 }
0x18c1   :  { %5483 = vmatpush3.bf16.msra.mxu0 %v5964_v54 }
0x18c2   :  { %5490 = vmatprep.subr.bf16.mxu0 %v5636_v3 }
0x198f   :  { %v3050_v23 = vpop.f32.mrb[34].mxu0 }
0x1990   :  { %v3054_v28 = vsel %vm5941_vm5, %v3050_v23, -1e+30  ;;  %v5147_v20 = vpop.f32.mrb[35].mxu0 }
0x1991   :  { %v3055_v29 = vsel %vm403_vm3, %v3054_v28, -inf }
0x1992   :  { %3056 = vmax.xlane.f32.xlu0 %v3055_v29 }
0x1a1f   :  { %v3057_v18 = vpop.xlane.xlu0 %3056 }
0x1a20   :  { %v3058_v48 = vsub.f32 %v3054_v28, %v3057_v18 }
0x1a22   :  { %v3059_v52 = vmul.f32 1.442695, %v3058_v48 }
0x1a24   :  { %5581 = vpow2.f32 %v3059_v52 }
0x1a2e   :  { %v5582_v63 = vpop.eup %5581 }
0x1a2f   :  { %v3061_v15 = vsel %vm403_vm3, %v5582_v63, 0.0 }
0x1a30   :  { %3062 = vadd.xlane.f32.xlu1 %v3061_v15 }
0x1abd   :  { %v3063_v4 = vpop.xlane.xlu1 %3062 }
0x1abe   :  { %5583 = vrcp.f32 %v3063_v4 }
0x1ac8   :  { %v5584_v54 = vpop.eup %5583 }
0x1ac9   :  { %v3065_v50 = vmul.f32 %v5584_v54, %v5582_v63 }
0x1acb   :  { %5151 = vmatmul.mubr.msk.f32.vlgmr.msra.gmra.mrb[40].mxu1 %vm415_vm4, %v3065_v50 }
0x1acc   :  { %5486 = vmatpush3.bf16.msra.mxu1 %v5981_v0  ;;  %5172 = vmatprep.mubr.msk.f32.mxu1 %vm5637_vm0, %v5638_v6  ;;  %v6456_v0 = vadd.f32 %v2758_v16, %v6016_v27 }
0x1acd   :  { %5487 = vmatprep.subr.bf16.mxu1 %v5636_v3 }
0x1ad0   :  { %5489 = vmatpush3.bf16.msra.mxu1 %v5987_v2  ;;  %v58_v2 = vld [vmem:[%s6591_s1 + $0x18] sm:$0xff] }
0x1ad1   :  { %5496 = vmatprep.subr.bf16.mxu1 %v5636_v3 }
0x1ad3   :  { %5173 = vmatmul.mubr.msk.f32.vlgmr.msra.gmra.mrb[42].mxu1 %vm93_vm1, %v58_v2 }
0x1ad4   :  { %5498 = vmatpush3.bf16.msra.mxu1 %v6041_v32  ;;  %5194 = vmatprep.mubr.msk.f32.mxu1 %vm5637_vm0, %v5638_v6 }
0x1ad5   :  { %5499 = vmatprep.subr.bf16.mxu1 %v5636_v3 }
0x1ad8   :  { %5501 = vmatpush3.bf16.msra.mxu1 %v6053_v38 }
0x1ad9   :  { %5202 = vmatprep.subr.mxu1 %v5638_v6 }
0x1b9e   :  { %v3135_v37 = vpop.f32.mrb[40].mxu1 }
0x1b9f   :  { %v5152_v21 = vpop.f32.mrb[41].mxu1  ;;  %5162 = vmatmul.mubr.msk.f32.vlgmr.msra.gmra.mrb[36].mxu0 %vm93_vm1, %v3135_v37 }
0x1ba0   :  { %5492 = vmatpush3.bf16.msra.mxu0 %v5998_v9  ;;  %5183 = vmatprep.mubr.msk.f32.mxu0 %vm5637_vm0, %v5638_v6 }
0x1ba1   :  { %5493 = vmatprep.subr.bf16.mxu0 %v5636_v3 }
0x1ba4   :  { %5495 = vmatpush3.bf16.msra.mxu0 %v6008_v26 }
0x1ba5   :  { %5197 = vmatprep.subr.mxu0 %v5638_v6 }
0x1ba6   :  { %v3281_v32 = vpop.f32.mrb[42].mxu1 }
0x1ba7   :  { %5184 = vmatmul.mubr.msk.f32.vlgmr.msra.gmra.mrb[38].mxu0 %vm93_vm1, %v6456_v0  ;;  %v3282_v57 = vadd.f32 %v6071_v45, %v3281_v32  ;;  %v5174_v59 = vpop.f32.mrb[43].mxu1 }
0x1ba8   :  { %5199 = vmatprep.mubr.msk.f32.mxu0 %vm5637_vm0, %v5638_v6 }
0x1bad   :  { %5198 = vmatpush3.xpose.msk.msra.mxu0 %vm93_vm1, %v3282_v57 }
0x1bae   :  { %5502 = vmatprep.subr.bf16.mxu0 %v5636_v3 }
0x1c72   :  { %v3208_v9 = vpop.f32.mrb[36].mxu0 }
0x1c73   :  { %v5163_v26 = vpop.f32.mrb[37].mxu0 }
0x1c7a   :  { %v3354_v27 = vpop.f32.mrb[38].mxu0 }
0x1c7b   :  { %v3355_v35 = vadd.f32 %v6062_v41, %v3354_v27  ;;  %v5185_v13 = vpop.f32.mrb[39].mxu0 }
0x1c7d   :  { %5195 = vmatmul.mubr.msk.f32.vlgmr.msra.gmra.mrb[44].mxu1 %vm93_vm1, %v3355_v35 }
0x1c7e   :  { %5204 = vmatprep.mubr.msk.f32.mxu1 %vm5637_vm0, %v5638_v6  ;;  %5203 = vmatpush3.msra.mxu1 %v3282_v57 }
0x1c7f   :  { %5508 = vmatprep.subr.bf16.mxu1 %v5636_v3 }
0x1d50   :  { %v3427_v38 = vpop.f32.mrb[44].mxu1 }
0x1d51   :  { %v5196_v16 = vpop.f32.mrb[45].mxu1  ;;  %5200 = vmatmul.mubr.msk.f32.vlgmr.msra.gmra.mrb[40].mxu0 %vm93_vm1, %v3427_v38 }
0x1d52   :  { %5504 = vmatpush3.bf16.msra.mxu0 %v6098_v31  ;;  %5215 = vmatprep.mubr.msk.f32.mxu0 %vm5637_vm0, %v5638_v6 }
0x1d53   :  { %5505 = vmatprep.subr.bf16.mxu0 %v5636_v3 }
0x1d56   :  { %5507 = vmatpush3.bf16.msra.mxu0 %v6104_v34 }
0x1d57   :  { %5514 = vmatprep.subr.bf16.mxu0 %v5636_v3 }
0x1e24   :  { %v3503_v41 = vpop.f32.mrb[40].mxu0 }
0x1e25   :  { %v3507_v45 = vsel %vm6081_vm6, %v3503_v41, -1e+30  ;;  %v5201_v62 = vpop.f32.mrb[41].mxu0 }
0x1e26   :  { %v3508_v5 = vsel %vm403_vm3, %v3507_v45, -inf }
0x1e27   :  { %3509 = vmax.xlane.f32.xlu0 %v3508_v5 }
0x1eb4   :  { %v3510_v22 = vpop.xlane.xlu0 %3509 }
0x1eb5   :  { %v3511_v60 = vsub.f32 %v3507_v45, %v3510_v22 }
0x1eb7   :  { %v3512_v31 = vmul.f32 1.442695, %v3511_v60 }
0x1eb9   :  { %5585 = vpow2.f32 %v3512_v31 }
0x1ec3   :  { %v5586_v10 = vpop.eup %5585 }
0x1ec4   :  { %v3514_v24 = vsel %vm403_vm3, %v5586_v10, 0.0 }
0x1ec5   :  { %3515 = vadd.xlane.f32.xlu1 %v3514_v24 }
0x1f52   :  { %v3516_v8 = vpop.xlane.xlu1 %3515 }
0x1f53   :  { %5587 = vrcp.f32 %v3516_v8 }
0x1f5d   :  { %v5588_v34 = vpop.eup %5587 }
0x1f5e   :  { %v3518_v17 = vmul.f32 %v5588_v34, %v5586_v10 }
0x1f60   :  { %5205 = vmatmul.mubr.msk.f32.vlgmr.msra.gmra.mrb[46].mxu1 %vm415_vm4, %v3518_v17 }
0x1f61   :  { %5510 = vmatpush3.bf16.msra.mxu1 %v6121_v47  ;;  %5226 = vmatprep.mubr.msk.f32.mxu1 %vm5637_vm0, %v5638_v6 }
0x1f62   :  { %5511 = vmatprep.subr.bf16.mxu1 %v5636_v3 }
0x1f65   :  { %5513 = vmatpush3.bf16.msra.mxu1 %v6127_v51  ;;  %v6513_v51 = vadd.f32 %v6160_v7, %v3208_v9 }
0x1f66   :  { %5520 = vmatprep.subr.bf16.mxu1 %v5636_v3 }
0x1f68   :  { %5227 = vmatmul.mubr.msk.f32.vlgmr.msra.gmra.mrb[48].mxu1 %vm93_vm1, %v58_v2 }
0x1f69   :  { %5522 = vmatpush3.bf16.msra.mxu1 %v6178_v33  ;;  %5248 = vmatprep.mubr.msk.f32.mxu1 %vm5637_vm0, %v5638_v6 }
0x1f6a   :  { %5523 = vmatprep.subr.bf16.mxu1 %v5636_v3 }
0x1f6d   :  { %5525 = vmatpush3.bf16.msra.mxu1 %v6188_v25 }
0x1f6e   :  { %5256 = vmatprep.subr.mxu1 %v5638_v6 }
0x2033   :  { %v3588_v47 = vpop.f32.mrb[46].mxu1 }
0x2034   :  { %v5206_v12 = vpop.f32.mrb[47].mxu1  ;;  %5216 = vmatmul.mubr.msk.f32.vlgmr.msra.gmra.mrb[42].mxu0 %vm93_vm1, %v3588_v47 }
0x2035   :  { %5516 = vmatpush3.bf16.msra.mxu0 %v6142_v58  ;;  %5237 = vmatprep.mubr.msk.f32.mxu0 %vm5637_vm0, %v5638_v6 }
0x2036   :  { %5517 = vmatprep.subr.bf16.mxu0 %v5636_v3 }
0x2039   :  { %5519 = vmatpush3.bf16.msra.mxu0 %v6152_v1 }
0x203a   :  { %5251 = vmatprep.subr.mxu0 %v5638_v6 }
0x203b   :  { %v3731_v33 = vpop.f32.mrb[48].mxu1 }
0x203c   :  { %5238 = vmatmul.mubr.msk.f32.vlgmr.msra.gmra.mrb[44].mxu0 %vm93_vm1, %v6513_v51  ;;  %v3732_v58 = vadd.f32 %v6195_v19, %v3731_v33  ;;  %v5228_v25 = vpop.f32.mrb[49].mxu1 }
0x203d   :  { %5253 = vmatprep.mubr.msk.f32.mxu0 %vm5637_vm0, %v5638_v6 }
0x2042   :  { %5252 = vmatpush3.xpose.msk.msra.mxu0 %vm93_vm1, %v3732_v58 }
0x2043   :  { %5526 = vmatprep.subr.bf16.mxu0 %v5636_v3 }
0x2107   :  { %v3661_v1 = vpop.f32.mrb[42].mxu0 }
0x2108   :  { %v5217_v23 = vpop.f32.mrb[43].mxu0  ;;  %v3662_v56 = vadd.f32 %v6261_v40, %v3661_v1 }
0x210f   :  { %v3804_v7 = vpop.f32.mrb[44].mxu0 }
0x2110   :  { %v3805_v28 = vadd.f32 %v6203_v46, %v3804_v7  ;;  %v5239_v20 = vpop.f32.mrb[45].mxu0 }
0x2112   :  { %5249 = vmatmul.mubr.msk.f32.vlgmr.msra.gmra.mrb[50].mxu1 %vm93_vm1, %v3805_v28 }
0x2113   :  { %5257 = vmatpush3.msra.mxu1 %v3732_v58  ;;  %5258 = vmatprep.mubr.msk.f32.mxu1 %vm5637_vm0, %v5638_v6 }
0x2114   :  { %5532 = vmatprep.subr.bf16.mxu1 %v5636_v3 }
0x21e5   :  { %v3877_v19 = vpop.f32.mrb[50].mxu1 }
0x21e6   :  { %v5250_v29 = vpop.f32.mrb[51].mxu1  ;;  %5254 = vmatmul.mubr.msk.f32.vlgmr.msra.gmra.mrb[46].mxu0 %vm93_vm1, %v3877_v19 }
0x21e7   :  { %5528 = vmatpush3.bf16.msra.mxu0 %v6226_v55  ;;  %5269 = vmatprep.mubr.msk.f32.mxu0 %vm5637_vm0, %v5638_v6 }
0x21e8   :  { %5529 = vmatprep.subr.bf16.mxu0 %v5636_v3 }
0x21eb   :  { %5531 = vmatpush3.bf16.msra.mxu0 %v6232_v30 }
0x21ec   :  { %5538 = vmatprep.subr.bf16.mxu0 %v5636_v3 }
0x22b9   :  { %v3953_v46 = vpop.f32.mrb[46].mxu0 }
0x22ba   :  { %v3957_v18 = vsel %vm6081_vm6, %v3953_v46, -1e+30  ;;  %v5255_v48 = vpop.f32.mrb[47].mxu0 }
0x22bb   :  { %v3958_v52 = vsel %vm403_vm3, %v3957_v18, -inf }
0x22bc   :  { %3959 = vmax.xlane.f32.xlu0 %v3958_v52 }
0x2349   :  { %v3960_v63 = vpop.xlane.xlu0 %3959 }
0x234a   :  { %v3961_v15 = vsub.f32 %v3957_v18, %v3960_v63 }
0x234c   :  { %v3962_v55 = vmul.f32 1.442695, %v3961_v15 }
0x234e   :  { %5589 = vpow2.f32 %v3962_v55 }
0x2358   :  { %v5590_v4 = vpop.eup %5589 }
0x2359   :  { %v3964_v54 = vsel %vm403_vm3, %v5590_v4, 0.0 }
0x235a   :  { %3965 = vadd.xlane.f32.xlu1 %v3964_v54 }
0x23e7   :  { %v3966_v50 = vpop.xlane.xlu1 %3965 }
0x23e8   :  { %5591 = vrcp.f32 %v3966_v50 }
0x23f2   :  { %v5592_v30 = vpop.eup %5591 }
0x23f3   :  { %v3968_v37 = vmul.f32 %v5592_v30, %v5590_v4 }
0x23f5   :  { %5259 = vmatmul.mubr.msk.f32.vlgmr.msra.gmra.mrb[52].mxu1 %vm415_vm4, %v3968_v37 }
0x23f6   :  { %5534 = vmatpush3.bf16.msra.mxu1 %v6243_v39  ;;  %5280 = vmatprep.mubr.msk.f32.mxu1 %vm5637_vm0, %v5638_v6 }
0x23f7   :  { %5535 = vmatprep.subr.bf16.mxu1 %v5636_v3 }
0x23fa   :  { %5537 = vmatpush3.bf16.msra.mxu1 %v6253_v44 }
0x23fb   :  { %5544 = vmatprep.subr.bf16.mxu1 %v5636_v3 }
0x23fd   :  { %5281 = vmatmul.mubr.msk.f32.vlgmr.msra.gmra.mrb[54].mxu1 %vm93_vm1, %v3662_v56 }
0x23fe   :  { %5546 = vmatpush3.bf16.msra.mxu1 %v6275_v61  ;;  %5302 = vmatprep.mubr.msk.f32.mxu1 %vm5637_vm0, %v5638_v6 }
0x23ff   :  { %5547 = vmatprep.subr.bf16.mxu1 %v5636_v3 }
0x2402   :  { %5549 = vmatpush3.bf16.msra.mxu1 %v6346_v53 }
0x24c8   :  { %v4038_v39 = vpop.f32.mrb[52].mxu1 }
0x24c9   :  { %v5260_v21 = vpop.f32.mrb[53].mxu1  ;;  %5270 = vmatmul.mubr.msk.f32.vlgmr.msra.gmra.mrb[48].mxu0 %vm93_vm1, %v4038_v39 }
0x24ca   :  { %5540 = vmatpush3.bf16.msra.mxu0 %v6285_v14  ;;  %5291 = vmatprep.mubr.msk.f32.mxu0 %vm5637_vm0, %v5638_v6 }
0x24cb   :  { %5541 = vmatprep.subr.bf16.mxu0 %v5636_v3 }
0x24ce   :  { %5543 = vmatpush3.bf16.msra.mxu0 %v6295_v49 }
0x24cf   :  { %5550 = vmatprep.subr.bf16.mxu0 %v5636_v3 }
0x24d0   :  { %v4184_v44 = vpop.f32.mrb[54].mxu1 }
0x24d1   :  { %v5282_v40 = vpop.f32.mrb[55].mxu1  ;;  %5292 = vmatmul.mubr.msk.f32.vlgmr.msra.gmra.mrb[50].mxu0 %vm93_vm1, %v6456_v0 }
0x24d2   :  { %5552 = vmatpush3.bf16.msra.mxu0 %v6307_v43  ;;  %5313 = vmatprep.mubr.msk.f32.mxu0 %vm5637_vm0, %v5638_v6 }
0x24d3   :  { %5553 = vmatprep.subr.bf16.mxu0 %v5636_v3 }
0x24d6   :  { %5555 = vmatpush3.bf16.msra.mxu0 %v6319_v42  ;;  %v78_v42 = vld [vmem:[%s6601_s11] sm:$0x1]  ;;  %s5639_s11 = smov [#allocation5]  }
0x24d7   :  { %s4428_s13 = sshll.u32 %s5639_s11, 4  ;;  %s4429_s13 = int_to_ptr.vmem [resolvable:$true] %s4428_s13 }
0x24d8   :  { %s5609_s7 = scalar_lea.vmem %s4429_s13, 32  ;;  %p5614_p6 = scmp.lt.s32.totalorder %s4429_s13, %s4429_s13 }
0x24d9   :  { %5314 = vmatmul.mubr.msk.f32.vlgmr.msra.gmra.mrb[52].mxu0 %vm93_vm1, %v6513_v51  ;;  %p5610_p5 = scmp.ne.s32.totalorder %s4429_s13, %s5609_s7  ;;  %p5615_p7 = scmp.lt.s32.totalorder %s5609_s7, %s5609_s7 }
0x24db   :  { %p5616_p8 = por %p5615_p7, %p5614_p6 }
0x24dd   :  { %p5617_p9 = pnand %p5616_p8, %p5610_p5 }
0x259c   :  { %v4111_v61 = vpop.f32.mrb[48].mxu0 }
0x259d   :  { %v4112_v14 = vadd.f32 %v6353_v11, %v4111_v61  ;;  %v5271_v49 = vpop.f32.mrb[49].mxu0  ;;  %v2308_v11 = vadd.f32 %v6377_v36, %v78_v42 }
0x259f   :  { %5303 = vmatmul.mubr.msk.f32.vlgmr.msra.gmra.mrb[56].mxu1 %vm93_vm1, %v4112_v14 }
0x25a4   :  { %v4254_v53 = vpop.f32.mrb[50].mxu0 }
0x25a5   :  { %v4255_v0 = vadd.f32 %v4254_v53, %v4184_v44  ;;  %v5293_v2 = vpop.f32.mrb[51].mxu0 }
0x25ac   :  { %v4398_v43 = vpop.f32.mrb[52].mxu0 }
0x25ad   :  { %v5315_v9 = vpop.f32.mrb[53].mxu0 }
0x2672   :  { %v4327_v26 = vpop.f32.mrb[56].mxu1 }
0x2673   :  { %v4331_v6 = vadd.f32 %v4327_v26, %v4255_v0  ;;  %v5304_v27 = vpop.f32.mrb[57].mxu1 }
0x2675   :  { %v4402_v3 = vadd.f32 %v4398_v43, %v4331_v6 }
0x2677   :  { %v4403_v35 = vadd.f32 %v4402_v3, %v78_v42 }
0x2679   :  { %v4405_v13 = vrot.slane %v4403_v35, 7 }
0x267b   :  { %v4408_v32 = vsel %vm4407_vm7, %v2308_v11, %v4405_v13 }
0x267c   :  { %v4410_v57 = vsel %vm4409_vm8, %v4408_v32, -inf }
0x267d   :  { %4411 = vmax.xlane.f32.xlu0 %v4410_v57 }
0x270a   :  { %v4412_v59 = vpop.xlane.xlu0 %4411 }
0x270b   :  { %v4413_v38 = vsub.f32 %v4408_v32, %v4412_v59 }
0x270d   :  { %v4414_v16 = vmul.f32 1.442695, %v4413_v38 }
0x270f   :  { %5593 = vpow2.f32 %v4414_v16 }
0x2719   :  { %v5594_v41 = vpop.eup %5593 }
0x271a   :  { %v4416_v45 = vsel %vm4409_vm8, %v5594_v41, 0.0 }
0x271b   :  { %4417 = vadd.xlane.f32.xlu1 %v4416_v45 }
0x27a8   :  { %v4418_v62 = vpop.xlane.xlu1 %4417 }
0x27a9   :  { %5595 = vrcp.f32 %v4418_v62 }
0x27b3   :  { %v5596_v5 = vpop.eup %5595 }
0x27b4   :  { %v4420_v36 = vmul.f32 %v5596_v5, %v5594_v41 }
0x27b6   :  { %4421 = vst.msk [vmem:[#allocation5] sm:$0x3] %vm4409_vm8, %v4420_v36 }
0x27b7   :  { %5620 = shalt.err (!%p5617_p9)
}
0x27b8   :  { %s5621_s6 = scalar_lea.hbm %s6602_s12, 32 }
0x27b9   :  { %p5622_p10 = scmp.ne.s32.totalorder %s6602_s12, %s5621_s6  ;;  %p5625_p11 = scmp.lt.u32.totalorder %s5621_s6, %s6602_s12 }
0x27bb   :  { %p5627_p12 = pnand %p5625_p11, %p5622_p10 }
0x27bd   :  { %5630 = shalt.err (!%p5627_p12)
}
0x27be   :  { %4431 = dma.vmem_to_hbm [thread:$0]  %s4429_s13, 32, %s6602_s12, [#allocation3]  }
0x27bf   :  { %5633 = dma.done.wait [#allocation3], 32  }
0x27c0   :  { %5634 = vsyncadd [#allocation3], 4294967264 }
0x27c1   :  { %4435 = vsyncpa [#allocation3], 1 }
0x27c2   :  { %4436 = vsyncpa [#allocation4], 1 }

</bundles_post_ra>
